<compile_context>
chip_gen: v7x
topology: tpu7x:2x2x1
jax: 0.10.0
libtpu: 0.0.40
codegen_flags: <defaults>
</compile_context>

<pallas_src>
import functools

import numpy as np
import jax
import jax.numpy as jnp
from jax.experimental import pallas as pl
from jax.experimental.pallas import tpu as pltpu


def _wmsa_kernel(x_ref, wqkv_ref, bqkv_ref, wp_ref, bp_ref, bias_ref, o_ref,
                 *, num_heads, head_dim, block_windows, tokens):
    H, Hd, Bb, N = num_heads, head_dim, block_windows, tokens
    C = H * Hd

    x = x_ref[...]                                              # (Bb*N, C)

    # Fused QKV projection: one MXU pass with a 3C-wide output.
    qkv = jnp.dot(x, wqkv_ref[...],
                  preferred_element_type=jnp.float32) + bqkv_ref[...]  # (Bb*N, 3C) f32

    head_outs = []
    for h in range(H):                                          # H is small & static
        lo = h * Hd
        # qk scale already folded into the Q weight/bias in the wrapper.
        qh = qkv[:, lo:lo + Hd].reshape(Bb, N, Hd)
        kh = qkv[:, C + lo:C + lo + Hd].reshape(Bb, N, Hd)
        vh = qkv[:, 2 * C + lo:2 * C + lo + Hd].reshape(Bb, N, Hd)

        s = jnp.einsum("bnd,bmd->bnm", qh, kh,
                       preferred_element_type=jnp.float32)      # (Bb, N, N)
        s = s + bias_ref[h]                                     # rel-pos bias (+ mask)
        # numerically-stable softmax along the last axis
        s = s - jnp.max(s, axis=-1, keepdims=True)
        p = jnp.exp(s)
        p = p * pl.reciprocal(jnp.sum(p, axis=-1, keepdims=True), approx=True)
        # attn_drop has p=0.0 in eval -> identity
        oh = jnp.einsum("bnm,bmd->bnd", p, vh,
                        preferred_element_type=jnp.float32)     # (Bb, N, Hd)
        head_outs.append(oh.reshape(Bb * N, Hd))

    y = jnp.concatenate(head_outs, axis=-1)                     # (Bb*N, C) f32
    # output projection (proj_drop p=0.0 -> identity)
    out = jnp.dot(y, wp_ref[...],
                  preferred_element_type=jnp.float32) + bp_ref[...]
    o_ref[...] = out.astype(o_ref.dtype)


def _pick_block_windows(total_windows, nw, tokens, target_rows=512):
    """Pick Bb: a multiple of nw dividing total_windows, aiming for
    Bb*tokens ~ target_rows while keeping >= 2 grid steps when possible
    (v7x has two TensorCores; megacore sharding needs >= 2 parallel steps)."""
    bb = nw
    while total_windows % (2 * bb) == 0 and 2 * bb * tokens <= target_rows:
        bb *= 2
    while total_windows // bb < 2 and bb % (2 * nw) == 0:
        bb //= 2
    return bb


def window_attention_pallas(x, qkv_w, qkv_b, proj_w, proj_b, rel_bias, mask,
                            *, num_heads, scale, block_windows=None):
    """x: (B_, N, C). qkv_w: (3C, C), qkv_b: (3C,), proj_w: (C, C), proj_b: (C,)
    in PyTorch nn.Linear layouts. rel_bias: (H, N, N). mask: (nw, N, N) or None."""
    B_, N, C = x.shape
    H = num_heads
    assert C % H == 0
    Hd = C // H
    nw = 1 if mask is None else mask.shape[0]
    assert B_ % nw == 0

    Bb = block_windows if block_windows is not None else _pick_block_windows(B_, nw, N)
    if (Bb * N) % 8 != 0 and Bb != B_:
        Bb = B_   # full-extent block always satisfies the (8, 128) tiling rule
    assert B_ % Bb == 0 and Bb % nw == 0

    # ---- parameter prep (plain-JAX glue, runs once per call) -----------------
    # Fused (C, 3C) weight in x @ W layout; qk scale folded into the Q columns.
    w_qkv = jnp.concatenate(
        [qkv_w[:C].T * scale, qkv_w[C:2 * C].T, qkv_w[2 * C:].T], axis=1
    ).astype(x.dtype)                                                    # (C, 3C)
    b_qkv = jnp.concatenate(
        [qkv_b[:C] * scale, qkv_b[C:2 * C], qkv_b[2 * C:]]
    ).reshape(1, 3 * C).astype(jnp.float32)
    w_p = proj_w.T.astype(x.dtype)                                       # (C, C)
    b_p = proj_b.reshape(1, C).astype(jnp.float32)

    # Combined additive bias per window, tiled to the Bb windows of one block,
    # head-major so the kernel indexes a leading axis: (H, Bb, N, N).
    combined = rel_bias[None] if mask is None else rel_bias[None] + mask[:, None]
    bias_full = jnp.transpose(jnp.tile(combined, (Bb // nw, 1, 1, 1)),
                              (1, 0, 2, 3)).astype(jnp.float32)

    rows = Bb * N
    x2d = x.reshape(B_ * N, C)   # collapse leading dims (lane layout unchanged)

    kernel = functools.partial(_wmsa_kernel, num_heads=H, head_dim=Hd,
                               block_windows=Bb, tokens=N)

    grid_spec = pltpu.PrefetchScalarGridSpec(
        num_scalar_prefetch=0,
        grid=(B_ // Bb,),
        in_specs=[
            pl.BlockSpec((rows, C), lambda b: (b, 0)),             # x slab
            pl.BlockSpec((C, 3 * C), lambda b: (0, 0)),            # fused qkv weight
            pl.BlockSpec((1, 3 * C), lambda b: (0, 0)),            # fused qkv bias
            pl.BlockSpec((C, C), lambda b: (0, 0)),                # proj weight
            pl.BlockSpec((1, C), lambda b: (0, 0)),                # proj bias
            pl.BlockSpec((H, Bb, N, N), lambda b: (0, 0, 0, 0)),   # bias(+mask), resident
        ],
        out_specs=pl.BlockSpec((rows, C), lambda b: (b, 0)),
    )

    out2d = pl.pallas_call(
        kernel,
        out_shape=jax.ShapeDtypeStruct((B_ * N, C), x.dtype),
        grid_spec=grid_spec,
        compiler_params=pltpu.CompilerParams(dimension_semantics=("parallel",)),
    )(x2d, w_qkv, b_qkv, w_p, b_p, bias_full)
    return out2d.reshape(B_, N, C)


def make_relative_position_index(window_size):
    Wh, Ww = window_size
    coords_h = np.arange(Wh)
    coords_w = np.arange(Ww)
    coords = np.stack(np.meshgrid(coords_h, coords_w, indexing="ij"))   # (2, Wh, Ww)
    coords_flatten = coords.reshape(2, -1)                              # (2, N)
    rel = coords_flatten[:, :, None] - coords_flatten[:, None, :]       # (2, N, N)
    rel = rel.transpose(1, 2, 0).copy()                                 # (N, N, 2)
    rel[:, :, 0] += Wh - 1
    rel[:, :, 1] += Ww - 1
    rel[:, :, 0] *= 2 * Ww - 1
    return jnp.asarray(rel.sum(-1), dtype=jnp.int32)                    # (N, N)


def make_shift_mask(feat_hw, window, shift):
    """Swin shifted-window attention mask: (num_windows, N, N) of {0, -100}."""
    Hh, Ww = feat_hw
    img = np.zeros((Hh, Ww), dtype=np.float32)
    slices = (slice(0, -window), slice(-window, -shift), slice(-shift, None))
    cnt = 0
    for hs in slices:
        for ws_ in slices:
            img[hs, ws_] = cnt
            cnt += 1
    win = img.reshape(Hh // window, window, Ww // window, window)
    win = win.transpose(0, 2, 1, 3).reshape(-1, window * window)        # (nw, N)
    diff = win[:, None, :] - win[:, :, None]
    return jnp.asarray(np.where(diff != 0, -100.0, 0.0).astype(np.float32))


def reference_window_attention(x, qkv_w, qkv_b, proj_w, proj_b, rel_bias, mask,
                               *, num_heads, scale):
    """Plain-JAX reference mirroring the PyTorch forward."""
    B, N, C = x.shape
    H = num_heads
    Hd = C // H
    qkv = (x @ qkv_w.T + qkv_b).reshape(B, N, 3, H, Hd).transpose(2, 0, 3, 1, 4)
    q, k, v = qkv[0], qkv[1], qkv[2]
    q = q * scale
    attn = jnp.einsum("bhnd,bhmd->bhnm", q, k)
    attn = attn + rel_bias[None]                                        # (B,H,N,N)
    if mask is not None:
        nw = mask.shape[0]
        attn = attn.reshape(B // nw, nw, H, N, N) + mask[None, :, None]
        attn = attn.reshape(B, H, N, N)
    attn = jax.nn.softmax(attn, axis=-1)
    out = jnp.einsum("bhnm,bhmd->bhnd", attn, v)
    out = out.transpose(0, 2, 1, 3).reshape(B, N, C)
    return out @ proj_w.T + proj_b


if __name__ == "__main__":
    dim = 32
    window_size = (4, 4)
    num_heads = 4
    head_dim = dim // num_heads
    scale = head_dim ** (-0.5)
    N = window_size[0] * window_size[1]          # 16 tokens per window

    # 8x8 feature map split into 4x4 windows with shift 2 -> nw = 4 windows.
    mask = make_shift_mask((8, 8), window_size[0], 2)                   # (4, N, N)
    nw = mask.shape[0]
    batch = 4
    B_ = batch * nw                                                     # 16 window-batches

    key = jax.random.PRNGKey(0)
    keys = jax.random.split(key, 6)

    # Deterministic synthetic parameters (PyTorch nn.Linear shapes).
    rpbt = 0.02 * jax.random.normal(
        keys[0], ((2 * window_size[0] - 1) * (2 * window_size[1] - 1), num_heads),
        dtype=jnp.float32)
    qkv_w = 0.05 * jax.random.normal(keys[1], (3 * dim, dim), dtype=jnp.float32)
    qkv_b = 0.05 * jax.random.normal(keys[2], (3 * dim,), dtype=jnp.float32)
    proj_w = 0.05 * jax.random.normal(keys[3], (dim, dim), dtype=jnp.float32)
    proj_b = 0.05 * jax.random.normal(keys[4], (dim,), dtype=jnp.float32)
    x = jax.random.normal(keys[5], (B_, N, dim), dtype=jnp.float32)

    # Relative position bias: table gather (plain-JAX glue) -> dense (H, N, N).
    rel_index = make_relative_position_index(window_size)
    rel_bias = rpbt[rel_index.reshape(-1)].reshape(N, N, num_heads)
    rel_bias = jnp.transpose(rel_bias, (2, 0, 1))

    out = window_attention_pallas(
        x, qkv_w, qkv_b, proj_w, proj_b, rel_bias, mask,
        num_heads=num_heads, scale=scale)
    out = jax.block_until_ready(out)

    ref = reference_window_attention(
        x, qkv_w, qkv_b, proj_w, proj_b, rel_bias, mask,
        num_heads=num_heads, scale=scale)

    # Slightly loose tolerance: softmax denominator uses the EUP approx reciprocal.
    np.testing.assert_allclose(np.asarray(out), np.asarray(ref), rtol=2e-3, atol=2e-3)
    print("KERNEL_OK")
</pallas_src>

<mosaic_0001>
module attributes {stable_mosaic.version = 11 : i64} {
  func.func @_wmsa_kernel(%arg0: i32, %arg1: memref<128x32xf32, #tpu.memory_space<vmem>>, %arg2: memref<32x96xf32, #tpu.memory_space<vmem>>, %arg3: memref<1x96xf32, #tpu.memory_space<vmem>>, %arg4: memref<32x32xf32, #tpu.memory_space<vmem>>, %arg5: memref<1x32xf32, #tpu.memory_space<vmem>>, %arg6: memref<4x8x16x16xf32, #tpu.memory_space<vmem>>, %arg7: memref<128x32xf32, #tpu.memory_space<vmem>>) attributes {dimension_semantics = [#tpu.dimension_semantics<parallel>], iteration_bounds = array<i64: 2>, scalar_prefetch = 0 : i64, scratch_operands = 0 : i64, tpu.core_type = #tpu.core_type<tc>, window_params = [{transform_indices = @transform_0, window_bounds = array<i64: 128, 32>}, {pipeline_mode = #tpu.pipeline_mode<synchronous>, transform_indices = @transform_1, window_bounds = array<i64: 32, 96>}, {pipeline_mode = #tpu.pipeline_mode<synchronous>, transform_indices = @transform_2, window_bounds = array<i64: 1, 96>}, {pipeline_mode = #tpu.pipeline_mode<synchronous>, transform_indices = @transform_3, window_bounds = array<i64: 32, 32>}, {pipeline_mode = #tpu.pipeline_mode<synchronous>, transform_indices = @transform_4, window_bounds = array<i64: 1, 32>}, {pipeline_mode = #tpu.pipeline_mode<synchronous>, transform_indices = @transform_5, window_bounds = array<i64: 4, 8, 16, 16>}, {transform_indices = @transform_6, window_bounds = array<i64: 128, 32>}]} {
    %c0 = arith.constant 0 : index
    %c0_0 = arith.constant 0 : index
    %0 = vector.load %arg1[%c0, %c0_0] : memref<128x32xf32, #tpu.memory_space<vmem>>, vector<128x32xf32>
    %c0_1 = arith.constant 0 : index
    %c0_2 = arith.constant 0 : index
    %1 = vector.load %arg2[%c0_1, %c0_2] : memref<32x96xf32, #tpu.memory_space<vmem>>, vector<32x96xf32>
    %cst = arith.constant dense<0.000000e+00> : vector<128x96xf32>
    %2 = tpu.matmul %0, %1, %cst {dimension_numbers = #tpu.dot_dimension_numbers<[1], [0], [0], [1], [0, 0, 1, 1], [], []>} : vector<128x32xf32>, vector<32x96xf32>, vector<128x96xf32> -> vector<128x96xf32>
    %c0_3 = arith.constant 0 : index
    %c0_4 = arith.constant 0 : index
    %3 = vector.load %arg3[%c0_3, %c0_4] : memref<1x96xf32, #tpu.memory_space<vmem>>, vector<1x96xf32>
    %4 = vector.broadcast %3 : vector<1x96xf32> to vector<128x96xf32>
    %5 = arith.addf %2, %4 : vector<128x96xf32>
    %6 = vector.extract_strided_slice %5 {offsets = [0, 0], sizes = [128, 8], strides = [1, 1]} : vector<128x96xf32> to vector<128x8xf32>
    %7 = vector.shape_cast %6 : vector<128x8xf32> to vector<8x16x8xf32>
    %8 = vector.extract_strided_slice %5 {offsets = [0, 32], sizes = [128, 8], strides = [1, 1]} : vector<128x96xf32> to vector<128x8xf32>
    %9 = vector.shape_cast %8 : vector<128x8xf32> to vector<8x16x8xf32>
    %10 = vector.extract_strided_slice %5 {offsets = [0, 64], sizes = [128, 8], strides = [1, 1]} : vector<128x96xf32> to vector<128x8xf32>
    %11 = vector.shape_cast %10 : vector<128x8xf32> to vector<8x16x8xf32>
    "tpu.trace_start"() <{level = 10 : i32, message = "bnd,bmd->bnm"}> : () -> ()
    %cst_5 = arith.constant dense<0.000000e+00> : vector<8x16x16xf32>
    %12 = tpu.matmul %7, %9, %cst_5 {dimension_numbers = #tpu.dot_dimension_numbers<[2], [2], [1], [1], [0, 0, 0, 1, 1, 1], [0], [0]>} : vector<8x16x8xf32>, vector<8x16x8xf32>, vector<8x16x16xf32> -> vector<8x16x16xf32>
    "tpu.trace_stop"() : () -> ()
    %c0_6 = arith.constant 0 : index
    %c0_7 = arith.constant 0 : index
    %c0_8 = arith.constant 0 : index
    %c0_9 = arith.constant 0 : index
    %13 = vector.load %arg6[%c0_6, %c0_7, %c0_8, %c0_9] : memref<4x8x16x16xf32, #tpu.memory_space<vmem>>, vector<1x8x16x16xf32>
    %14 = vector.shape_cast %13 : vector<1x8x16x16xf32> to vector<8x16x16xf32>
    %15 = arith.addf %12, %14 : vector<8x16x16xf32>
    %cst_10 = arith.constant dense<0xFF800000> : vector<8x16xf32>
    %16 = vector.multi_reduction <maximumf>, %15, %cst_10 [2] : vector<8x16x16xf32> to vector<8x16xf32>
    %17 = vector.shape_cast %16 : vector<8x16xf32> to vector<8x16x1xf32>
    %18 = vector.broadcast %17 : vector<8x16x1xf32> to vector<8x16x16xf32>
    %19 = arith.subf %15, %18 : vector<8x16x16xf32>
    %20 = math.exp %19 : vector<8x16x16xf32>
    %cst_11 = arith.constant dense<0.000000e+00> : vector<8x16xf32>
    %21 = vector.multi_reduction <add>, %20, %cst_11 [2] : vector<8x16x16xf32> to vector<8x16xf32>
    %22 = vector.shape_cast %21 : vector<8x16xf32> to vector<8x16x1xf32>
    %23 = tpu.reciprocal %22 {approx = true} : vector<8x16x1xf32> -> vector<8x16x1xf32>
    %24 = vector.broadcast %23 : vector<8x16x1xf32> to vector<8x16x16xf32>
    %25 = arith.mulf %20, %24 : vector<8x16x16xf32>
    "tpu.trace_start"() <{level = 10 : i32, message = "bnm,bmd->bnd"}> : () -> ()
    %cst_12 = arith.constant dense<0.000000e+00> : vector<8x16x8xf32>
    %26 = tpu.matmul %25, %11, %cst_12 {dimension_numbers = #tpu.dot_dimension_numbers<[2], [1], [1], [2], [0, 0, 0, 1, 1, 2], [0], [0]>} : vector<8x16x16xf32>, vector<8x16x8xf32>, vector<8x16x8xf32> -> vector<8x16x8xf32>
    "tpu.trace_stop"() : () -> ()
    %27 = vector.shape_cast %26 : vector<8x16x8xf32> to vector<128x8xf32>
    %28 = vector.extract_strided_slice %5 {offsets = [0, 8], sizes = [128, 8], strides = [1, 1]} : vector<128x96xf32> to vector<128x8xf32>
    %29 = vector.shape_cast %28 : vector<128x8xf32> to vector<8x16x8xf32>
    %30 = vector.extract_strided_slice %5 {offsets = [0, 40], sizes = [128, 8], strides = [1, 1]} : vector<128x96xf32> to vector<128x8xf32>
    %31 = vector.shape_cast %30 : vector<128x8xf32> to vector<8x16x8xf32>
    %32 = vector.extract_strided_slice %5 {offsets = [0, 72], sizes = [128, 8], strides = [1, 1]} : vector<128x96xf32> to vector<128x8xf32>
    %33 = vector.shape_cast %32 : vector<128x8xf32> to vector<8x16x8xf32>
    "tpu.trace_start"() <{level = 10 : i32, message = "bnd,bmd->bnm"}> : () -> ()
    %cst_13 = arith.constant dense<0.000000e+00> : vector<8x16x16xf32>
    %34 = tpu.matmul %29, %31, %cst_13 {dimension_numbers = #tpu.dot_dimension_numbers<[2], [2], [1], [1], [0, 0, 0, 1, 1, 1], [0], [0]>} : vector<8x16x8xf32>, vector<8x16x8xf32>, vector<8x16x16xf32> -> vector<8x16x16xf32>
    "tpu.trace_stop"() : () -> ()
    %c1 = arith.constant 1 : index
    %c0_14 = arith.constant 0 : index
    %c0_15 = arith.constant 0 : index
    %c0_16 = arith.constant 0 : index
    %35 = vector.load %arg6[%c1, %c0_14, %c0_15, %c0_16] : memref<4x8x16x16xf32, #tpu.memory_space<vmem>>, vector<1x8x16x16xf32>
    %36 = vector.shape_cast %35 : vector<1x8x16x16xf32> to vector<8x16x16xf32>
    %37 = arith.addf %34, %36 : vector<8x16x16xf32>
    %cst_17 = arith.constant dense<0xFF800000> : vector<8x16xf32>
    %38 = vector.multi_reduction <maximumf>, %37, %cst_17 [2] : vector<8x16x16xf32> to vector<8x16xf32>
    %39 = vector.shape_cast %38 : vector<8x16xf32> to vector<8x16x1xf32>
    %40 = vector.broadcast %39 : vector<8x16x1xf32> to vector<8x16x16xf32>
    %41 = arith.subf %37, %40 : vector<8x16x16xf32>
    %42 = math.exp %41 : vector<8x16x16xf32>
    %cst_18 = arith.constant dense<0.000000e+00> : vector<8x16xf32>
    %43 = vector.multi_reduction <add>, %42, %cst_18 [2] : vector<8x16x16xf32> to vector<8x16xf32>
    %44 = vector.shape_cast %43 : vector<8x16xf32> to vector<8x16x1xf32>
    %45 = tpu.reciprocal %44 {approx = true} : vector<8x16x1xf32> -> vector<8x16x1xf32>
    %46 = vector.broadcast %45 : vector<8x16x1xf32> to vector<8x16x16xf32>
    %47 = arith.mulf %42, %46 : vector<8x16x16xf32>
    "tpu.trace_start"() <{level = 10 : i32, message = "bnm,bmd->bnd"}> : () -> ()
    %cst_19 = arith.constant dense<0.000000e+00> : vector<8x16x8xf32>
    %48 = tpu.matmul %47, %33, %cst_19 {dimension_numbers = #tpu.dot_dimension_numbers<[2], [1], [1], [2], [0, 0, 0, 1, 1, 2], [0], [0]>} : vector<8x16x16xf32>, vector<8x16x8xf32>, vector<8x16x8xf32> -> vector<8x16x8xf32>
    "tpu.trace_stop"() : () -> ()
    %49 = vector.shape_cast %48 : vector<8x16x8xf32> to vector<128x8xf32>
    %50 = vector.extract_strided_slice %5 {offsets = [0, 16], sizes = [128, 8], strides = [1, 1]} : vector<128x96xf32> to vector<128x8xf32>
    %51 = vector.shape_cast %50 : vector<128x8xf32> to vector<8x16x8xf32>
    %52 = vector.extract_strided_slice %5 {offsets = [0, 48], sizes = [128, 8], strides = [1, 1]} : vector<128x96xf32> to vector<128x8xf32>
    %53 = vector.shape_cast %52 : vector<128x8xf32> to vector<8x16x8xf32>
    %54 = vector.extract_strided_slice %5 {offsets = [0, 80], sizes = [128, 8], strides = [1, 1]} : vector<128x96xf32> to vector<128x8xf32>
    %55 = vector.shape_cast %54 : vector<128x8xf32> to vector<8x16x8xf32>
    "tpu.trace_start"() <{level = 10 : i32, message = "bnd,bmd->bnm"}> : () -> ()
    %cst_20 = arith.constant dense<0.000000e+00> : vector<8x16x16xf32>
    %56 = tpu.matmul %51, %53, %cst_20 {dimension_numbers = #tpu.dot_dimension_numbers<[2], [2], [1], [1], [0, 0, 0, 1, 1, 1], [0], [0]>} : vector<8x16x8xf32>, vector<8x16x8xf32>, vector<8x16x16xf32> -> vector<8x16x16xf32>
    "tpu.trace_stop"() : () -> ()
    %c2 = arith.constant 2 : index
    %c0_21 = arith.constant 0 : index
    %c0_22 = arith.constant 0 : index
    %c0_23 = arith.constant 0 : index
    %57 = vector.load %arg6[%c2, %c0_21, %c0_22, %c0_23] : memref<4x8x16x16xf32, #tpu.memory_space<vmem>>, vector<1x8x16x16xf32>
    %58 = vector.shape_cast %57 : vector<1x8x16x16xf32> to vector<8x16x16xf32>
    %59 = arith.addf %56, %58 : vector<8x16x16xf32>
    %cst_24 = arith.constant dense<0xFF800000> : vector<8x16xf32>
    %60 = vector.multi_reduction <maximumf>, %59, %cst_24 [2] : vector<8x16x16xf32> to vector<8x16xf32>
    %61 = vector.shape_cast %60 : vector<8x16xf32> to vector<8x16x1xf32>
    %62 = vector.broadcast %61 : vector<8x16x1xf32> to vector<8x16x16xf32>
    %63 = arith.subf %59, %62 : vector<8x16x16xf32>
    %64 = math.exp %63 : vector<8x16x16xf32>
    %cst_25 = arith.constant dense<0.000000e+00> : vector<8x16xf32>
    %65 = vector.multi_reduction <add>, %64, %cst_25 [2] : vector<8x16x16xf32> to vector<8x16xf32>
    %66 = vector.shape_cast %65 : vector<8x16xf32> to vector<8x16x1xf32>
    %67 = tpu.reciprocal %66 {approx = true} : vector<8x16x1xf32> -> vector<8x16x1xf32>
    %68 = vector.broadcast %67 : vector<8x16x1xf32> to vector<8x16x16xf32>
    %69 = arith.mulf %64, %68 : vector<8x16x16xf32>
    "tpu.trace_start"() <{level = 10 : i32, message = "bnm,bmd->bnd"}> : () -> ()
    %cst_26 = arith.constant dense<0.000000e+00> : vector<8x16x8xf32>
    %70 = tpu.matmul %69, %55, %cst_26 {dimension_numbers = #tpu.dot_dimension_numbers<[2], [1], [1], [2], [0, 0, 0, 1, 1, 2], [0], [0]>} : vector<8x16x16xf32>, vector<8x16x8xf32>, vector<8x16x8xf32> -> vector<8x16x8xf32>
    "tpu.trace_stop"() : () -> ()
    %71 = vector.shape_cast %70 : vector<8x16x8xf32> to vector<128x8xf32>
    %72 = vector.extract_strided_slice %5 {offsets = [0, 24], sizes = [128, 8], strides = [1, 1]} : vector<128x96xf32> to vector<128x8xf32>
    %73 = vector.shape_cast %72 : vector<128x8xf32> to vector<8x16x8xf32>
    %74 = vector.extract_strided_slice %5 {offsets = [0, 56], sizes = [128, 8], strides = [1, 1]} : vector<128x96xf32> to vector<128x8xf32>
    %75 = vector.shape_cast %74 : vector<128x8xf32> to vector<8x16x8xf32>
    %76 = vector.extract_strided_slice %5 {offsets = [0, 88], sizes = [128, 8], strides = [1, 1]} : vector<128x96xf32> to vector<128x8xf32>
    %77 = vector.shape_cast %76 : vector<128x8xf32> to vector<8x16x8xf32>
    "tpu.trace_start"() <{level = 10 : i32, message = "bnd,bmd->bnm"}> : () -> ()
    %cst_27 = arith.constant dense<0.000000e+00> : vector<8x16x16xf32>
    %78 = tpu.matmul %73, %75, %cst_27 {dimension_numbers = #tpu.dot_dimension_numbers<[2], [2], [1], [1], [0, 0, 0, 1, 1, 1], [0], [0]>} : vector<8x16x8xf32>, vector<8x16x8xf32>, vector<8x16x16xf32> -> vector<8x16x16xf32>
    "tpu.trace_stop"() : () -> ()
    %c3 = arith.constant 3 : index
    %c0_28 = arith.constant 0 : index
    %c0_29 = arith.constant 0 : index
    %c0_30 = arith.constant 0 : index
    %79 = vector.load %arg6[%c3, %c0_28, %c0_29, %c0_30] : memref<4x8x16x16xf32, #tpu.memory_space<vmem>>, vector<1x8x16x16xf32>
    %80 = vector.shape_cast %79 : vector<1x8x16x16xf32> to vector<8x16x16xf32>
    %81 = arith.addf %78, %80 : vector<8x16x16xf32>
    %cst_31 = arith.constant dense<0xFF800000> : vector<8x16xf32>
    %82 = vector.multi_reduction <maximumf>, %81, %cst_31 [2] : vector<8x16x16xf32> to vector<8x16xf32>
    %83 = vector.shape_cast %82 : vector<8x16xf32> to vector<8x16x1xf32>
    %84 = vector.broadcast %83 : vector<8x16x1xf32> to vector<8x16x16xf32>
    %85 = arith.subf %81, %84 : vector<8x16x16xf32>
    %86 = math.exp %85 : vector<8x16x16xf32>
    %cst_32 = arith.constant dense<0.000000e+00> : vector<8x16xf32>
    %87 = vector.multi_reduction <add>, %86, %cst_32 [2] : vector<8x16x16xf32> to vector<8x16xf32>
    %88 = vector.shape_cast %87 : vector<8x16xf32> to vector<8x16x1xf32>
    %89 = tpu.reciprocal %88 {approx = true} : vector<8x16x1xf32> -> vector<8x16x1xf32>
    %90 = vector.broadcast %89 : vector<8x16x1xf32> to vector<8x16x16xf32>
    %91 = arith.mulf %86, %90 : vector<8x16x16xf32>
    "tpu.trace_start"() <{level = 10 : i32, message = "bnm,bmd->bnd"}> : () -> ()
    %cst_33 = arith.constant dense<0.000000e+00> : vector<8x16x8xf32>
    %92 = tpu.matmul %91, %77, %cst_33 {dimension_numbers = #tpu.dot_dimension_numbers<[2], [1], [1], [2], [0, 0, 0, 1, 1, 2], [0], [0]>} : vector<8x16x16xf32>, vector<8x16x8xf32>, vector<8x16x8xf32> -> vector<8x16x8xf32>
    "tpu.trace_stop"() : () -> ()
    %93 = vector.shape_cast %92 : vector<8x16x8xf32> to vector<128x8xf32>
    %94 = tpu.concatenate %27, %49, %71, %93 in 1 : vector<128x8xf32>, vector<128x8xf32>, vector<128x8xf32>, vector<128x8xf32> -> vector<128x32xf32>
    %c0_34 = arith.constant 0 : index
    %c0_35 = arith.constant 0 : index
    %95 = vector.load %arg4[%c0_34, %c0_35] : memref<32x32xf32, #tpu.memory_space<vmem>>, vector<32x32xf32>
    %cst_36 = arith.constant dense<0.000000e+00> : vector<128x32xf32>
    %96 = tpu.matmul %94, %95, %cst_36 {dimension_numbers = #tpu.dot_dimension_numbers<[1], [0], [0], [1], [0, 0, 1, 1], [], []>} : vector<128x32xf32>, vector<32x32xf32>, vector<128x32xf32> -> vector<128x32xf32>
    %c0_37 = arith.constant 0 : index
    %c0_38 = arith.constant 0 : index
    %97 = vector.load %arg5[%c0_37, %c0_38] : memref<1x32xf32, #tpu.memory_space<vmem>>, vector<1x32xf32>
    %98 = vector.broadcast %97 : vector<1x32xf32> to vector<128x32xf32>
    %99 = arith.addf %96, %98 : vector<128x32xf32>
    %c0_39 = arith.constant 0 : index
    %c0_40 = arith.constant 0 : index
    %100 = vector.load %arg7[%c0_39, %c0_40] : memref<128x32xf32, #tpu.memory_space<vmem>>, vector<128x32xf32>
    tpu.vector_store %arg7[%c0_39, %c0_40], %99 {strides = array<i32>} : memref<128x32xf32, #tpu.memory_space<vmem>>, vector<128x32xf32>,
    return
  }
  func.func @transform_0(%arg0: i32) -> (i32, i32) {
    %c0_i32 = arith.constant 0 : i32
    %c0_i32_0 = arith.constant 0 : i32
    return %arg0, %c0_i32 : i32, i32
  }
  func.func @transform_1(%arg0: i32) -> (i32, i32) {
    %c0_i32 = arith.constant 0 : i32
    %c0_i32_0 = arith.constant 0 : i32
    %c0_i32_1 = arith.constant 0 : i32
    return %c0_i32, %c0_i32_0 : i32, i32
  }
  func.func @transform_2(%arg0: i32) -> (i32, i32) {
    %c0_i32 = arith.constant 0 : i32
    %c0_i32_0 = arith.constant 0 : i32
    %c0_i32_1 = arith.constant 0 : i32
    return %c0_i32, %c0_i32_0 : i32, i32
  }
  func.func @transform_3(%arg0: i32) -> (i32, i32) {
    %c0_i32 = arith.constant 0 : i32
    %c0_i32_0 = arith.constant 0 : i32
    %c0_i32_1 = arith.constant 0 : i32
    return %c0_i32, %c0_i32_0 : i32, i32
  }
  func.func @transform_4(%arg0: i32) -> (i32, i32) {
    %c0_i32 = arith.constant 0 : i32
    %c0_i32_0 = arith.constant 0 : i32
    %c0_i32_1 = arith.constant 0 : i32
    return %c0_i32, %c0_i32_0 : i32, i32
  }
  func.func @transform_5(%arg0: i32) -> (i32, i32, i32, i32) {
    %c0_i32 = arith.constant 0 : i32
    %c0_i32_0 = arith.constant 0 : i32
    %c0_i32_1 = arith.constant 0 : i32
    %c0_i32_2 = arith.constant 0 : i32
    %c0_i32_3 = arith.constant 0 : i32
    return %c0_i32, %c0_i32_0, %c0_i32_1, %c0_i32_2 : i32, i32, i32, i32
  }
  func.func @transform_6(%arg0: i32) -> (i32, i32) {
    %c0_i32 = arith.constant 0 : i32
    %c0_i32_0 = arith.constant 0 : i32
    return %arg0, %c0_i32 : i32, i32
  }
}

</mosaic_0001>

<bundles_post_ra>
// kernel: tpu_custom_call.1
= control target key start
LH: loop header
LB: loop body
LE: loop exit
PB: predicated region body
PF: predicated region fallthrough
CT: control target
= control target key end

     0   :  { %11 = vsyncpa [#allocation3], 0  ;;  %s9563_s21 = smov 0   ;;  %s11402_s0 = inlined_call_operand.vmem [shape: f32[256,32], index: 0, kind: input, shape index: {}]   ;;  %s11403_s1 = inlined_call_operand.vmem [shape: f32[32,96], index: 1, kind: input, shape index: {}]   ;;  %s11404_s2 = inlined_call_operand.vmem [shape: f32[1,96], index: 2, kind: input, shape index: {}]   ;;  %s11405_s3 = inlined_call_operand.vmem [shape: f32[32,32], index: 3, kind: input, shape index: {}]   ;;  %s11406_s4 = inlined_call_operand.vmem [shape: f32[1,32], index: 4, kind: input, shape index: {}]   ;;  %s11407_s5 = inlined_call_operand.hbm [shape: f32[4,8,16,16], index: 5, kind: input, shape index: {}]   ;;  %s11408_s6 = inlined_call_operand.vmem [shape: f32[256,32], index: 6, kind: output, shape index: {}]  }
   0x1 LB: > { %s7473_s22 = sadd.s32 4294967295, %s9509_s21   ;;  %p7475_p0 = scmp.ge.s32.totalorder %s9509_s21, 1  ;;  %s9509_s21 = sphi %s9563_s21, %s17_s21  }
   0x2   : > { %p179_p1 = scmp.lt.s32.totalorder %s9509_s21, 3  ;;  %s9511_s23 = smov [#allocation2]  }
   0x3   : > { %s203_s24 = sshll.u32 %s9511_s23, 4  ;;  %p9577_p3 = scmp.eq.s32.totalorder %s7473_s22, 0  ;;  %s204_s24 = int_to_ptr.vmem [resolvable:$true] %s203_s24 }
   0x4   : > { %p9571_p2 = pnand %p7475_p0, %p179_p1  ;;  %s9471_s30 = scalar_lea.hbm %s11407_s5, 8192 }
   0x5   : > { %s11413_s26 = scalar_select %p9577_p3, 1, 0 }
   0x6   : > { %s11412_s25 = scalar_select %p9571_p2, 1, 0 }
   0x7   : > { %p8864_p4 = pneg %p9571_p2  ;;  %p9472_p6 = scmp.ne.s32.totalorder %s11407_s5, %s9471_s30 }
   0x8   : > { %p9478_p10 = scmp.lt.u32.totalorder %s9471_s30, %s11407_s5 }
   0x9   : > { %p9585_p5 = pnand %p9577_p3, %p8864_p4 }
   0xb   : > { %p9473_p7 = pneg %p9585_p5 }
   0xd   : > { %p9474_p8 = pnand %p9473_p7, %p9472_p6 }
   0xf   : > { %p9475_p9 = pneg %p9474_p8 }
  0x11   : > { %p9480_p11 = pnand %p9478_p10, %p9475_p9 }
  0x13   : > { %9483 = shalt.err (!%p9480_p11)
}
  0x14   : > { %s9484_s11 = scalar_lea.vmem %s204_s24, 8192  ;;  %p9492_p1 = scmp.lt.s32.totalorder %s204_s24, %s204_s24 }
  0x15   : > { %p9485_p12 = scmp.ne.s32.totalorder %s204_s24, %s9484_s11  ;;  %p9493_p4 = scmp.lt.s32.totalorder %s9484_s11, %s9484_s11 }
  0x17   : > { %p9487_p13 = pnand %p9485_p12, %p9473_p7  ;;  %p9494_p3 = por %p9493_p4, %p9492_p1 }
  0x19   : > { %p9488_p0 = pneg %p9487_p13 }
  0x1b   : > { %p9495_p2 = pnand %p9494_p3, %p9488_p0 }
  0x1d   : > { %9498 = shalt.err (!%p9495_p2)
}
  0x1e   : > { %s9512_s12 = smov 128   ;;  %s9513_s13 = smov 8  }
  0x1f   : > { %8867 = dma.hbm_to_vmem [thread:$0]  (!%p9585_p5), %s11407_s5, 8192, %s204_s24, [#allocation3], %s9512_s12, %s9512_s12, %s9513_s13  }
  0x20   : > { %p11415_p6 = scmp.ne.s32.totalorder %s11412_s25, 0 }
  0x22   : > { %228 = sbr.rel (%p11415_p6) target bundleno = 3571 (0xdf3), region = 44 }
  0x29   : > { %p11416_p8 = scmp.ne.s32.totalorder %s11413_s26, 0 }
  0x2b   : > { %9504 = dma.done.wait (%p11416_p8), [#allocation3], 8192  }
  0x2c   : > { %9506 = vsyncadd (%p11416_p8), [#allocation3], 4294959104  ;;  %s7480_s16 = sshll.u32 %s7473_s22, 4  ;;  %vm297_vm0 = vcmask 261120   ;;  %v286_v0 = vld [vmem:[%s11403_s1] sm:$0xff]  ;;  %v287_v1 = vld [vmem:[%s11403_s1 + $0x8] sm:$0xff] }
  0x2d   : > { %p259_p2 = scmp.lt.s32.totalorder %s7480_s16, 31  ;;  %v288_v2 = vld [vmem:[%s11403_s1 + $0x10] sm:$0xff]  ;;  %v8520_v3 = vpack.c.bf16 %v287_v1, %v286_v0  ;;  %v289_v4 = vld [vmem:[%s11403_s1 + $0x18] sm:$0xff]  ;;  %v7484_v22 = vld [vmem:[%s11404_s2] ss:$0 sm:$0xff]  ;;  %vm513_vm1 = vcmask 64512  }
  0x2e   : > { %v8524_v6 = vpack.c.bf16 %v289_v4, %v288_v2  ;;  %s9514_s8 = smov 96   ;;  %s9515_s9 = smov 64   ;;  %vm9764_vm2 = vmpackc.low %vm513_vm1, %vm513_vm1  ;;  %vm1220_vm3 = vcmask 130048   ;;  %vm7168_vm4 = vcmask 195584  }
  0x2f   : > { %s11474_s16 = smov (!%p259_p2, %s7480_s16), 31  ;;  %8521 = vmatprep.subr.bf16.mxu0 %v8520_v3  ;;  %8856 = vmatprep.subr.bf16.mxu1 %v8520_v3  ;;  %s9516_s10 = smov 88  }
  0x30   : > { %s7481_s17 = sshll.u32 %s11474_s16, 3  ;;  %8523 = vmatpush3.bf16.msra.mxu0 %v8520_v3  ;;  %8858 = vmatpush3.bf16.msra.mxu1 %v8520_v3  ;;  %s9517_s11 = smov 120  }
  0x31   : > { %s9621_s20 = scalar_lea.vmem %s11402_s0, %s7481_s17  ;;  %8525 = vmatprep.subr.bf16.mxu0 %v8524_v6  ;;  %8857 = vmatprep.subr.bf16.mxu1 %v8524_v6  ;;  %s9518_s12 = smov 56  }
  0x32   : > { %v270_v5 = vld [vmem:[%s9621_s20] sm:$0xff]  ;;  %v271_v8 = vld [vmem:[%s9621_s20 + $0x8] sm:$0xff]  ;;  %v272_v10 = vld [vmem:[%s9621_s20 + $0x10] sm:$0xff]  ;;  %s9519_s13 = smov 80   ;;  %s9520_s14 = smov 112  }
  0x33   : > { %8016 = vmatprep.mubr.msk.f32.mxu0 %vm297_vm0, %v270_v5  ;;  %v278_v7 = vld [vmem:[%s9621_s20 + $0x40] sm:$0xff]  ;;  %v279_v9 = vld [vmem:[%s9621_s20 + $0x48] sm:$0xff]  ;;  %v280_v11 = vld [vmem:[%s9621_s20 + $0x50] sm:$0xff]  ;;  %s9521_s15 = smov 48   ;;  %s9522_s18 = smov 72  }
  0x34   : > { %8028 = vmatprep.mubr.msk.f32.mxu1 %vm297_vm0, %v278_v7  ;;  %8527 = vmatpush3.bf16.msra.mxu0 %v8524_v6  ;;  %v273_v12 = vld [vmem:[%s9621_s20 + $0x18] sm:$0xff]  ;;  %v274_v14 = vld [vmem:[%s9621_s20 + $0x20] sm:$0xff]  ;;  %v275_v16 = vld [vmem:[%s9621_s20 + $0x28] sm:$0xff]  ;;  %s9523_s19 = smov 104   ;;  %s9525_s23 = smov 8  }
  0x35   : > { %8859 = vmatpush3.bf16.msra.mxu1 %v8524_v6  ;;  %v281_v13 = vld [vmem:[%s9621_s20 + $0x58] sm:$0xff]  ;;  %v282_v15 = vld [vmem:[%s9621_s20 + $0x60] sm:$0xff]  ;;  %v283_v17 = vld [vmem:[%s9621_s20 + $0x68] sm:$0xff]  ;;  %s9526_s24 = smov 16  }
  0x36   : > { %v276_v18 = vld [vmem:[%s9621_s20 + $0x30] sm:$0xff]  ;;  %v277_v20 = vld [vmem:[%s9621_s20 + $0x38] sm:$0xff] }
  0x37   : > { %8017 = vmatmul.mubr.msk.f32.vlgmr.msra.gmra.mrb[0].mxu0 %vm297_vm0, %v271_v8  ;;  %v284_v19 = vld [vmem:[%s9621_s20 + $0x70] sm:$0xff]  ;;  %v285_v21 = vld [vmem:[%s9621_s20 + $0x78] sm:$0xff]  ;;  %s9524_s20 = smov 40  }
  0x38   : > { %8029 = vmatmul.mubr.msk.f32.vlgmr.msra.gmra.mrb[0].mxu1 %vm297_vm0, %v279_v9  ;;  %8019 = vmatprep.mubr.msk.f32.mxu0 %vm297_vm0, %v272_v10 }
  0x39   : > { %8031 = vmatprep.mubr.msk.f32.mxu1 %vm297_vm0, %v280_v11 }
  0x3b   : > { %8020 = vmatmul.mubr.msk.f32.gmra.mrb[2].mxu0 %vm297_vm0, %v273_v12 }
  0x3c   : > { %8032 = vmatmul.mubr.msk.f32.gmra.mrb[2].mxu1 %vm297_vm0, %v281_v13  ;;  %8022 = vmatprep.mubr.msk.f32.mxu0 %vm297_vm0, %v274_v14 }
  0x3d   : > { %8034 = vmatprep.mubr.msk.f32.mxu1 %vm297_vm0, %v282_v15 }
  0x3f   : > { %8023 = vmatmul.mubr.msk.f32.gmra.mrb[4].mxu0 %vm297_vm0, %v275_v16 }
  0x40   : > { %8035 = vmatmul.mubr.msk.f32.gmra.mrb[4].mxu1 %vm297_vm0, %v283_v17  ;;  %8025 = vmatprep.mubr.msk.f32.mxu0 %vm297_vm0, %v276_v18 }
  0x41   : > { %8037 = vmatprep.mubr.msk.f32.mxu1 %vm297_vm0, %v284_v19 }
  0x43   : > { %8026 = vmatmul.mubr.msk.f32.gmra.mrb[6].mxu0 %vm297_vm0, %v277_v20 }
  0x44   : > { %8038 = vmatmul.mubr.msk.f32.gmra.mrb[6].mxu1 %vm297_vm0, %v285_v21 }
 0x10a   : > { %v8018_v23 = vpop.f32.mrb[0].mxu0 }
 0x10b   : > { %v8030_v24 = vpop.f32.mrb[0].mxu1  ;;  %v9670_v25 = vadd.f32 %v8018_v23, %v7484_v22  ;;  %v412_v26 = vpop.f32.mrb[1].mxu0 }
 0x10c   : > { %v452_v27 = vpop.f32.mrb[1].mxu1  ;;  %v9672_v28 = vadd.f32 %v7484_v22, %v412_v26  ;;  %v9690_v37 = vadd.f32 %v8030_v24, %v7484_v22 }
 0x10d   : > { %v9674_v29 = vadd.f32 %v7484_v22, %v452_v27 }
 0x10e   : > { %v8021_v30 = vpop.f32.mrb[2].mxu0  ;;  %8044 = vmatprep.mubr.msk.f32.mxu1 %vm513_vm1, %v9672_v28  ;;  %v9680_v31 = vpack.i.bf16 %v9670_v25, %v9672_v28 }
 0x10f   : > { %v8033_v32 = vpop.f32.mrb[2].mxu1  ;;  %8072 = vmatprep.mubr.msk.f32.mxu0 %vm513_vm1, %v9674_v29  ;;  %v9684_v33 = vadd.f32 %v8021_v30, %v7484_v22  ;;  %v422_v34 = vpop.f32.mrb[3].mxu0  ;;  %v9708_v47 = vpack.i.bf16 %v9690_v37, %v9674_v29 }
 0x110   : > { %v462_v35 = vpop.f32.mrb[3].mxu1  ;;  %v9686_v36 = vadd.f32 %v7484_v22, %v422_v34  ;;  %8896 = vrot.lane.b32.xlu0 %v9680_v31, %s9514_s8  ;;  %v9714_v51 = vadd.f32 %v8033_v32, %v7484_v22 }
 0x111   : > { %v9718_v55 = vadd.f32 %v7484_v22, %v462_v35 }
 0x112   : > { %v8024_v38 = vpop.f32.mrb[4].mxu0  ;;  %v9694_v39 = vpack.i.bf16 %v9684_v33, %v9686_v36 }
 0x113   : > { %v8036_v40 = vpop.f32.mrb[4].mxu1  ;;  %v9696_v41 = vadd.f32 %v8024_v38, %v7484_v22  ;;  %v432_v42 = vpop.f32.mrb[5].mxu0  ;;  %v9744_v61 = vpack.i.bf16 %v9714_v51, %v9718_v55 }
 0x114   : > { %v472_v43 = vpop.f32.mrb[5].mxu1  ;;  %v9698_v44 = vadd.f32 %v7484_v22, %v432_v42  ;;  %8901 = vrot.lane.b32.xlu0 %v9694_v39, %s9514_s8  ;;  %v9702_v45 = vadd.f32 %v8036_v40, %v7484_v22 }
 0x115   : > { %v9704_v46 = vadd.f32 %v7484_v22, %v472_v43 }
 0x116   : > { %v8027_v48 = vpop.f32.mrb[6].mxu0  ;;  %v9712_v49 = vpack.i.bf16 %v9696_v41, %v9698_v44 }
 0x117   : > { %v8039_v50 = vpop.f32.mrb[6].mxu1  ;;  %v9716_v52 = vadd.f32 %v8027_v48, %v7484_v22  ;;  %v442_v53 = vpop.f32.mrb[7].mxu0  ;;  %v9728_v57 = vpack.i.bf16 %v9702_v45, %v9704_v46 }
 0x118   : > { %v482_v54 = vpop.f32.mrb[7].mxu1  ;;  %v9720_v56 = vadd.f32 %v7484_v22, %v442_v53  ;;  %8906 = vrot.lane.b32.xlu1 %v9712_v49, %s9514_s8  ;;  %8916 = vrot.lane.b32.xlu0 %v9708_v47, %s9514_s8  ;;  %v9738_v59 = vadd.f32 %v8039_v50, %v7484_v22 }
 0x119   : > { %v9740_v60 = vadd.f32 %v7484_v22, %v482_v54 }
 0x11a   : > { %v9732_v58 = vpack.i.bf16 %v9716_v52, %v9720_v56 }
 0x11b   : > { %v9751_v62 = vpack.i.bf16 %v9738_v59, %v9740_v60 }
 0x11c   : > { %8911 = vrot.lane.b32.xlu1 %v9732_v58, %s9514_s8  ;;  %8926 = vrot.lane.b32.xlu0 %v9728_v57, %s9514_s8 }
 0x120   : > { %8921 = vrot.lane.b32.xlu1 %v9744_v61, %s9514_s8  ;;  %8936 = vrot.lane.b32.xlu0 %v9680_v31, %s9515_s9 }
 0x124   : > { %8931 = vrot.lane.b32.xlu1 %v9751_v62, %s9514_s8  ;;  %8946 = vrot.lane.b32.xlu0 %v9712_v49, %s9515_s9  ;;  %s9527_s8 = smov 24  }
 0x128   : > { %8941 = vrot.lane.b32.xlu1 %v9694_v39, %s9515_s9  ;;  %8951 = vrot.lane.b32.xlu0 %v9708_v47, %s9515_s9 }
 0x12c   : > { %8956 = vrot.lane.b32.xlu1 %v9744_v61, %s9515_s9  ;;  %8961 = vrot.lane.b32.xlu0 %v9728_v57, %s9515_s9 }
 0x130   : > { %8966 = vrot.lane.b32.xlu1 %v9732_v58, %s9515_s9 }
 0x134   : > { %8971 = vrot.lane.b32.xlu1 %v9751_v62, %s9515_s9 }
 0x182   : > { %v8897_v63 = vpop.permute.xlu0 %8896 }
 0x183   : > { %v8899_v0 = vunpack.i.h.bf16 %v8897_v63  ;;  %v8898_v1 = vunpack.i.l.bf16 %v8897_v63 }
 0x185   : > { %v8528_v3 = vpack.c.bf16 %v8899_v0, %v8898_v1 }
 0x186   : > { %v8902_v4 = vpop.permute.xlu0 %8901 }
 0x187   : > { %v8904_v5 = vunpack.i.h.bf16 %v8902_v4  ;;  %v8903_v6 = vunpack.i.l.bf16 %v8902_v4  ;;  %8530 = vmatprep.subr.msk.bf16.mxu1 %vm9764_vm2, %v8528_v3 }
 0x188   : > { %8533 = vmatpush3.bf16.xpose.msk.msra.mxu1 %vm9764_vm2, %v8528_v3 }
 0x189   : > { %v8534_v7 = vpack.c.bf16 %v8904_v5, %v8903_v6 }
 0x18a   : > { %v8907_v8 = vpop.permute.xlu1 %8906  ;;  %v8917_v9 = vpop.permute.xlu0 %8916 }
 0x18b   : > { %v8909_v10 = vunpack.i.h.bf16 %v8907_v8  ;;  %v8908_v11 = vunpack.i.l.bf16 %v8907_v8  ;;  %v8919_v12 = vunpack.i.h.bf16 %v8917_v9  ;;  %v8918_v13 = vunpack.i.l.bf16 %v8917_v9  ;;  %8536 = vmatprep.subr.msk.bf16.mxu1 %vm9764_vm2, %v8534_v7 }
 0x18d   : > { %v8540_v14 = vpack.c.bf16 %v8909_v10, %v8908_v11  ;;  %v8552_v15 = vpack.c.bf16 %v8919_v12, %v8918_v13  ;;  %v492_v10 = vld [vmem:[#allocation2 + $0x8] sm:$0xff] }
 0x18e   : > { %v8927_v16 = vpop.permute.xlu0 %8926  ;;  %v8912_v20 = vpop.permute.xlu1 %8911 }
 0x18f   : > { %v8929_v17 = vunpack.i.h.bf16 %v8927_v16  ;;  %v8928_v18 = vunpack.i.l.bf16 %v8927_v16  ;;  %8045 = vmatmul.mubr.msk.f32.vlgmr.msra.gmra.mrb[8].mxu1 %vm513_vm1, %v9670_v25  ;;  %8554 = vmatprep.subr.msk.bf16.mxu0 %vm9764_vm2, %v8552_v15  ;;  %v8914_v22 = vunpack.i.h.bf16 %v8912_v20  ;;  %v8913_v23 = vunpack.i.l.bf16 %v8912_v20  ;;  %v500_v16 = vld [vmem:[#allocation2 + $0x48] sm:$0xff] }
 0x190   : > { %8539 = vmatpush3.bf16.xpose.msk.msra.mxu1 %vm9764_vm2, %v8534_v7  ;;  %8051 = vmatprep.mubr.msk.f32.mxu1 %vm513_vm1, %v9686_v36 }
 0x191   : > { %v8564_v19 = vpack.c.bf16 %v8929_v17, %v8928_v18  ;;  %8557 = vmatpush3.bf16.xpose.msk.msra.mxu0 %vm9764_vm2, %v8552_v15  ;;  %8542 = vmatprep.subr.msk.bf16.mxu1 %vm9764_vm2, %v8540_v14  ;;  %v8546_v27 = vpack.c.bf16 %v8914_v22, %v8913_v23  ;;  %v494_v15 = vld [vmem:[#allocation2 + $0x18] sm:$0xff]  ;;  %v491_v18 = vld [vmem:[#allocation2] sm:$0xff] }
 0x192   : > { %v8937_v21 = vpop.permute.xlu0 %8936  ;;  %v8922_v30 = vpop.permute.xlu1 %8921 }
 0x193   : > { %8566 = vmatprep.subr.msk.bf16.mxu0 %vm9764_vm2, %v8564_v19  ;;  %v8939_v24 = vunpack.i.h.bf16 %v8937_v21  ;;  %v8938_v26 = vunpack.i.l.bf16 %v8937_v21  ;;  %v8924_v40 = vunpack.i.h.bf16 %v8922_v30  ;;  %v8923_v42 = vunpack.i.l.bf16 %v8922_v30  ;;  %v499_v30 = vld [vmem:[#allocation2 + $0x40] sm:$0xff] }
 0x195   : > { %v8576_v32 = vpack.c.bf16 %v8939_v24, %v8938_v26  ;;  %v8558_v50 = vpack.c.bf16 %v8924_v40, %v8923_v42  ;;  %v504_v40 = vld [vmem:[#allocation2 + $0x68] sm:$0xff] }
 0x196   : > { %v8947_v34 = vpop.permute.xlu0 %8946  ;;  %v8932_v43 = vpop.permute.xlu1 %8931 }
 0x197   : > { %8052 = vmatmul.mubr.msk.f32.vlgmr.msra.gmra.mrb[10].mxu1 %vm513_vm1, %v9684_v33  ;;  %v8949_v35 = vunpack.i.h.bf16 %v8947_v34  ;;  %v8948_v38 = vunpack.i.l.bf16 %v8947_v34  ;;  %v8934_v53 = vunpack.i.h.bf16 %v8932_v43  ;;  %v8933_v54 = vunpack.i.l.bf16 %v8932_v43 }
 0x198   : > { %8073 = vmatmul.mubr.msk.f32.vlgmr.msra.gmra.mrb[8].mxu0 %vm513_vm1, %v9690_v37  ;;  %8545 = vmatpush3.bf16.xpose.msk.msra.mxu1 %vm9764_vm2, %v8540_v14 }
 0x199   : > { %8058 = vmatprep.mubr.msk.f32.mxu1 %vm513_vm1, %v9698_v44  ;;  %8569 = vmatpush3.bf16.xpose.msk.msra.mxu0 %vm9764_vm2, %v8564_v19  ;;  %v9802_v48 = vpack.c.bf16 %v8949_v35, %v8948_v38  ;;  %v8570_v0 = vpack.c.bf16 %v8934_v53, %v8933_v54  ;;  %v503_v38 = vld [vmem:[#allocation2 + $0x60] sm:$0xff] }
 0x19a   : > { %8086 = vmatprep.mubr.msk.f32.mxu0 %vm513_vm1, %v9704_v46  ;;  %8577 = vmatprep.subr.bf16.mxu0 %v8576_v32  ;;  %v8942_v63 = vpop.permute.xlu1 %8941 }
 0x19b   : > { %8548 = vmatprep.subr.msk.bf16.mxu1 %vm9764_vm2, %v8546_v27  ;;  %v8944_v3 = vunpack.i.h.bf16 %v8942_v63  ;;  %v8943_v4 = vunpack.i.l.bf16 %v8942_v63 }
 0x19d   : > { %v8580_v6 = vpack.c.bf16 %v8944_v3, %v8943_v4  ;;  %v498_v4 = vld [vmem:[#allocation2 + $0x38] sm:$0xff] }
 0x19e   : > { %v9823_v1 = vpop.permute.xlu1 %8956 }
 0x19f   : > { %8059 = vmatmul.mubr.msk.f32.vlgmr.msra.gmra.mrb[12].mxu1 %vm513_vm1, %v9696_v41 }
 0x1a0   : > { %8087 = vmatmul.mubr.msk.f32.vlgmr.msra.gmra.mrb[10].mxu0 %vm513_vm1, %v9702_v45  ;;  %8551 = vmatpush3.bf16.xpose.msk.msra.mxu1 %vm9764_vm2, %v8546_v27 }
 0x1a1   : > { %8065 = vmatprep.mubr.msk.f32.mxu1 %vm513_vm1, %v9720_v56  ;;  %8579 = vmatpush3.bf16.msra.mxu0 %v8576_v32 }
 0x1a2   : > { %8560 = vmatprep.subr.msk.bf16.mxu1 %vm9764_vm2, %v8558_v50  ;;  %8585 = vmatprep.subr.bf16.mxu0 %v9802_v48  ;;  %v8967_v5 = vpop.permute.xlu1 %8966 }
 0x1a3   : > { %v8969_v7 = vunpack.i.h.bf16 %v8967_v5  ;;  %v8968_v8 = vunpack.i.l.bf16 %v8967_v5 }
 0x1a5   : > { %v9831_v9 = vpack.c.bf16 %v8969_v7, %v8968_v8  ;;  %v497_v8 = vld [vmem:[#allocation2 + $0x30] sm:$0xff] }
 0x1a7   : > { %8066 = vmatmul.mubr.msk.f32.vlgmr.msra.gmra.mrb[14].mxu1 %vm513_vm1, %v9716_v52 }
 0x1a8   : > { %8563 = vmatpush3.bf16.xpose.msk.msra.mxu1 %vm9764_vm2, %v8558_v50  ;;  %8079 = vmatprep.mubr.msk.f32.mxu1 %vm513_vm1, %v9718_v55 }
 0x1a9   : > { %8572 = vmatprep.subr.msk.bf16.mxu1 %vm9764_vm2, %v8570_v0 }
 0x1af   : > { %8080 = vmatmul.mubr.msk.f32.vlgmr.msra.gmra.mrb[16].mxu1 %vm513_vm1, %v9714_v51 }
 0x1b0   : > { %8575 = vmatpush3.bf16.xpose.msk.msra.mxu1 %vm9764_vm2, %v8570_v0  ;;  %8093 = vmatprep.mubr.msk.f32.mxu1 %vm513_vm1, %v9740_v60  ;;  %v493_v0 = vld [vmem:[#allocation2 + $0x10] sm:$0xff] }
 0x1b1   : > { %8581 = vmatprep.subr.bf16.mxu1 %v8580_v6 }
 0x1b7   : > { %8094 = vmatmul.mubr.msk.f32.vlgmr.msra.gmra.mrb[18].mxu1 %vm513_vm1, %v9738_v59 }
 0x1b8   : > { %8583 = vmatpush3.bf16.msra.mxu1 %v8580_v6 }
 0x1b9   : > { %8589 = vmatprep.subr.bf16.mxu1 %v9831_v9 }
 0x262   : > { %v8046_v11 = vpop.f32.mrb[8].mxu1 }
 0x263   : > { %v9836_v12 = vadd.f32 %v8046_v11, %v492_v10  ;;  %v588_v13 = vpop.f32.mrb[9].mxu1  ;;  %v496_v10 = vld [vmem:[#allocation2 + $0x28] sm:$0xff] }
 0x264   : > { %v9846_v26 = vadd.f32 %v588_v13, %v491_v18  ;;  %v495_v18 = vld [vmem:[#allocation2 + $0x20] sm:$0xff] }
 0x265   : > { %v1224_v14 = vsel %vm1220_vm3, %v9836_v12, -inf }
 0x266   : > { %1225 = vmax.xlane.f32.xlu1 %v1224_v14  ;;  %v1221_v35 = vsel %vm1220_vm3, %v9846_v26, -inf }
 0x26a   : > { %v8053_v17 = vpop.f32.mrb[10].mxu1 }
 0x26b   : > { %v9840_v19 = vadd.f32 %v8053_v17, %v494_v15  ;;  %v8074_v20 = vpop.f32.mrb[8].mxu0  ;;  %v677_v21 = vpop.f32.mrb[11].mxu1 }
 0x26c   : > { %v9842_v22 = vadd.f32 %v8074_v20, %v500_v16  ;;  %v944_v23 = vpop.f32.mrb[9].mxu0  ;;  %v9862_v5 = vadd.f32 %v677_v21, %v493_v0  ;;  %v501_v21 = vld [vmem:[#allocation2 + $0x50] sm:$0xff] }
 0x26d   : > { %v1230_v24 = vsel %vm1220_vm3, %v9840_v19, -inf  ;;  %v9850_v32 = vadd.f32 %v944_v23, %v499_v30  ;;  %v502_v30 = vld [vmem:[#allocation2 + $0x58] sm:$0xff] }
 0x26e   : > { %v1248_v27 = vsel %vm1220_vm3, %v9842_v22, -inf  ;;  %1231 = vmax.xlane.f32.xlu1 %v1230_v24  ;;  %v1227_v17 = vsel %vm1220_vm3, %v9862_v5, -inf }
 0x26f   : > { %1249 = vmax.xlane.f32.xlu0 %v1248_v27  ;;  %v1245_v63 = vsel %vm1220_vm3, %v9850_v32, -inf }
 0x272   : > { %v8060_v34 = vpop.f32.mrb[12].mxu1 }
 0x273   : > { %v8088_v42 = vpop.f32.mrb[10].mxu0  ;;  %1222 = vmax.xlane.f32.xlu0 %v1221_v35  ;;  %v766_v43 = vpop.f32.mrb[13].mxu1  ;;  %v9872_v16 = vadd.f32 %v8060_v34, %v496_v10 }
 0x274   : > { %v1122_v50 = vpop.f32.mrb[11].mxu0  ;;  %v9856_v54 = vadd.f32 %v8088_v42, %v504_v40  ;;  %v9878_v23 = vadd.f32 %v766_v43, %v495_v18  ;;  %v506_v43 = vld [vmem:[#allocation2 + $0x78] sm:$0xff]  ;;  %v9904_v10 = vpop.permute.xlu1 %8971 }
 0x275   : > { %v9854_v53 = vadd.f32 %v1122_v50, %v503_v38  ;;  %v1236_v27 = vsel %vm1220_vm3, %v9872_v16, -inf }
 0x276   : > { %v1260_v7 = vsel %vm1220_vm3, %v9856_v54, -inf  ;;  %v1233_v40 = vsel %vm1220_vm3, %v9878_v23, -inf }
 0x277   : > { %1246 = vmax.xlane.f32.xlu0 %v1245_v63  ;;  %v1257_v3 = vsel %vm1220_vm3, %v9854_v53, -inf }
 0x278   : > { %1258 = vmax.xlane.f32.xlu1 %v1257_v3 }
 0x27a   : > { %v8067_v6 = vpop.f32.mrb[14].mxu1 }
 0x27b   : > { %v9866_v11 = vadd.f32 %v8067_v6, %v498_v4  ;;  %1261 = vmax.xlane.f32.xlu0 %v1260_v7  ;;  %v855_v13 = vpop.f32.mrb[15].mxu1  ;;  %v505_v6 = vld [vmem:[#allocation2 + $0x70] sm:$0xff] }
 0x27c   : > { %v9868_v14 = vadd.f32 %v855_v13, %v497_v8  ;;  %v9906_v13 = vpop.permute.xlu0 %8951 }
 0x27d   : > { %v1242_v15 = vsel %vm1220_vm3, %v9866_v11, -inf }
 0x27e   : > { %1243 = vmax.xlane.f32.xlu1 %v1242_v15  ;;  %v1239_v20 = vsel %vm1220_vm3, %v9868_v14, -inf }
 0x27f   : > { %1228 = vmax.xlane.f32.xlu0 %v1227_v17 }
 0x282   : > { %v8081_v24 = vpop.f32.mrb[16].mxu1  ;;  %1240 = vmax.xlane.f32.xlu1 %v1239_v20  ;;  %v9909_v20 = vpop.permute.xlu0 %8961 }
 0x283   : > { %1237 = vmax.xlane.f32.xlu0 %v1236_v27  ;;  %v1033_v34 = vpop.f32.mrb[17].mxu1  ;;  %v9884_v38 = vadd.f32 %v8081_v24, %v502_v30 }
 0x284   : > { %v9882_v35 = vadd.f32 %v1033_v34, %v501_v21 }
 0x285   : > { %v1254_v63 = vsel %vm1220_vm3, %v9884_v38, -inf }
 0x286   : > { %v1251_v42 = vsel %vm1220_vm3, %v9882_v35, -inf }
 0x287   : > { %1234 = vmax.xlane.f32.xlu0 %v1233_v40  ;;  %1252 = vmax.xlane.f32.xlu1 %v1251_v42 }
 0x28a   : > { %v8095_v50 = vpop.f32.mrb[18].mxu1 }
 0x28b   : > { %v9892_v0 = vadd.f32 %v8095_v50, %v506_v43  ;;  %1255 = vmax.xlane.f32.xlu0 %v1254_v63  ;;  %v1211_v3 = vpop.f32.mrb[19].mxu1 }
 0x28c   : > { %v9900_v7 = vadd.f32 %v1211_v3, %v505_v6 }
 0x28d   : > { %v1266_v4 = vsel %vm1220_vm3, %v9892_v0, -inf }
 0x28e   : > { %v1263_v8 = vsel %vm1220_vm3, %v9900_v7, -inf }
 0x28f   : > { %1267 = vmax.xlane.f32.xlu0 %v1266_v4 }
 0x298   : > { %8981 = vrot.lane.b32.xlu1 %v9694_v39, %s9516_s10 }
 0x2a5   : > { %8976 = vrot.lane.b32.xlu0 %v9680_v31, %s9516_s10 }
 0x2bc   : > { %1264 = vmax.xlane.f32.xlu1 %v1263_v8 }
 0x2f3   : > { %v1226_v15 = vpop.xlane.xlu1 %1225 }
 0x2f4   : > { %v1270_v17 = vsub.f32 %v9836_v12, %v1226_v15 }
 0x2f6   : > { %v1287_v18 = vmul.f32 1.442695, %v1270_v17 }
 0x2f8   : > { %9215 = vpow2.f32 %v1287_v18 }
 0x2fb   : > { %v1232_v24 = vpop.xlane.xlu1 %1231 }
 0x2fc   : > { %v1250_v21 = vpop.xlane.xlu0 %1249  ;;  %v1272_v34 = vsub.f32 %v9840_v19, %v1232_v24 }
 0x2fd   : > { %v1278_v27 = vsub.f32 %v9842_v22, %v1250_v21 }
 0x2fe   : > { %v1291_v50 = vmul.f32 1.442695, %v1272_v34 }
 0x2ff   : > { %v1303_v30 = vmul.f32 1.442695, %v1278_v27 }
 0x300   : > { %v1223_v40 = vpop.xlane.xlu0 %1222 }
 0x301   : > { %9217 = vpow2.f32 %v1303_v30  ;;  %v1269_v42 = vsub.f32 %v9846_v26, %v1223_v40 }
 0x302   : > { %v9914_v43 = vpop.eup %9215 }
 0x303   : > { %v1285_v63 = vmul.f32 1.442695, %v1269_v42  ;;  %v1320_v12 = vsel %vm1220_vm3, %v9914_v43, 0.0 }
 0x304   : > { %v1247_v3 = vpop.xlane.xlu0 %1246  ;;  %1321 = vadd.xlane.f32.xlu0 %v1320_v12 }
 0x305   : > { %9219 = vpow2.f32 %v1285_v63  ;;  %v1277_v4 = vsub.f32 %v9850_v32, %v1247_v3  ;;  %v1259_v6 = vpop.xlane.xlu1 %1258 }
 0x306   : > { %9221 = vpow2.f32 %v1291_v50  ;;  %v1281_v15 = vsub.f32 %v9854_v53, %v1259_v6 }
 0x307   : > { %v1301_v22 = vmul.f32 1.442695, %v1277_v4 }
 0x308   : > { %v1262_v19 = vpop.xlane.xlu0 %1261  ;;  %v1309_v27 = vmul.f32 1.442695, %v1281_v15 }
 0x309   : > { %9223 = vpow2.f32 %v1301_v22  ;;  %v1282_v8 = vsub.f32 %v9856_v54, %v1262_v19 }
 0x30b   : > { %v9920_v26 = vpop.eup %9217  ;;  %v1311_v17 = vmul.f32 1.442695, %v1282_v8 }
 0x30c   : > { %v1229_v18 = vpop.xlane.xlu0 %1228  ;;  %v1344_v21 = vsel %vm1220_vm3, %v9920_v26, 0.0 }
 0x30d   : > { %9225 = vpow2.f32 %v1311_v17  ;;  %v1271_v24 = vsub.f32 %v9862_v5, %v1229_v18  ;;  %1345 = vadd.xlane.f32.xlu0 %v1344_v21 }
 0x30f   : > { %v9926_v32 = vpop.eup %9219  ;;  %v1289_v30 = vmul.f32 1.442695, %v1271_v24  ;;  %v1244_v24 = vpop.xlane.xlu1 %1243 }
 0x310   : > { %v1238_v34 = vpop.xlane.xlu0 %1237  ;;  %v1317_v54 = vsel %vm1220_vm3, %v9926_v32, 0.0  ;;  %v9930_v40 = vpop.eup %9221 }
 0x311   : > { %9227 = vpow2.f32 %v1289_v30  ;;  %v1274_v53 = vsub.f32 %v9872_v16, %v1238_v34  ;;  %1318 = vadd.xlane.f32.xlu1 %v1317_v54  ;;  %v1326_v63 = vsel %vm1220_vm3, %v9930_v40, 0.0 }
 0x312   : > { %9229 = vpow2.f32 %v1309_v27  ;;  %v1276_v27 = vsub.f32 %v9866_v11, %v1244_v24 }
 0x313   : > { %v9933_v42 = vpop.eup %9223  ;;  %v1295_v50 = vmul.f32 1.442695, %v1274_v53  ;;  %v1241_v30 = vpop.xlane.xlu1 %1240 }
 0x314   : > { %v1235_v5 = vpop.xlane.xlu0 %1234  ;;  %v1341_v12 = vsel %vm1220_vm3, %v9933_v42, 0.0  ;;  %v1275_v54 = vsub.f32 %v9868_v14, %v1241_v30  ;;  %v1299_v53 = vmul.f32 1.442695, %v1276_v27 }
 0x315   : > { %9231 = vpow2.f32 %v1295_v50  ;;  %v1273_v3 = vsub.f32 %v9878_v23, %v1235_v5  ;;  %1327 = vadd.xlane.f32.xlu1 %v1326_v63  ;;  %1342 = vadd.xlane.f32.xlu0 %v1341_v12 }
 0x316   : > { %v1297_v5 = vmul.f32 1.442695, %v1275_v54 }
 0x317   : > { %v9940_v4 = vpop.eup %9225  ;;  %v1293_v16 = vmul.f32 1.442695, %v1273_v3 }
 0x318   : > { %v1356_v22 = vsel %vm1220_vm3, %v9940_v4, 0.0  ;;  %v1256_v34 = vpop.xlane.xlu0 %1255 }
 0x319   : > { %9233 = vpow2.f32 %v1293_v16  ;;  %1357 = vadd.xlane.f32.xlu0 %v1356_v22  ;;  %v1280_v50 = vsub.f32 %v9884_v38, %v1256_v34  ;;  %v1253_v22 = vpop.xlane.xlu1 %1252 }
 0x31a   : > { %9235 = vpow2.f32 %v1299_v53 }
 0x31b   : > { %v9944_v6 = vpop.eup %9227  ;;  %v1307_v63 = vmul.f32 1.442695, %v1280_v50  ;;  %9237 = vpow2.f32 %v1297_v5 }
 0x31c   : > { %v1323_v19 = vsel %vm1220_vm3, %v9944_v6, 0.0  ;;  %v9948_v8 = vpop.eup %9229 }
 0x31d   : > { %1324 = vadd.xlane.f32.xlu1 %v1323_v19  ;;  %v1353_v23 = vsel %vm1220_vm3, %v9948_v8, 0.0  ;;  %9239 = vpow2.f32 %v1307_v63  ;;  %v1279_v19 = vsub.f32 %v9882_v35, %v1253_v22 }
 0x31f   : > { %v9950_v15 = vpop.eup %9231 }
 0x320   : > { %v1332_v17 = vsel %vm1220_vm3, %v9950_v15, 0.0 }
 0x321   : > { %1354 = vadd.xlane.f32.xlu1 %v1353_v23  ;;  %1333 = vadd.xlane.f32.xlu0 %v1332_v17  ;;  %v9996_v23 = vpop.permute.xlu1 %8981  ;;  %v1268_v17 = vpop.xlane.xlu0 %1267 }
 0x322   : > { %v1284_v24 = vsub.f32 %v9892_v0, %v1268_v17 }
 0x323   : > { %v9956_v18 = vpop.eup %9233 }
 0x324   : > { %v1329_v21 = vsel %vm1220_vm3, %v9956_v18, 0.0  ;;  %v9967_v12 = vpop.eup %9235  ;;  %v1315_v30 = vmul.f32 1.442695, %v1284_v24  ;;  %v8954_v24 = vunpack.i.h.bf16 %v9906_v13 }
 0x325   : > { %1330 = vadd.xlane.f32.xlu0 %v1329_v21  ;;  %v9969_v3 = vpop.eup %9237  ;;  %v1338_v16 = vsel %vm1220_vm3, %v9967_v12, 0.0  ;;  %v1305_v21 = vmul.f32 1.442695, %v1279_v19 }
 0x326   : > { %v1335_v14 = vsel %vm1220_vm3, %v9969_v3, 0.0 }
 0x327   : > { %v9973_v11 = vpop.eup %9239  ;;  %9241 = vpow2.f32 %v1305_v21 }
 0x328   : > { %v1350_v38 = vsel %vm1220_vm3, %v9973_v11, 0.0  ;;  %9243 = vpow2.f32 %v1315_v30 }
 0x331   : > { %v10008_v54 = vpop.eup %9241 }
 0x332   : > { %2110 = vrot.lane.b32.xlu1 %v9672_v28, %s9517_s11  ;;  %v1347_v0 = vsel %vm1220_vm3, %v10008_v54, 0.0  ;;  %v10014_v53 = vpop.eup %9243 }
 0x333   : > { %v1362_v50 = vsel %vm1220_vm3, %v10014_v53, 0.0 }
 0x33b   : > { %8986 = vrot.lane.b32.xlu0 %v9712_v49, %s9516_s10 }
 0x349   : > { %v1265_v27 = vpop.xlane.xlu1 %1264 }
 0x34a   : > { %v1283_v34 = vsub.f32 %v9900_v7, %v1265_v27  ;;  %v10016_v7 = vpop.permute.xlu0 %8976  ;;  %v8953_v27 = vunpack.i.l.bf16 %v9906_v13 }
 0x34c   : > { %v1313_v35 = vmul.f32 1.442695, %v1283_v34 }
 0x34e   : > { %9245 = vpow2.f32 %v1313_v35 }
 0x356   : > { %1339 = vadd.xlane.f32.xlu1 %v1338_v16 }
 0x358   : > { %v10022_v5 = vpop.eup %9245 }
 0x35a   : > { %1336 = vadd.xlane.f32.xlu1 %v1335_v14  ;;  %1351 = vadd.xlane.f32.xlu0 %v1350_v38  ;;  %v1359_v14 = vsel %vm1220_vm3, %v10022_v5, 0.0 }
 0x36b   : > { %8991 = vrot.lane.b32.xlu1 %v9732_v58, %s9516_s10 }
 0x36f   : > { %2203 = vrot.lane.b32.xlu1 %v9684_v33, %s9517_s11 }
 0x370   : > { %2112 = vrot.lane.b32.xlu0 %v9670_v25, %s9517_s11 }
 0x373   : > { %2292 = vrot.lane.b32.xlu1 %v9698_v44, %s9517_s11 }
 0x374   : > { %2201 = vrot.lane.b32.xlu0 %v9686_v36, %s9517_s11 }
 0x378   : > { %8996 = vrot.lane.b32.xlu0 %v9708_v47, %s9516_s10 }
 0x37c   : > { %2294 = vrot.lane.b32.xlu0 %v9696_v41, %s9517_s11 }
 0x380   : > { %2383 = vrot.lane.b32.xlu0 %v9720_v56, %s9517_s11 }
 0x384   : > { %2474 = vrot.lane.b32.xlu0 %v9674_v29, %s9517_s11 }
 0x388   : > { %2476 = vrot.lane.b32.xlu0 %v9690_v37, %s9517_s11 }
 0x38c   : > { %9011 = vrot.lane.b32.xlu0 %v9751_v62, %s9516_s10 }
 0x390   : > { %2656 = vrot.lane.b32.xlu0 %v9704_v46, %s9517_s11 }
 0x391   : > { %v1322_v63 = vpop.xlane.xlu0 %1321 }
 0x392   : > { %9247 = vrcp.f32 %v1322_v63 }
 0x394   : > { %2747 = vrot.lane.b32.xlu0 %v9740_v60, %s9517_s11 }
 0x397   : > { %1348 = vadd.xlane.f32.xlu1 %v1347_v0 }
 0x398   : > { %9016 = vrot.lane.b32.xlu0 %v9680_v31, %s9518_s12 }
 0x39a   : > { %v1346_v38 = vpop.xlane.xlu0 %1345 }
 0x39b   : > { %1363 = vadd.xlane.f32.xlu1 %v1362_v50  ;;  %v8592_v50 = vpack.c.bf16 %v8954_v24, %v8953_v27 }
 0x39c   : > { %9026 = vrot.lane.b32.xlu0 %v9712_v49, %s9518_s12  ;;  %v9248_v17 = vpop.eup %9247 }
 0x39d   : > { %v1382_v0 = vmul.f32 %v9248_v17, %v9914_v43 }
 0x39e   : > { %v1319_v16 = vpop.xlane.xlu1 %1318 }
 0x39f   : > { %9249 = vrcp.f32 %v1319_v16  ;;  %1360 = vadd.xlane.f32.xlu1 %v1359_v14  ;;  %v8959_v14 = vunpack.i.h.bf16 %v9823_v1 }
 0x3a0   : > { %9036 = vrot.lane.b32.xlu0 %v9708_v47, %s9518_s12 }
 0x3a2   : > { %v1343_v22 = vpop.xlane.xlu0 %1342  ;;  %v1328_v19 = vpop.xlane.xlu1 %1327 }
 0x3a3   : > { %9251 = vrcp.f32 %v1328_v19  ;;  %v8958_v19 = vunpack.i.l.bf16 %v9823_v1 }
 0x3a6   : > { %v1358_v30 = vpop.xlane.xlu0 %1357 }
 0x3a9   : > { %v9250_v21 = vpop.eup %9249 }
 0x3aa   : > { %v1325_v34 = vpop.xlane.xlu1 %1324  ;;  %v1381_v35 = vmul.f32 %v9250_v21, %v9926_v32 }
 0x3ab   : > { %9253 = vrcp.f32 %v1325_v34 }
 0x3ac   : > { %8100 = vmatprep.mubr.msk.f32.mxu0 %vm1220_vm3, %v1381_v35  ;;  %9255 = vrcp.f32 %v1343_v22  ;;  %v10049_v22 = vpack.c.bf16 %v8959_v14, %v8958_v19  ;;  %v8979_v35 = vunpack.i.h.bf16 %v10016_v7 }
 0x3ad   : > { %8101 = vmatmul.mubr.msk.f32.vlgmr.msra.gmra.mrb[12].mxu0 %vm1220_vm3, %v1382_v0  ;;  %v9252_v32 = vpop.eup %9251  ;;  %v8978_v0 = vunpack.i.l.bf16 %v10016_v7 }
 0x3ae   : > { %8587 = vmatpush3.bf16.msra.mxu0 %v9802_v48  ;;  %v1334_v63 = vpop.xlane.xlu0 %1333  ;;  %v1355_v16 = vpop.xlane.xlu1 %1354  ;;  %v1384_v17 = vmul.f32 %v9252_v32, %v9930_v40 }
 0x3af   : > { %8593 = vmatprep.subr.bf16.mxu0 %v8592_v50  ;;  %9257 = vrcp.f32 %v1334_v63  ;;  %v8608_v63 = vpack.c.bf16 %v8979_v35, %v8978_v0 }
 0x3b0   : > { %9001 = vrot.lane.b32.xlu1 %v9744_v61, %s9516_s10 }
 0x3b2   : > { %v1331_v13 = vpop.xlane.xlu0 %1330 }
 0x3b3   : > { %9259 = vrcp.f32 %v1331_v13 }
 0x3b4   : > { %2385 = vrot.lane.b32.xlu1 %v9716_v52, %s9517_s11  ;;  %9261 = vrcp.f32 %v1346_v38  ;;  %v8963_v38 = vunpack.i.l.bf16 %v9909_v20 }
 0x3b5   : > { %v9254_v43 = vpop.eup %9253  ;;  %9263 = vrcp.f32 %v1355_v16 }
 0x3b6   : > { %v1383_v48 = vmul.f32 %v9254_v43, %v9944_v6  ;;  %9265 = vrcp.f32 %v1358_v30  ;;  %v9256_v21 = vpop.eup %9255  ;;  %v8964_v6 = vunpack.i.h.bf16 %v9909_v20  ;;  %v8987_v7 = vpop.permute.xlu0 %8986 }
 0x3b7   : > { %v8989_v13 = vunpack.i.h.bf16 %v8987_v7 }
 0x3b8   : > { %8107 = vmatprep.mubr.msk.f32.mxu1 %vm1220_vm3, %v1383_v48  ;;  %9006 = vrot.lane.b32.xlu1 %v9728_v57, %s9516_s10  ;;  %v8600_v20 = vpack.c.bf16 %v8964_v6, %v8963_v38  ;;  %v8973_v6 = vunpack.i.l.bf16 %v9904_v10 }
 0x3b9   : > { %8108 = vmatmul.mubr.msk.f32.vlgmr.msra.gmra.mrb[20].mxu1 %vm1220_vm3, %v1384_v17  ;;  %v9258_v1 = vpop.eup %9257 }
 0x3ba   : > { %8591 = vmatpush3.bf16.msra.mxu1 %v9831_v9  ;;  %v1386_v27 = vmul.f32 %v9258_v1, %v9950_v15  ;;  %v1389_v9 = vmul.f32 %v9256_v21, %v9933_v42 }
 0x3bb   : > { %8597 = vmatprep.subr.bf16.mxu1 %v10049_v22 }
 0x3bc   : > { %2565 = vrot.lane.b32.xlu1 %v9718_v55, %s9517_s11 }
 0x3bd   : > { %v9260_v40 = vpop.eup %9259 }
 0x3be   : > { %v1385_v24 = vmul.f32 %v9260_v40, %v9956_v18  ;;  %v9262_v34 = vpop.eup %9261  ;;  %v8974_v40 = vunpack.i.h.bf16 %v9904_v10 }
 0x3bf   : > { %v9264_v30 = vpop.eup %9263  ;;  %v1390_v15 = vmul.f32 %v9262_v34, %v9920_v26  ;;  %v2111_v26 = vpop.permute.xlu1 %2110 }
 0x3c0   : > { %2567 = vrot.lane.b32.xlu1 %v9714_v51, %s9517_s11  ;;  %8114 = vmatprep.mubr.msk.f32.mxu0 %vm1220_vm3, %v1385_v24  ;;  %v9266_v18 = vpop.eup %9265  ;;  %v1393_v42 = vmul.f32 %v9264_v30, %v9948_v8  ;;  %v8988_v8 = vunpack.i.l.bf16 %v8987_v7  ;;  %v8604_v0 = vpack.c.bf16 %v8974_v40, %v8973_v6 }
 0x3c1   : > { %8115 = vmatmul.mubr.msk.f32.vlgmr.msra.gmra.mrb[14].mxu0 %vm1220_vm3, %v1386_v27 }
 0x3c2   : > { %8595 = vmatpush3.bf16.msra.mxu0 %v8592_v50  ;;  %8128 = vmatprep.mubr.msk.f32.mxu0 %vm1220_vm3, %v1389_v9  ;;  %v1394_v50 = vmul.f32 %v9266_v18, %v9940_v4  ;;  %v8620_v32 = vpack.c.bf16 %v8989_v13, %v8988_v8  ;;  %v8983_v13 = vunpack.i.l.bf16 %v9996_v23 }
 0x3c3   : > { %8601 = vmatprep.subr.bf16.mxu0 %v8600_v20 }
 0x3c4   : > { %2658 = vrot.lane.b32.xlu1 %v9702_v45, %s9517_s11 }
 0x3c5   : > { %8129 = vmatmul.mubr.msk.f32.vlgmr.msra.gmra.mrb[16].mxu0 %vm1220_vm3, %v1390_v15 }
 0x3c6   : > { %8603 = vmatpush3.bf16.msra.mxu0 %v8600_v20  ;;  %8142 = vmatprep.mubr.msk.f32.mxu0 %vm1220_vm3, %v1393_v42 }
 0x3c7   : > { %8610 = vmatprep.subr.msk.bf16.mxu0 %vm9764_vm2, %v8608_v63 }
 0x3c8   : > { %2749 = vrot.lane.b32.xlu1 %v9738_v59, %s9517_s11 }
 0x3c9   : > { %8143 = vmatmul.mubr.msk.f32.vlgmr.msra.gmra.mrb[18].mxu0 %vm1220_vm3, %v1394_v50 }
 0x3ca   : > { %8156 = vmatprep.mubr.msk.f32.mxu0 %vm513_vm1, %v2111_v26  ;;  %v8984_v26 = vunpack.i.h.bf16 %v9996_v23 }
 0x3cc   : > { %9021 = vrot.lane.b32.xlu1 %v9694_v39, %s9518_s12 }
 0x3cf   : > { %8613 = vmatpush3.bf16.xpose.msk.msra.mxu0 %vm9764_vm2, %v8608_v63 }
 0x3d0   : > { %8622 = vmatprep.subr.msk.bf16.mxu0 %vm9764_vm2, %v8620_v32  ;;  %9031 = vrot.lane.b32.xlu1 %v9732_v58, %s9518_s12 }
 0x3d4   : > { %9041 = vrot.lane.b32.xlu1 %v9744_v61, %s9518_s12 }
 0x3e3   : > { %v1340_v4 = vpop.xlane.xlu1 %1339 }
 0x3e4   : > { %9267 = vrcp.f32 %v1340_v4 }
 0x3e7   : > { %v1337_v16 = vpop.xlane.xlu1 %1336  ;;  %v1352_v43 = vpop.xlane.xlu0 %1351 }
 0x3e8   : > { %9269 = vrcp.f32 %v1337_v16 }
 0x3e9   : > { %9271 = vrcp.f32 %v1352_v43  ;;  %v8614_v43 = vpack.c.bf16 %v8984_v26, %v8983_v13 }
 0x3eb   : > { %v10090_v14 = vpop.permute.xlu1 %8991  ;;  %v2113_v19 = vpop.permute.xlu0 %2112 }
 0x3ec   : > { %8157 = vmatmul.mubr.msk.f32.vlgmr.msra.gmra.mrb[20].mxu0 %vm513_vm1, %v2113_v19  ;;  %v8994_v40 = vunpack.i.h.bf16 %v10090_v14  ;;  %v8993_v6 = vunpack.i.l.bf16 %v10090_v14 }
 0x3ed   : > { %8625 = vmatpush3.bf16.xpose.msk.msra.mxu0 %vm9764_vm2, %v8620_v32 }
 0x3ee   : > { %v9268_v21 = vpop.eup %9267 }
 0x3ef   : > { %v10095_v48 = vpop.permute.xlu1 %2203  ;;  %v10097_v17 = vpop.permute.xlu0 %2201  ;;  %v1388_v30 = vmul.f32 %v9268_v21, %v9967_v12 }
 0x3f2   : > { %v9270_v1 = vpop.eup %9269 }
 0x3f3   : > { %v2293_v38 = vpop.permute.xlu1 %2292  ;;  %v8997_v24 = vpop.permute.xlu0 %8996  ;;  %v1387_v27 = vmul.f32 %v9270_v1, %v9969_v3 }
 0x3f4   : > { %v8999_v34 = vunpack.i.h.bf16 %v8997_v24  ;;  %v8998_v9 = vunpack.i.l.bf16 %v8997_v24  ;;  %8170 = vmatprep.mubr.msk.f32.mxu0 %vm513_vm1, %v2293_v38  ;;  %v9272_v7 = vpop.eup %9271 }
 0x3f5   : > { %8121 = vmatprep.mubr.msk.f32.mxu1 %vm1220_vm3, %v1387_v27  ;;  %v1392_v16 = vmul.f32 %v9272_v7, %v9973_v11 }
 0x3f6   : > { %v8632_v35 = vpack.c.bf16 %v8999_v34, %v8998_v9  ;;  %8122 = vmatmul.mubr.msk.f32.vlgmr.msra.gmra.mrb[22].mxu1 %vm1220_vm3, %v1388_v30 }
 0x3f7   : > { %8599 = vmatpush3.bf16.msra.mxu1 %v10049_v22  ;;  %v2295_v20 = vpop.permute.xlu0 %2294 }
 0x3f8   : > { %8605 = vmatprep.subr.bf16.mxu1 %v8604_v0  ;;  %8171 = vmatmul.mubr.msk.f32.vlgmr.msra.gmra.mrb[22].mxu0 %vm513_vm1, %v2295_v20 }
 0x3f9   : > { %8634 = vmatprep.subr.msk.bf16.mxu0 %vm9764_vm2, %v8632_v35 }
 0x3fa   : > { %8637 = vmatpush3.bf16.xpose.msk.msra.mxu0 %vm9764_vm2, %v8632_v35  ;;  %v8626_v35 = vpack.c.bf16 %v8994_v40, %v8993_v6 }
 0x3fb   : > { %v10112_v10 = vpop.permute.xlu0 %2383 }
 0x3ff   : > { %v2475_v12 = vpop.permute.xlu0 %2474 }
 0x400   : > { %8184 = vmatprep.mubr.msk.f32.mxu0 %vm513_vm1, %v2475_v12 }
 0x403   : > { %v2477_v3 = vpop.permute.xlu0 %2476 }
 0x404   : > { %8185 = vmatmul.mubr.msk.f32.vlgmr.msra.gmra.mrb[24].mxu0 %vm513_vm1, %v2477_v3 }
 0x407   : > { %v10116_v15 = vpop.permute.xlu0 %9011 }
 0x408   : > { %v9013_v7 = vunpack.i.l.bf16 %v10116_v15 }
 0x40b   : > { %v2657_v22 = vpop.permute.xlu0 %2656 }
 0x40c   : > { %8198 = vmatprep.mubr.msk.f32.mxu0 %vm513_vm1, %v2657_v22 }
 0x40f   : > { %v10121_v8 = vpop.permute.xlu0 %2747 }
 0x413   : > { %v9017_v21 = vpop.permute.xlu0 %9016 }
 0x414   : > { %v9018_v24 = vunpack.i.l.bf16 %v9017_v21 }
 0x424   : > { %v1349_v18 = vpop.xlane.xlu1 %1348 }
 0x425   : > { %9273 = vrcp.f32 %v1349_v18 }
 0x428   : > { %v1364_v42 = vpop.xlane.xlu1 %1363 }
 0x429   : > { %9275 = vrcp.f32 %v1364_v42 }
 0x42c   : > { %v1361_v63 = vpop.xlane.xlu1 %1360 }
 0x42d   : > { %9277 = vrcp.f32 %v1361_v63  ;;  %v9014_v63 = vunpack.i.h.bf16 %v10116_v15 }
 0x42f   : > { %v9274_v50 = vpop.eup %9273 }
 0x430   : > { %v9002_v32 = vpop.permute.xlu1 %9001  ;;  %v1391_v4 = vmul.f32 %v9274_v50, %v10008_v54  ;;  %v9019_v54 = vunpack.i.h.bf16 %v9017_v21  ;;  %v8650_v50 = vpack.c.bf16 %v9014_v63, %v9013_v7 }
 0x431   : > { %v9004_v14 = vunpack.i.h.bf16 %v9002_v32  ;;  %v9003_v20 = vunpack.i.l.bf16 %v9002_v32 }
 0x432   : > { %8135 = vmatprep.mubr.msk.f32.mxu1 %vm1220_vm3, %v1391_v4 }
 0x433   : > { %8136 = vmatmul.mubr.msk.f32.vlgmr.msra.gmra.mrb[24].mxu1 %vm1220_vm3, %v1392_v16  ;;  %v9276_v1 = vpop.eup %9275  ;;  %v8638_v22 = vpack.c.bf16 %v9004_v14, %v9003_v20  ;;  %v2099_v14 = vld [vmem:[#allocation2 + $0xa8] sm:$0xff] }
 0x434   : > { %8607 = vmatpush3.bf16.msra.mxu1 %v8604_v0  ;;  %v2386_v19 = vpop.permute.xlu1 %2385  ;;  %v1396_v9 = vmul.f32 %v9276_v1, %v10014_v53  ;;  %v9027_v53 = vpop.permute.xlu0 %9026 }
 0x435   : > { %8616 = vmatprep.subr.msk.bf16.mxu1 %vm9764_vm2, %v8614_v43  ;;  %v9029_v3 = vunpack.i.h.bf16 %v9027_v53 }
 0x437   : > { %v9278_v23 = vpop.eup %9277 }
 0x438   : > { %v9007_v38 = vpop.permute.xlu1 %9006  ;;  %v1395_v11 = vmul.f32 %v9278_v23, %v10022_v5  ;;  %v8656_v5 = vpack.c.bf16 %v9019_v54, %v9018_v24  ;;  %v2095_v24 = vld [vmem:[#allocation2 + $0x88] sm:$0xff] }
 0x439   : > { %v9009_v27 = vunpack.i.h.bf16 %v9007_v38  ;;  %v9008_v34 = vunpack.i.l.bf16 %v9007_v38 }
 0x43a   : > { %8149 = vmatprep.mubr.msk.f32.mxu1 %vm1220_vm3, %v1395_v11 }
 0x43b   : > { %v8644_v30 = vpack.c.bf16 %v9009_v27, %v9008_v34  ;;  %8150 = vmatmul.mubr.msk.f32.vlgmr.msra.gmra.mrb[26].mxu1 %vm1220_vm3, %v1396_v9  ;;  %v2094_v27 = vld [vmem:[#allocation2 + $0x80] sm:$0xff] }
 0x43c   : > { %v2566_v0 = vpop.permute.xlu1 %2565  ;;  %8163 = vmatprep.mubr.msk.f32.mxu1 %vm513_vm1, %v10097_v17  ;;  %v9028_v17 = vunpack.i.l.bf16 %v9027_v53 }
 0x43d   : > { %8619 = vmatpush3.bf16.xpose.msk.msra.mxu1 %vm9764_vm2, %v8614_v43  ;;  %8646 = vmatprep.subr.msk.bf16.mxu0 %vm9764_vm2, %v8644_v30 }
 0x43e   : > { %8628 = vmatprep.subr.msk.bf16.mxu1 %vm9764_vm2, %v8626_v35  ;;  %8649 = vmatpush3.bf16.xpose.msk.msra.mxu0 %vm9764_vm2, %v8644_v30  ;;  %v10154_v42 = vpack.c.bf16 %v9029_v3, %v9028_v17  ;;  %v2098_v3 = vld [vmem:[#allocation2 + $0xa0] sm:$0xff] }
 0x43f   : > { %8657 = vmatprep.subr.bf16.mxu0 %v8656_v5 }
 0x440   : > { %v2568_v12 = vpop.permute.xlu1 %2567 }
 0x444   : > { %8164 = vmatmul.mubr.msk.f32.vlgmr.msra.gmra.mrb[28].mxu1 %vm513_vm1, %v10095_v48  ;;  %v2659_v18 = vpop.permute.xlu1 %2658 }
 0x445   : > { %8631 = vmatpush3.bf16.xpose.msk.msra.mxu1 %vm9764_vm2, %v8626_v35  ;;  %8177 = vmatprep.mubr.msk.f32.mxu1 %vm513_vm1, %v10112_v10 }
 0x446   : > { %8640 = vmatprep.subr.msk.bf16.mxu1 %vm9764_vm2, %v8638_v22  ;;  %8199 = vmatmul.mubr.msk.f32.vlgmr.msra.gmra.mrb[26].mxu0 %vm513_vm1, %v2659_v18 }
 0x447   : > { %8659 = vmatpush3.bf16.msra.mxu0 %v8656_v5 }
 0x448   : > { %8665 = vmatprep.subr.bf16.mxu0 %v10154_v42  ;;  %v2750_v48 = vpop.permute.xlu1 %2749 }
 0x44c   : > { %8178 = vmatmul.mubr.msk.f32.vlgmr.msra.gmra.mrb[30].mxu1 %vm513_vm1, %v2386_v19  ;;  %v9022_v26 = vpop.permute.xlu1 %9021 }
 0x44d   : > { %8643 = vmatpush3.bf16.xpose.msk.msra.mxu1 %vm9764_vm2, %v8638_v22  ;;  %8191 = vmatprep.mubr.msk.f32.mxu1 %vm513_vm1, %v2566_v0  ;;  %v9024_v10 = vunpack.i.h.bf16 %v9022_v26  ;;  %v9023_v13 = vunpack.i.l.bf16 %v9022_v26 }
 0x44e   : > { %8652 = vmatprep.subr.msk.bf16.mxu1 %vm9764_vm2, %v8650_v50 }
 0x44f   : > { %v8660_v15 = vpack.c.bf16 %v9024_v10, %v9023_v13 }
 0x450   : > { %v9032_v32 = vpop.permute.xlu1 %9031 }
 0x451   : > { %v9034_v4 = vunpack.i.h.bf16 %v9032_v32  ;;  %v9033_v16 = vunpack.i.l.bf16 %v9032_v32  ;;  %v2097_v32 = vld [vmem:[#allocation2 + $0x98] sm:$0xff] }
 0x453   : > { %v10171_v43 = vpack.c.bf16 %v9034_v4, %v9033_v16  ;;  %v2096_v4 = vld [vmem:[#allocation2 + $0x90] sm:$0xff] }
 0x454   : > { %8192 = vmatmul.mubr.msk.f32.vlgmr.msra.gmra.mrb[32].mxu1 %vm513_vm1, %v2568_v12 }
 0x455   : > { %8655 = vmatpush3.bf16.xpose.msk.msra.mxu1 %vm9764_vm2, %v8650_v50  ;;  %8205 = vmatprep.mubr.msk.f32.mxu1 %vm513_vm1, %v10121_v8 }
 0x456   : > { %8661 = vmatprep.subr.bf16.mxu1 %v8660_v15 }
 0x45c   : > { %8206 = vmatmul.mubr.msk.f32.vlgmr.msra.gmra.mrb[34].mxu1 %vm513_vm1, %v2750_v48 }
 0x45d   : > { %8663 = vmatpush3.bf16.msra.mxu1 %v8660_v15 }
 0x45e   : > { %8669 = vmatprep.subr.bf16.mxu1 %v10171_v43 }
 0x480   : > { %v10174_v19 = vpop.f32.mrb[12].mxu0 }
 0x481   : > { %11419 = vst [vmem:[#allocation5_spill] sm:$0xff] %v10174_v19  ;;  %v10176_v21 = vpop.f32.mrb[13].mxu0 }
 0x482   : > { %11420 = vst [vmem:[#allocation6_spill] sm:$0xff] %v10176_v21 }
 0x48c   : > { %v10178_v1 = vpop.f32.mrb[20].mxu1 }
 0x48d   : > { %11421 = vst [vmem:[#allocation7_spill] sm:$0xff] %v10178_v1  ;;  %v10180_v23 = vpop.f32.mrb[21].mxu1  ;;  %v2108_v1 = vld [vmem:[#allocation2 + $0xf0] sm:$0xff] }
 0x48e   : > { %11422 = vst [vmem:[#allocation8_spill] sm:$0xff] %v10180_v23 }
 0x494   : > { %v10182_v40 = vpop.f32.mrb[14].mxu0 }
 0x495   : > { %11423 = vst [vmem:[#allocation9_spill] sm:$0xff] %v10182_v40  ;;  %v10184_v8 = vpop.f32.mrb[15].mxu0 }
 0x496   : > { %11424 = vst [vmem:[#allocation10_spill] sm:$0xff] %v10184_v8 }
 0x498   : > { %v10186_v6 = vpop.f32.mrb[16].mxu0 }
 0x499   : > { %11425 = vst [vmem:[#allocation11_spill] sm:$0xff] %v10186_v6  ;;  %v10188_v54 = vpop.f32.mrb[17].mxu0 }
 0x49a   : > { %11426 = vst [vmem:[#allocation12_spill] sm:$0xff] %v10188_v54 }
 0x49c   : > { %v10190_v38 = vpop.f32.mrb[18].mxu0 }
 0x49d   : > { %11427 = vst [vmem:[#allocation13_spill] sm:$0xff] %v10190_v38  ;;  %v10192_v11 = vpop.f32.mrb[19].mxu0 }
 0x49e   : > { %11428 = vst [vmem:[#allocation14_spill] sm:$0xff] %v10192_v11 }
 0x4bf   : > { %v8158_v34 = vpop.f32.mrb[20].mxu0 }
 0x4c0   : > { %v10194_v9 = vadd.f32 %v8158_v34, %v2095_v24  ;;  %v2192_v30 = vpop.f32.mrb[21].mxu0  ;;  %v2103_v24 = vld [vmem:[#allocation2 + $0xc8] sm:$0xff] }
 0x4c1   : > { %v10196_v35 = vadd.f32 %v2192_v30, %v2094_v27 }
 0x4c2   : > { %v2841_v0 = vsel %vm1220_vm3, %v10194_v9, -inf }
 0x4c3   : > { %2842 = vmax.xlane.f32.xlu1 %v2841_v0  ;;  %v2838_v5 = vsel %vm1220_vm3, %v10196_v35, -inf }
 0x4c4   : > { %2839 = vmax.xlane.f32.xlu0 %v2838_v5 }
 0x4c9   : > { %v10202_v53 = vpop.f32.mrb[22].mxu1 }
 0x4ca   : > { %11429 = vst [vmem:[#allocation15_spill] sm:$0xff] %v10202_v53  ;;  %v10204_v20 = vpop.f32.mrb[23].mxu1 }
 0x4cb   : > { %11430 = vst [vmem:[#allocation16_spill] sm:$0xff] %v10204_v20  ;;  %v8172_v12 = vpop.f32.mrb[22].mxu0 }
 0x4cc   : > { %v10206_v17 = vadd.f32 %v8172_v12, %v2099_v14  ;;  %v2374_v22 = vpop.f32.mrb[23].mxu0 }
 0x4cd   : > { %v10208_v18 = vadd.f32 %v2374_v22, %v2098_v3  ;;  %v2102_v22 = vld [vmem:[#allocation2 + $0xc0] sm:$0xff] }
 0x4ce   : > { %v2853_v63 = vsel %vm1220_vm3, %v10206_v17, -inf }
 0x4cf   : > { %2854 = vmax.xlane.f32.xlu0 %v2853_v63  ;;  %v2850_v7 = vsel %vm1220_vm3, %v10208_v18, -inf  ;;  %v2101_v63 = vld [vmem:[#allocation2 + $0xb8] sm:$0xff] }
 0x4d3   : > { %2851 = vmax.xlane.f32.xlu0 %v2850_v7 }
 0x4d7   : > { %v8186_v48 = vpop.f32.mrb[24].mxu0 }
 0x4d8   : > { %v2556_v50 = vpop.f32.mrb[25].mxu0  ;;  %v10228_v12 = vadd.f32 %v8186_v48, %v2103_v24 }
 0x4d9   : > { %v10232_v7 = vadd.f32 %v2556_v50, %v2102_v22  ;;  %v2105_v22 = vld [vmem:[#allocation2 + $0xd8] sm:$0xff] }
 0x4db   : > { %v2862_v50 = vsel %vm1220_vm3, %v10232_v7, -inf }
 0x506   : > { %v10214_v26 = vpop.f32.mrb[24].mxu1 }
 0x507   : > { %11431 = vst [vmem:[#allocation17_spill] sm:$0xff] %v10214_v26  ;;  %v10216_v10 = vpop.f32.mrb[25].mxu1 }
 0x508   : > { %11432 = vst [vmem:[#allocation18_spill] sm:$0xff] %v10216_v10 }
 0x50e   : > { %v10218_v13 = vpop.f32.mrb[26].mxu1 }
 0x50f   : > { %11433 = vst [vmem:[#allocation19_spill] sm:$0xff] %v10218_v13  ;;  %v10220_v15 = vpop.f32.mrb[27].mxu1 }
 0x510   : > { %11434 = vst [vmem:[#allocation20_spill] sm:$0xff] %v10220_v15 }
 0x517   : > { %v8165_v16 = vpop.f32.mrb[28].mxu1 }
 0x518   : > { %v10222_v27 = vadd.f32 %v8165_v16, %v2097_v32  ;;  %v2283_v34 = vpop.f32.mrb[29].mxu1  ;;  %v2100_v16 = vld [vmem:[#allocation2 + $0xb0] sm:$0xff] }
 0x519   : > { %v10224_v30 = vadd.f32 %v2283_v34, %v2096_v4  ;;  %v8200_v0 = vpop.f32.mrb[26].mxu0  ;;  %v2865_v4 = vsel %vm1220_vm3, %v10228_v12, -inf  ;;  %v2107_v34 = vld [vmem:[#allocation2 + $0xe8] sm:$0xff] }
 0x51a   : > { %v2738_v5 = vpop.f32.mrb[27].mxu0  ;;  %v2847_v14 = vsel %vm1220_vm3, %v10222_v27, -inf }
 0x51b   : > { %2848 = vmax.xlane.f32.xlu1 %v2847_v14  ;;  %v2844_v3 = vsel %vm1220_vm3, %v10224_v30, -inf  ;;  %v10242_v14 = vadd.f32 %v8200_v0, %v2107_v34 }
 0x51c   : > { %2845 = vmax.xlane.f32.xlu0 %v2844_v3  ;;  %v2106_v3 = vld [vmem:[#allocation2 + $0xe0] sm:$0xff] }
 0x51d   : > { %v10246_v19 = vadd.f32 %v2738_v5, %v2106_v3  ;;  %v2104_v3 = vld [vmem:[#allocation2 + $0xd0] sm:$0xff] }
 0x51f   : > { %v8179_v32 = vpop.f32.mrb[30].mxu1 }
 0x520   : > { %v10236_v13 = vadd.f32 %v8179_v32, %v2101_v63  ;;  %v2465_v15 = vpop.f32.mrb[31].mxu1  ;;  %2866 = vmax.xlane.f32.xlu0 %v2865_v4  ;;  %v2874_v4 = vsel %vm1220_vm3, %v10246_v19, -inf }
 0x521   : > { %v10238_v48 = vadd.f32 %v2465_v15, %v2100_v16  ;;  %v2877_v15 = vsel %vm1220_vm3, %v10242_v14, -inf }
 0x522   : > { %v2859_v24 = vsel %vm1220_vm3, %v10236_v13, -inf }
 0x523   : > { %2860 = vmax.xlane.f32.xlu1 %v2859_v24  ;;  %v2856_v63 = vsel %vm1220_vm3, %v10238_v48, -inf }
 0x524   : > { %2863 = vmax.xlane.f32.xlu0 %v2862_v50  ;;  %v2109_v50 = vld [vmem:[#allocation2 + $0xf8] sm:$0xff] }
 0x527   : > { %v8193_v32 = vpop.f32.mrb[32].mxu1  ;;  %2857 = vmax.xlane.f32.xlu1 %v2856_v63 }
 0x528   : > { %v10252_v16 = vadd.f32 %v8193_v32, %v2105_v22  ;;  %v2647_v0 = vpop.f32.mrb[33].mxu1  ;;  %2878 = vmax.xlane.f32.xlu0 %v2877_v15 }
 0x529   : > { %v10262_v22 = vadd.f32 %v2647_v0, %v2104_v3  ;;  %v10276_v0 = vpop.permute.xlu0 %9036 }
 0x52a   : > { %v2871_v34 = vsel %vm1220_vm3, %v10252_v16, -inf  ;;  %v9039_v20 = vunpack.i.h.bf16 %v10276_v0  ;;  %v9038_v8 = vunpack.i.l.bf16 %v10276_v0 }
 0x52b   : > { %2875 = vmax.xlane.f32.xlu1 %v2874_v4  ;;  %v2868_v32 = vsel %vm1220_vm3, %v10262_v22, -inf  ;;  %v10280_v4 = vpop.permute.xlu1 %9041 }
 0x52c   : > { %2872 = vmax.xlane.f32.xlu0 %v2871_v34 }
 0x52f   : > { %v8207_v5 = vpop.f32.mrb[34].mxu1 }
 0x530   : > { %v2829_v24 = vpop.f32.mrb[35].mxu1  ;;  %v10264_v63 = vadd.f32 %v8207_v5, %v2109_v50 }
 0x531   : > { %v10286_v11 = vadd.f32 %v2829_v24, %v2108_v1 }
 0x532   : > { %v2883_v15 = vsel %vm1220_vm3, %v10264_v63, -inf }
 0x53c   : > { %9051 = vrot.lane.b32.xlu1 %v9751_v62, %s9518_s12 }
 0x542   : > { %9046 = vrot.lane.b32.xlu0 %v9728_v57, %s9518_s12 }
 0x550   : > { %v2843_v5 = vpop.xlane.xlu1 %2842 }
 0x551   : > { %v2840_v34 = vpop.xlane.xlu0 %2839  ;;  %v2887_v50 = vsub.f32 %v10194_v9, %v2843_v5  ;;  %v2880_v9 = vsel %vm1220_vm3, %v10286_v11, -inf }
 0x55c   : > { %v2855_v3 = vpop.xlane.xlu0 %2854 }
 0x55d   : > { %v2891_v21 = vsub.f32 %v10206_v17, %v2855_v3 }
 0x55f   : > { %v2912_v6 = vmul.f32 1.442695, %v2891_v21 }
 0x560   : > { %2869 = vmax.xlane.f32.xlu1 %v2868_v32  ;;  %v2886_v32 = vsub.f32 %v10196_v35, %v2840_v34  ;;  %v2852_v38 = vpop.xlane.xlu0 %2851 }
 0x561   : > { %2884 = vmax.xlane.f32.xlu0 %v2883_v15  ;;  %v2904_v15 = vmul.f32 1.442695, %v2887_v50  ;;  %v2890_v53 = vsub.f32 %v10208_v18, %v2852_v38 }
 0x562   : > { %v2902_v26 = vmul.f32 1.442695, %v2886_v32 }
 0x563   : > { %9279 = vpow2.f32 %v2904_v15  ;;  %v2910_v40 = vmul.f32 1.442695, %v2890_v53 }
 0x564   : > { %9281 = vpow2.f32 %v2902_v26 }
 0x565   : > { %9283 = vpow2.f32 %v2912_v6 }
 0x566   : > { %9285 = vpow2.f32 %v2910_v40 }
 0x56d   : > { %v10288_v10 = vpop.eup %9279 }
 0x56e   : > { %v10292_v35 = vpop.eup %9281  ;;  %v2937_v21 = vsel %vm1220_vm3, %v10288_v10, 0.0 }
 0x56f   : > { %v10296_v17 = vpop.eup %9283  ;;  %v2934_v6 = vsel %vm1220_vm3, %v10292_v35, 0.0 }
 0x570   : > { %v2949_v1 = vsel %vm1220_vm3, %v10296_v17, 0.0  ;;  %v10302_v40 = vpop.eup %9285 }
 0x571   : > { %9061 = vrot.lane.b32.xlu1 %v9694_v39, %s9519_s13  ;;  %v2946_v38 = vsel %vm1220_vm3, %v10302_v40, 0.0 }
 0x575   : > { %3727 = vrot.lane.b32.xlu1 %v9672_v28, %s9520_s14 }
 0x577   : > { %9056 = vrot.lane.b32.xlu0 %v9680_v31, %s9519_s13 }
 0x57b   : > { %9066 = vrot.lane.b32.xlu0 %v9712_v49, %s9519_s13 }
 0x599   : > { %2881 = vmax.xlane.f32.xlu1 %v2880_v9 }
 0x59a   : > { %2938 = vadd.xlane.f32.xlu0 %v2937_v21 }
 0x59d   : > { %2935 = vadd.xlane.f32.xlu1 %v2934_v6 }
 0x59e   : > { %2950 = vadd.xlane.f32.xlu0 %v2949_v1 }
 0x5a2   : > { %2947 = vadd.xlane.f32.xlu0 %v2946_v38 }
 0x5a8   : > { %v2849_v53 = vpop.xlane.xlu1 %2848 }
 0x5a9   : > { %v2889_v18 = vsub.f32 %v10222_v27, %v2849_v53  ;;  %v2846_v26 = vpop.xlane.xlu0 %2845 }
 0x5aa   : > { %v2888_v24 = vsub.f32 %v10224_v30, %v2846_v26 }
 0x5ab   : > { %v2908_v34 = vmul.f32 1.442695, %v2889_v18 }
 0x5ac   : > { %v2906_v5 = vmul.f32 1.442695, %v2888_v24 }
 0x5ad   : > { %9287 = vpow2.f32 %v2908_v34  ;;  %v2867_v3 = vpop.xlane.xlu0 %2866 }
 0x5ae   : > { %v2895_v50 = vsub.f32 %v10228_v12, %v2867_v3  ;;  %9289 = vpow2.f32 %v2906_v5 }
 0x5b0   : > { %v2920_v32 = vmul.f32 1.442695, %v2895_v50  ;;  %v2861_v15 = vpop.xlane.xlu1 %2860 }
 0x5b1   : > { %v2893_v9 = vsub.f32 %v10236_v13, %v2861_v15  ;;  %v2864_v21 = vpop.xlane.xlu0 %2863 }
 0x5b2   : > { %9291 = vpow2.f32 %v2920_v32  ;;  %v2894_v6 = vsub.f32 %v10232_v7, %v2864_v21 }
 0x5b3   : > { %v2916_v1 = vmul.f32 1.442695, %v2893_v9 }
 0x5b4   : > { %v2918_v27 = vmul.f32 1.442695, %v2894_v6  ;;  %v2858_v38 = vpop.xlane.xlu1 %2857 }
 0x5b5   : > { %9293 = vpow2.f32 %v2916_v1  ;;  %v2892_v30 = vsub.f32 %v10238_v48, %v2858_v38  ;;  %v2879_v53 = vpop.xlane.xlu0 %2878 }
 0x5b6   : > { %9295 = vpow2.f32 %v2918_v27  ;;  %v2899_v18 = vsub.f32 %v10242_v14, %v2879_v53 }
 0x5b7   : > { %v10313_v12 = vpop.eup %9287  ;;  %v2914_v26 = vmul.f32 1.442695, %v2892_v30 }
 0x5b8   : > { %v2928_v24 = vmul.f32 1.442695, %v2899_v18  ;;  %v2876_v34 = vpop.xlane.xlu1 %2875  ;;  %v2943_v13 = vsel %vm1220_vm3, %v10313_v12, 0.0  ;;  %v10317_v5 = vpop.eup %9289 }
 0x5b9   : > { %9297 = vpow2.f32 %v2914_v26  ;;  %v2898_v7 = vsub.f32 %v10246_v19, %v2876_v34  ;;  %2944 = vadd.xlane.f32.xlu1 %v2943_v13  ;;  %v2873_v3 = vpop.xlane.xlu0 %2872  ;;  %v2940_v15 = vsel %vm1220_vm3, %v10317_v5, 0.0 }
 0x5ba   : > { %9299 = vpow2.f32 %v2928_v24  ;;  %v2897_v48 = vsub.f32 %v10252_v16, %v2873_v3 }
 0x5bb   : > { %v2926_v50 = vmul.f32 1.442695, %v2898_v7 }
 0x5bc   : > { %v10321_v14 = vpop.eup %9291  ;;  %v2924_v32 = vmul.f32 1.442695, %v2897_v48  ;;  %v10363_v34 = vpop.permute.xlu1 %9051 }
 0x5bd   : > { %9301 = vpow2.f32 %v2926_v50  ;;  %2941 = vadd.xlane.f32.xlu1 %v2940_v15  ;;  %v2961_v9 = vsel %vm1220_vm3, %v10321_v14, 0.0  ;;  %v10367_v13 = vpop.permute.xlu0 %9046 }
 0x5be   : > { %9303 = vpow2.f32 %v2924_v32  ;;  %2962 = vadd.xlane.f32.xlu0 %v2961_v9 }
 0x5bf   : > { %v10327_v19 = vpop.eup %9293 }
 0x5c0   : > { %v10329_v21 = vpop.eup %9295  ;;  %v2955_v16 = vsel %vm1220_vm3, %v10327_v19, 0.0 }
 0x5c1   : > { %2956 = vadd.xlane.f32.xlu1 %v2955_v16  ;;  %v2958_v6 = vsel %vm1220_vm3, %v10329_v21, 0.0 }
 0x5c2   : > { %2959 = vadd.xlane.f32.xlu0 %v2958_v6 }
 0x5c3   : > { %v10335_v1 = vpop.eup %9297 }
 0x5c4   : > { %v10337_v27 = vpop.eup %9299  ;;  %v2952_v38 = vsel %vm1220_vm3, %v10335_v1, 0.0 }
 0x5c5   : > { %2953 = vadd.xlane.f32.xlu1 %v2952_v38  ;;  %v2973_v30 = vsel %vm1220_vm3, %v10337_v27, 0.0 }
 0x5c6   : > { %2974 = vadd.xlane.f32.xlu0 %v2973_v30 }
 0x5c7   : > { %v10343_v53 = vpop.eup %9301 }
 0x5c8   : > { %v10345_v18 = vpop.eup %9303  ;;  %v2970_v26 = vsel %vm1220_vm3, %v10343_v53, 0.0 }
 0x5c9   : > { %2971 = vadd.xlane.f32.xlu1 %v2970_v26  ;;  %v2967_v24 = vsel %vm1220_vm3, %v10345_v18, 0.0 }
 0x5ca   : > { %2968 = vadd.xlane.f32.xlu0 %v2967_v24 }
 0x5da   : > { %9071 = vrot.lane.b32.xlu1 %v9732_v58, %s9519_s13 }
 0x5de   : > { %3820 = vrot.lane.b32.xlu1 %v9684_v33, %s9520_s14 }
 0x5e0   : > { %3729 = vrot.lane.b32.xlu0 %v9670_v25, %s9520_s14 }
 0x5e2   : > { %3909 = vrot.lane.b32.xlu1 %v9698_v44, %s9520_s14 }
 0x5e4   : > { %3818 = vrot.lane.b32.xlu0 %v9686_v36, %s9520_s14 }
 0x5e8   : > { %9076 = vrot.lane.b32.xlu0 %v9708_v47, %s9519_s13 }
 0x5ec   : > { %3911 = vrot.lane.b32.xlu0 %v9696_v41, %s9520_s14 }
 0x5ed   : > { %v2870_v7 = vpop.xlane.xlu1 %2869 }
 0x5ee   : > { %v2896_v3 = vsub.f32 %v10262_v22, %v2870_v7  ;;  %v2885_v48 = vpop.xlane.xlu0 %2884 }
 0x5ef   : > { %v2901_v32 = vsub.f32 %v10264_v63, %v2885_v48 }
 0x5f0   : > { %4000 = vrot.lane.b32.xlu0 %v9720_v56, %s9520_s14  ;;  %v2922_v50 = vmul.f32 1.442695, %v2896_v3 }
 0x5f1   : > { %v2932_v15 = vmul.f32 1.442695, %v2901_v32  ;;  %v10397_v6 = vpop.permute.xlu1 %9061 }
 0x5f2   : > { %9305 = vpow2.f32 %v2922_v50  ;;  %v10399_v38 = vpop.permute.xlu0 %9056 }
 0x5f3   : > { %9307 = vpow2.f32 %v2932_v15 }
 0x5f4   : > { %4091 = vrot.lane.b32.xlu0 %v9674_v29, %s9520_s14 }
 0x5f5   : > { %v10401_v30 = vpop.permute.xlu1 %3727 }
 0x5f6   : > { %v10403_v26 = vpop.permute.xlu0 %9066 }
 0x5f8   : > { %4093 = vrot.lane.b32.xlu0 %v9690_v37, %s9520_s14 }
 0x5fc   : > { %9091 = vrot.lane.b32.xlu0 %v9751_v62, %s9519_s13  ;;  %v10381_v22 = vpop.eup %9305 }
 0x5fd   : > { %v2964_v63 = vsel %vm1220_vm3, %v10381_v22, 0.0  ;;  %v10387_v9 = vpop.eup %9307 }
 0x5fe   : > { %v2979_v16 = vsel %vm1220_vm3, %v10387_v9, 0.0 }
 0x600   : > { %4273 = vrot.lane.b32.xlu0 %v9704_v46, %s9520_s14 }
 0x604   : > { %4364 = vrot.lane.b32.xlu0 %v9740_v60, %s9520_s14 }
 0x606   : > { %2965 = vadd.xlane.f32.xlu1 %v2964_v63 }
 0x608   : > { %9096 = vrot.lane.b32.xlu0 %v9680_v31, %s9521_s15 }
 0x60a   : > { %2980 = vadd.xlane.f32.xlu1 %v2979_v16 }
 0x60c   : > { %9106 = vrot.lane.b32.xlu0 %v9712_v49, %s9521_s15 }
 0x610   : > { %9116 = vrot.lane.b32.xlu0 %v9708_v47, %s9521_s15 }
 0x626   : > { %v2882_v24 = vpop.xlane.xlu1 %2881 }
 0x627   : > { %v2900_v7 = vsub.f32 %v10286_v11, %v2882_v24  ;;  %v2939_v3 = vpop.xlane.xlu0 %2938 }
 0x628   : > { %9309 = vrcp.f32 %v2939_v3 }
 0x629   : > { %v2930_v48 = vmul.f32 1.442695, %v2900_v7 }
 0x62a   : > { %v2936_v50 = vpop.xlane.xlu1 %2935 }
 0x62b   : > { %9311 = vpow2.f32 %v2930_v48  ;;  %v2951_v32 = vpop.xlane.xlu0 %2950 }
 0x62c   : > { %9313 = vrcp.f32 %v2936_v50  ;;  %v9049_v50 = vunpack.i.h.bf16 %v10367_v13 }
 0x62d   : > { %9315 = vrcp.f32 %v2951_v32  ;;  %v9048_v32 = vunpack.i.l.bf16 %v10367_v13 }
 0x62f   : > { %v2948_v15 = vpop.xlane.xlu0 %2947 }
 0x630   : > { %9317 = vrcp.f32 %v2948_v15  ;;  %v8672_v15 = vpack.c.bf16 %v9039_v20, %v9038_v8 }
 0x632   : > { %v9310_v63 = vpop.eup %9309 }
 0x633   : > { %v2999_v7 = vmul.f32 %v9310_v63, %v10288_v10  ;;  %v8680_v10 = vpack.c.bf16 %v9049_v50, %v9048_v32 }
 0x635   : > { %v10406_v16 = vpop.eup %9311 }
 0x636   : > { %v9314_v54 = vpop.eup %9313  ;;  %v2976_v11 = vsel %vm1220_vm3, %v10406_v16, 0.0 }
 0x637   : > { %2977 = vadd.xlane.f32.xlu1 %v2976_v11  ;;  %v2998_v24 = vmul.f32 %v9314_v54, %v10292_v35  ;;  %v9316_v3 = vpop.eup %9315 }
 0x638   : > { %v3003_v54 = vmul.f32 %v9316_v3, %v10296_v17 }
 0x639   : > { %8212 = vmatprep.mubr.msk.f32.mxu0 %vm1220_vm3, %v2998_v24  ;;  %v9044_v24 = vunpack.i.h.bf16 %v10280_v4 }
 0x63a   : > { %v9318_v48 = vpop.eup %9317  ;;  %8213 = vmatmul.mubr.msk.f32.vlgmr.msra.gmra.mrb[28].mxu0 %vm1220_vm3, %v2999_v7  ;;  %v9043_v7 = vunpack.i.l.bf16 %v10280_v4  ;;  %v9059_v4 = vunpack.i.h.bf16 %v10399_v38 }
 0x63b   : > { %8667 = vmatpush3.bf16.msra.mxu0 %v10154_v42  ;;  %v3002_v0 = vmul.f32 %v9318_v48, %v10302_v40 }
 0x63c   : > { %8673 = vmatprep.subr.bf16.mxu0 %v8672_v15 }
 0x63d   : > { %8226 = vmatprep.mubr.msk.f32.mxu0 %vm1220_vm3, %v3002_v0  ;;  %v8676_v0 = vpack.c.bf16 %v9044_v24, %v9043_v7 }
 0x63e   : > { %8227 = vmatmul.mubr.msk.f32.vlgmr.msra.gmra.mrb[30].mxu0 %vm1220_vm3, %v3003_v54 }
 0x63f   : > { %8675 = vmatpush3.bf16.msra.mxu0 %v8672_v15 }
 0x640   : > { %8681 = vmatprep.subr.bf16.mxu0 %v8680_v10 }
 0x646   : > { %v2945_v35 = vpop.xlane.xlu1 %2944 }
 0x647   : > { %9319 = vrcp.f32 %v2945_v35  ;;  %v9058_v35 = vunpack.i.l.bf16 %v10399_v38 }
 0x648   : > { %9081 = vrot.lane.b32.xlu1 %v9744_v61, %s9519_s13 }
 0x649   : > { %v8688_v38 = vpack.c.bf16 %v9059_v4, %v9058_v35 }
 0x64a   : > { %v2942_v8 = vpop.xlane.xlu1 %2941 }
 0x64b   : > { %9321 = vrcp.f32 %v2942_v8  ;;  %v2963_v42 = vpop.xlane.xlu0 %2962 }
 0x64c   : > { %4002 = vrot.lane.b32.xlu1 %v9716_v52, %s9520_s14  ;;  %9323 = vrcp.f32 %v2963_v42 }
 0x64e   : > { %v2957_v20 = vpop.xlane.xlu1 %2956 }
 0x64f   : > { %v2960_v17 = vpop.xlane.xlu0 %2959 }
 0x650   : > { %9325 = vrcp.f32 %v2960_v17  ;;  %9086 = vrot.lane.b32.xlu1 %v9728_v57, %s9519_s13  ;;  %v9054_v17 = vunpack.i.h.bf16 %v10363_v34  ;;  %s11365_s13 = scalar_lea.vmem %s11408_s6, %s7481_s17 }
 0x651   : > { %9327 = vrcp.f32 %v2957_v20  ;;  %v9320_v63 = vpop.eup %9319 }
 0x652   : > { %v2954_v40 = vpop.xlane.xlu1 %2953  ;;  %v3001_v32 = vmul.f32 %v9320_v63, %v10313_v12 }
 0x653   : > { %9329 = vrcp.f32 %v2954_v40  ;;  %v2975_v13 = vpop.xlane.xlu0 %2974  ;;  %v9053_v40 = vunpack.i.l.bf16 %v10363_v34 }
 0x654   : > { %4182 = vrot.lane.b32.xlu1 %v9718_v55, %s9520_s14  ;;  %9331 = vrcp.f32 %v2975_v13 }
 0x655   : > { %v9322_v11 = vpop.eup %9321  ;;  %v8684_v34 = vpack.c.bf16 %v9054_v17, %v9053_v40 }
 0x656   : > { %v2972_v3 = vpop.xlane.xlu1 %2971  ;;  %v3000_v48 = vmul.f32 %v9322_v11, %v10317_v5  ;;  %v9324_v15 = vpop.eup %9323 }
 0x657   : > { %9333 = vrcp.f32 %v2972_v3  ;;  %v10434_v50 = vpop.xlane.xlu0 %2968  ;;  %v3007_v42 = vmul.f32 %v9324_v15, %v10321_v14 }
 0x658   : > { %8219 = vmatprep.mubr.msk.f32.mxu1 %vm1220_vm3, %v3000_v48  ;;  %4184 = vrot.lane.b32.xlu1 %v9714_v51, %s9520_s14  ;;  %9335 = vrcp.f32 %v10434_v50 }
 0x659   : > { %8220 = vmatmul.mubr.msk.f32.vlgmr.msra.gmra.mrb[36].mxu1 %vm1220_vm3, %v3001_v32 }
 0x65a   : > { %v9326_v54 = vpop.eup %9325  ;;  %8671 = vmatpush3.bf16.msra.mxu1 %v10171_v43  ;;  %v10465_v11 = vpop.permute.xlu1 %9071 }
 0x65b   : > { %8677 = vmatprep.subr.bf16.mxu1 %v8676_v0  ;;  %v3730_v5 = vpop.permute.xlu0 %3729  ;;  %v3006_v12 = vmul.f32 %v9326_v54, %v10329_v21  ;;  %v9328_v8 = vpop.eup %9327 }
 0x65c   : > { %4275 = vrot.lane.b32.xlu1 %v9702_v45, %s9520_s14  ;;  %v3005_v13 = vmul.f32 %v9328_v8, %v10327_v19  ;;  %v9068_v19 = vunpack.i.l.bf16 %v10403_v26 }
 0x65d   : > { %v9330_v20 = vpop.eup %9329  ;;  %8240 = vmatprep.mubr.msk.f32.mxu0 %vm1220_vm3, %v3006_v12 }
 0x65e   : > { %8241 = vmatmul.mubr.msk.f32.vlgmr.msra.gmra.mrb[32].mxu0 %vm1220_vm3, %v3007_v42  ;;  %v3004_v43 = vmul.f32 %v9330_v20, %v10335_v1  ;;  %v9332_v63 = vpop.eup %9331  ;;  %v9064_v42 = vunpack.i.h.bf16 %v10397_v6  ;;  %v9063_v20 = vunpack.i.l.bf16 %v10397_v6 }
 0x65f   : > { %8683 = vmatpush3.bf16.msra.mxu0 %v8680_v10  ;;  %v10453_v21 = vpop.permute.xlu0 %3818  ;;  %v9069_v10 = vunpack.i.h.bf16 %v10403_v26  ;;  %v3011_v7 = vmul.f32 %v9332_v63, %v10337_v27  ;;  %v10476_v26 = vpop.permute.xlu1 %3820 }
 0x660   : > { %8690 = vmatprep.subr.msk.bf16.mxu0 %vm9764_vm2, %v8688_v38  ;;  %8233 = vmatprep.mubr.msk.f32.mxu1 %vm1220_vm3, %v3004_v43 }
 0x661   : > { %v9334_v14 = vpop.eup %9333  ;;  %4366 = vrot.lane.b32.xlu1 %v9738_v59, %s9520_s14  ;;  %8234 = vmatmul.mubr.msk.f32.vlgmr.msra.gmra.mrb[38].mxu1 %vm1220_vm3, %v3005_v13 }
 0x662   : > { %8679 = vmatpush3.bf16.msra.mxu1 %v8676_v0  ;;  %v3010_v1 = vmul.f32 %v9334_v14, %v10343_v53  ;;  %v8700_v53 = vpack.c.bf16 %v9069_v10, %v9068_v19  ;;  %v9336_v12 = vpop.eup %9335  ;;  %v9073_v10 = vunpack.i.l.bf16 %v10465_v11 }
 0x663   : > { %8685 = vmatprep.subr.bf16.mxu1 %v8684_v34  ;;  %v9077_v24 = vpop.permute.xlu0 %9076  ;;  %v3009_v40 = vmul.f32 %v9336_v12, %v10345_v18  ;;  %v9074_v18 = vunpack.i.h.bf16 %v10465_v11 }
 0x664   : > { %8254 = vmatprep.mubr.msk.f32.mxu0 %vm1220_vm3, %v3010_v1  ;;  %v9079_v27 = vunpack.i.h.bf16 %v9077_v24  ;;  %v9078_v48 = vunpack.i.l.bf16 %v9077_v24 }
 0x665   : > { %9101 = vrot.lane.b32.xlu1 %v9694_v39, %s9521_s15  ;;  %8255 = vmatmul.mubr.msk.f32.vlgmr.msra.gmra.mrb[34].mxu0 %vm1220_vm3, %v3011_v7 }
 0x666   : > { %8268 = vmatprep.mubr.msk.f32.mxu0 %vm513_vm1, %v10401_v30  ;;  %v3910_v30 = vpop.permute.xlu1 %3909  ;;  %v8712_v15 = vpack.c.bf16 %v9079_v27, %v9078_v48  ;;  %v8706_v48 = vpack.c.bf16 %v9074_v18, %v9073_v10 }
 0x667   : > { %v3912_v3 = vpop.permute.xlu0 %3911 }
 0x668   : > { %8693 = vmatpush3.bf16.xpose.msk.msra.mxu0 %vm9764_vm2, %v8688_v38  ;;  %v8694_v38 = vpack.c.bf16 %v9064_v42, %v9063_v20 }
 0x669   : > { %9111 = vrot.lane.b32.xlu1 %v9732_v58, %s9521_s15  ;;  %8702 = vmatprep.subr.msk.bf16.mxu0 %vm9764_vm2, %v8700_v53 }
 0x66b   : > { %v10482_v32 = vpop.permute.xlu0 %4000 }
 0x66d   : > { %9121 = vrot.lane.b32.xlu1 %v9744_v61, %s9521_s15 }
 0x66f   : > { %8269 = vmatmul.mubr.msk.f32.vlgmr.msra.gmra.mrb[36].mxu0 %vm513_vm1, %v3730_v5  ;;  %v4092_v0 = vpop.permute.xlu0 %4091 }
 0x670   : > { %8705 = vmatpush3.bf16.xpose.msk.msra.mxu0 %vm9764_vm2, %v8700_v53  ;;  %8282 = vmatprep.mubr.msk.f32.mxu0 %vm513_vm1, %v3910_v30 }
 0x671   : > { %8714 = vmatprep.subr.msk.bf16.mxu0 %vm9764_vm2, %v8712_v15 }
 0x673   : > { %v4094_v54 = vpop.permute.xlu0 %4093 }
 0x677   : > { %8283 = vmatmul.mubr.msk.f32.vlgmr.msra.gmra.mrb[38].mxu0 %vm513_vm1, %v3912_v3  ;;  %v10496_v4 = vpop.permute.xlu0 %9091 }
 0x678   : > { %8717 = vmatpush3.bf16.xpose.msk.msra.mxu0 %vm9764_vm2, %v8712_v15  ;;  %8296 = vmatprep.mubr.msk.f32.mxu0 %vm513_vm1, %v4092_v0  ;;  %v9094_v42 = vunpack.i.h.bf16 %v10496_v4  ;;  %v9093_v20 = vunpack.i.l.bf16 %v10496_v4 }
 0x67b   : > { %v4274_v35 = vpop.permute.xlu0 %4273 }
 0x67f   : > { %8297 = vmatmul.mubr.msk.f32.vlgmr.msra.gmra.mrb[40].mxu0 %vm513_vm1, %v4094_v54  ;;  %v4365_v13 = vpop.permute.xlu0 %4364 }
 0x680   : > { %8310 = vmatprep.mubr.msk.f32.mxu0 %vm513_vm1, %v4274_v35 }
 0x683   : > { %v9097_v14 = vpop.permute.xlu0 %9096 }
 0x684   : > { %v9099_v19 = vunpack.i.h.bf16 %v9097_v14  ;;  %v9098_v7 = vunpack.i.l.bf16 %v9097_v14 }
 0x693   : > { %v2966_v5 = vpop.xlane.xlu1 %2965 }
 0x694   : > { %9337 = vrcp.f32 %v2966_v5 }
 0x697   : > { %v2981_v50 = vpop.xlane.xlu1 %2980 }
 0x698   : > { %9339 = vrcp.f32 %v2981_v50 }
 0x69e   : > { %v9338_v8 = vpop.eup %9337 }
 0x69f   : > { %v3008_v17 = vmul.f32 %v9338_v8, %v10381_v22 }
 0x6a1   : > { %8247 = vmatprep.mubr.msk.f32.mxu1 %vm1220_vm3, %v3008_v17  ;;  %v8730_v17 = vpack.c.bf16 %v9094_v42, %v9093_v20 }
 0x6a2   : > { %8248 = vmatmul.mubr.msk.f32.vlgmr.msra.gmra.mrb[40].mxu1 %vm1220_vm3, %v3009_v40  ;;  %v9340_v22 = vpop.eup %9339 }
 0x6a3   : > { %8687 = vmatpush3.bf16.msra.mxu1 %v8684_v34  ;;  %v3013_v27 = vmul.f32 %v9340_v22, %v10387_v9  ;;  %v8736_v9 = vpack.c.bf16 %v9099_v19, %v9098_v7 }
 0x6a4   : > { %8696 = vmatprep.subr.msk.bf16.mxu1 %vm9764_vm2, %v8694_v38 }
 0x6c4   : > { %v2978_v43 = vpop.xlane.xlu1 %2977 }
 0x6c5   : > { %9341 = vrcp.f32 %v2978_v43 }
 0x6c8   : > { %v9082_v63 = vpop.permute.xlu1 %9081 }
 0x6c9   : > { %v9084_v11 = vunpack.i.h.bf16 %v9082_v63  ;;  %v9083_v0 = vunpack.i.l.bf16 %v9082_v63 }
 0x6cb   : > { %v8718_v12 = vpack.c.bf16 %v9084_v11, %v9083_v0 }
 0x6cc   : > { %v4003_v6 = vpop.permute.xlu1 %4002 }
 0x6cf   : > { %v9342_v1 = vpop.eup %9341 }
 0x6d0   : > { %v9087_v24 = vpop.permute.xlu1 %9086  ;;  %v3012_v34 = vmul.f32 %v9342_v1, %v10406_v16  ;;  %v9107_v16 = vpop.permute.xlu0 %9106 }
 0x6d1   : > { %v9089_v53 = vunpack.i.h.bf16 %v9087_v24  ;;  %v9088_v3 = vunpack.i.l.bf16 %v9087_v24  ;;  %v9109_v35 = vunpack.i.h.bf16 %v9107_v16  ;;  %v9108_v5 = vunpack.i.l.bf16 %v9107_v16 }
 0x6d2   : > { %8261 = vmatprep.mubr.msk.f32.mxu1 %vm1220_vm3, %v3012_v34 }
 0x6d3   : > { %v8724_v30 = vpack.c.bf16 %v9089_v53, %v9088_v3  ;;  %8262 = vmatmul.mubr.msk.f32.vlgmr.msra.gmra.mrb[42].mxu1 %vm1220_vm3, %v3013_v27  ;;  %v10534_v8 = vpack.c.bf16 %v9109_v35, %v9108_v5  ;;  %v3712_v27 = vld [vmem:[#allocation2 + $0x108] sm:$0xff]  ;;  %v3715_v5 = vld [vmem:[#allocation2 + $0x120] sm:$0xff] }
 0x6d4   : > { %8699 = vmatpush3.bf16.xpose.msk.msra.mxu1 %vm9764_vm2, %v8694_v38  ;;  %v4183_v15 = vpop.permute.xlu1 %4182  ;;  %8275 = vmatprep.mubr.msk.f32.mxu1 %vm513_vm1, %v10453_v21 }
 0x6d5   : > { %8708 = vmatprep.subr.msk.bf16.mxu1 %vm9764_vm2, %v8706_v48  ;;  %8726 = vmatprep.subr.msk.bf16.mxu0 %vm9764_vm2, %v8724_v30 }
 0x6d6   : > { %8729 = vmatpush3.bf16.xpose.msk.msra.mxu0 %vm9764_vm2, %v8724_v30 }
 0x6d7   : > { %8737 = vmatprep.subr.bf16.mxu0 %v8736_v9 }
 0x6d8   : > { %v4185_v54 = vpop.permute.xlu1 %4184 }
 0x6db   : > { %8276 = vmatmul.mubr.msk.f32.vlgmr.msra.gmra.mrb[44].mxu1 %vm513_vm1, %v10476_v26 }
 0x6dc   : > { %8711 = vmatpush3.bf16.xpose.msk.msra.mxu1 %vm9764_vm2, %v8706_v48  ;;  %8289 = vmatprep.mubr.msk.f32.mxu1 %vm513_vm1, %v10482_v32  ;;  %v4276_v21 = vpop.permute.xlu1 %4275  ;;  %v3711_v48 = vld [vmem:[#allocation2 + $0x100] sm:$0xff] }
 0x6dd   : > { %8720 = vmatprep.subr.msk.bf16.mxu1 %vm9764_vm2, %v8718_v12  ;;  %8311 = vmatmul.mubr.msk.f32.vlgmr.msra.gmra.mrb[42].mxu0 %vm513_vm1, %v4276_v21 }
 0x6de   : > { %8739 = vmatpush3.bf16.msra.mxu0 %v8736_v9 }
 0x6df   : > { %8745 = vmatprep.subr.bf16.mxu0 %v10534_v8 }
 0x6e0   : > { %v4367_v26 = vpop.permute.xlu1 %4366 }
 0x6e3   : > { %8290 = vmatmul.mubr.msk.f32.vlgmr.msra.gmra.mrb[46].mxu1 %vm513_vm1, %v4003_v6 }
 0x6e4   : > { %8723 = vmatpush3.bf16.xpose.msk.msra.mxu1 %vm9764_vm2, %v8718_v12  ;;  %8303 = vmatprep.mubr.msk.f32.mxu1 %vm513_vm1, %v4183_v15  ;;  %v9102_v32 = vpop.permute.xlu1 %9101 }
 0x6e5   : > { %8732 = vmatprep.subr.msk.bf16.mxu1 %vm9764_vm2, %v8730_v17  ;;  %v9104_v40 = vunpack.i.h.bf16 %v9102_v32  ;;  %v9103_v38 = vunpack.i.l.bf16 %v9102_v32 }
 0x6e7   : > { %v8740_v4 = vpack.c.bf16 %v9104_v40, %v9103_v38 }
 0x6e8   : > { %v9112_v50 = vpop.permute.xlu1 %9111 }
 0x6e9   : > { %v9114_v43 = vunpack.i.h.bf16 %v9112_v50  ;;  %v9113_v63 = vunpack.i.l.bf16 %v9112_v50 }
 0x6eb   : > { %8304 = vmatmul.mubr.msk.f32.vlgmr.msra.gmra.mrb[48].mxu1 %vm513_vm1, %v4185_v54  ;;  %v10550_v6 = vpack.c.bf16 %v9114_v43, %v9113_v63  ;;  %v3716_v54 = vld [vmem:[#allocation2 + $0x128] sm:$0xff]  ;;  %v3714_v43 = vld [vmem:[#allocation2 + $0x118] sm:$0xff]  ;;  %v3713_v63 = vld [vmem:[#allocation2 + $0x110] sm:$0xff] }
 0x6ec   : > { %8735 = vmatpush3.bf16.xpose.msk.msra.mxu1 %vm9764_vm2, %v8730_v17  ;;  %8317 = vmatprep.mubr.msk.f32.mxu1 %vm513_vm1, %v4365_v13 }
 0x6ed   : > { %8741 = vmatprep.subr.bf16.mxu1 %v8740_v4 }
 0x6f3   : > { %8318 = vmatmul.mubr.msk.f32.vlgmr.msra.gmra.mrb[50].mxu1 %vm513_vm1, %v4367_v26 }
 0x6f4   : > { %8743 = vmatpush3.bf16.msra.mxu1 %v8740_v4 }
 0x6f5   : > { %8749 = vmatprep.subr.bf16.mxu1 %v10550_v6 }
 0x70d   : > { %v10553_v14 = vpop.f32.mrb[28].mxu0 }
 0x70e   : > { %11435 = vst [vmem:[#allocation21_spill] sm:$0xff] %v10553_v14  ;;  %v10555_v22 = vpop.f32.mrb[29].mxu0 }
 0x711   : > { %v10557_v1 = vpop.f32.mrb[30].mxu0 }
 0x712   : > { %11436 = vst [vmem:[#allocation22_spill] sm:$0xff] %v10557_v1  ;;  %v10559_v18 = vpop.f32.mrb[31].mxu0 }
 0x72c   : > { %v10561_v10 = vpop.f32.mrb[36].mxu1 }
 0x72d   : > { %11437 = vst [vmem:[#allocation23_spill] sm:$0xff] %v10561_v10  ;;  %v10563_v13 = vpop.f32.mrb[37].mxu1 }
 0x731   : > { %v10565_v19 = vpop.f32.mrb[32].mxu0 }
 0x732   : > { %11438 = vst [vmem:[#allocation24_spill] sm:$0xff] %v10565_v19  ;;  %v10567_v24 = vpop.f32.mrb[33].mxu0 }
 0x734   : > { %v10569_v34 = vpop.f32.mrb[38].mxu1 }
 0x735   : > { %11439 = vst [vmem:[#allocation25_spill] sm:$0xff] %v10569_v34  ;;  %v10571_v7 = vpop.f32.mrb[39].mxu1 }
 0x738   : > { %v10573_v53 = vpop.f32.mrb[34].mxu0 }
 0x739   : > { %11440 = vst [vmem:[#allocation26_spill] sm:$0xff] %v10573_v53  ;;  %v10575_v3 = vpop.f32.mrb[35].mxu0 }
 0x73a   : > { %11441 = vst [vmem:[#allocation27_spill] sm:$0xff] %v10575_v3  ;;  %v3725_v3 = vld [vmem:[#allocation2 + $0x170] sm:$0xff] }
 0x742   : > { %v8270_v30 = vpop.f32.mrb[36].mxu0 }
 0x743   : > { %v10577_v15 = vadd.f32 %v8270_v30, %v3712_v27  ;;  %v3809_v9 = vpop.f32.mrb[37].mxu0 }
 0x744   : > { %v10579_v16 = vadd.f32 %v3809_v9, %v3711_v48  ;;  %v3720_v48 = vld [vmem:[#allocation2 + $0x148] sm:$0xff] }
 0x745   : > { %v4458_v11 = vsel %vm1220_vm3, %v10577_v15, -inf }
 0x746   : > { %4459 = vmax.xlane.f32.xlu1 %v4458_v11  ;;  %v4455_v0 = vsel %vm1220_vm3, %v10579_v16, -inf }
 0x747   : > { %4456 = vmax.xlane.f32.xlu0 %v4455_v0 }
 0x74a   : > { %v8284_v35 = vpop.f32.mrb[38].mxu0 }
 0x74b   : > { %v10585_v12 = vadd.f32 %v8284_v35, %v3716_v54  ;;  %v3991_v21 = vpop.f32.mrb[39].mxu0 }
 0x74c   : > { %v10587_v42 = vadd.f32 %v3991_v21, %v3715_v5 }
 0x74d   : > { %v4470_v20 = vsel %vm1220_vm3, %v10585_v12, -inf }
 0x74e   : > { %4471 = vmax.xlane.f32.xlu0 %v4470_v20  ;;  %v4467_v26 = vsel %vm1220_vm3, %v10587_v42, -inf  ;;  %v3719_v20 = vld [vmem:[#allocation2 + $0x140] sm:$0xff] }
 0x752   : > { %v8298_v17 = vpop.f32.mrb[40].mxu0  ;;  %4468 = vmax.xlane.f32.xlu0 %v4467_v26  ;;  %v3718_v26 = vld [vmem:[#allocation2 + $0x138] sm:$0xff] }
 0x753   : > { %v4173_v32 = vpop.f32.mrb[41].mxu0  ;;  %v10607_v5 = vadd.f32 %v8298_v17, %v3720_v48 }
 0x754   : > { %v10611_v23 = vadd.f32 %v4173_v32, %v3719_v20  ;;  %v3722_v20 = vld [vmem:[#allocation2 + $0x158] sm:$0xff] }
 0x756   : > { %v4479_v32 = vsel %vm1220_vm3, %v10611_v23, -inf }
 0x775   : > { %v10593_v40 = vpop.f32.mrb[40].mxu1 }
 0x776   : > { %11442 = vst [vmem:[#allocation28_spill] sm:$0xff] %v10593_v40  ;;  %v10595_v38 = vpop.f32.mrb[41].mxu1 }
 0x777   : > { %11443 = vst [vmem:[#allocation29_spill] sm:$0xff] %v10595_v38 }
 0x7a6   : > { %v10597_v4 = vpop.f32.mrb[42].mxu1 }
 0x7a7   : > { %11444 = vst [vmem:[#allocation30_spill] sm:$0xff] %v10597_v4  ;;  %v10599_v50 = vpop.f32.mrb[43].mxu1 }
 0x7a8   : > { %11445 = vst [vmem:[#allocation31_spill] sm:$0xff] %v10599_v50 }
 0x7ae   : > { %v8277_v27 = vpop.f32.mrb[44].mxu1 }
 0x7af   : > { %v10601_v30 = vadd.f32 %v8277_v27, %v3714_v43  ;;  %v3900_v9 = vpop.f32.mrb[45].mxu1  ;;  %v3717_v27 = vld [vmem:[#allocation2 + $0x130] sm:$0xff] }
 0x7b0   : > { %v10603_v11 = vadd.f32 %v3900_v9, %v3713_v63  ;;  %v8312_v0 = vpop.f32.mrb[42].mxu0  ;;  %v4482_v63 = vsel %vm1220_vm3, %v10607_v5, -inf  ;;  %v3724_v9 = vld [vmem:[#allocation2 + $0x168] sm:$0xff] }
 0x7b1   : > { %v4464_v54 = vsel %vm1220_vm3, %v10601_v30, -inf  ;;  %v4355_v35 = vpop.f32.mrb[43].mxu0 }
 0x7b2   : > { %4465 = vmax.xlane.f32.xlu1 %v4464_v54  ;;  %v4461_v21 = vsel %vm1220_vm3, %v10603_v11, -inf  ;;  %v10621_v54 = vadd.f32 %v8312_v0, %v3724_v9 }
 0x7b3   : > { %4462 = vmax.xlane.f32.xlu0 %v4461_v21  ;;  %v3723_v21 = vld [vmem:[#allocation2 + $0x160] sm:$0xff] }
 0x7b4   : > { %v10625_v40 = vadd.f32 %v4355_v35, %v3723_v21  ;;  %v3721_v21 = vld [vmem:[#allocation2 + $0x150] sm:$0xff] }
 0x7b6   : > { %v8291_v43 = vpop.f32.mrb[46].mxu1 }
 0x7b7   : > { %v10615_v4 = vadd.f32 %v8291_v43, %v3718_v26  ;;  %v4082_v53 = vpop.f32.mrb[47].mxu1  ;;  %4483 = vmax.xlane.f32.xlu0 %v4482_v63  ;;  %v4491_v63 = vsel %vm1220_vm3, %v10625_v40, -inf }
 0x7b8   : > { %v10617_v17 = vadd.f32 %v4082_v53, %v3717_v27  ;;  %v4494_v53 = vsel %vm1220_vm3, %v10621_v54, -inf }
 0x7b9   : > { %v4476_v48 = vsel %vm1220_vm3, %v10615_v4, -inf }
 0x7ba   : > { %4477 = vmax.xlane.f32.xlu1 %v4476_v48  ;;  %v4473_v26 = vsel %vm1220_vm3, %v10617_v17, -inf }
 0x7bb   : > { %4480 = vmax.xlane.f32.xlu0 %v4479_v32  ;;  %v3726_v32 = vld [vmem:[#allocation2 + $0x178] sm:$0xff] }
 0x7be   : > { %v8305_v43 = vpop.f32.mrb[48].mxu1  ;;  %4474 = vmax.xlane.f32.xlu1 %v4473_v26 }
 0x7bf   : > { %v10631_v27 = vadd.f32 %v8305_v43, %v3722_v20  ;;  %v4264_v0 = vpop.f32.mrb[49].mxu1  ;;  %4495 = vmax.xlane.f32.xlu0 %v4494_v53 }
 0x7c0   : > { %v10641_v20 = vadd.f32 %v4264_v0, %v3721_v21  ;;  %v10655_v0 = vpop.permute.xlu0 %9116 }
 0x7c1   : > { %v4488_v9 = vsel %vm1220_vm3, %v10631_v27, -inf }
 0x7c2   : > { %4492 = vmax.xlane.f32.xlu1 %v4491_v63  ;;  %v4485_v43 = vsel %vm1220_vm3, %v10641_v20, -inf  ;;  %v10659_v63 = vpop.permute.xlu1 %9121 }
 0x7c3   : > { %4489 = vmax.xlane.f32.xlu0 %v4488_v9 }
 0x7c6   : > { %v8319_v35 = vpop.f32.mrb[50].mxu1 }
 0x7c7   : > { %v4446_v48 = vpop.f32.mrb[51].mxu1  ;;  %v10643_v26 = vadd.f32 %v8319_v35, %v3726_v32 }
 0x7c8   : > { %v10665_v14 = vadd.f32 %v4446_v48, %v3725_v3 }
 0x7c9   : > { %v4500_v53 = vsel %vm1220_vm3, %v10643_v26, -inf }
 0x7d3   : > { %9131 = vrot.lane.b32.xlu1 %v9751_v62, %s9521_s15  ;;  %v4460_v35 = vpop.xlane.xlu1 %4459 }
 0x7d4   : > { %v4457_v9 = vpop.xlane.xlu0 %4456  ;;  %v4504_v32 = vsub.f32 %v10577_v15, %v4460_v35  ;;  %v4497_v15 = vsel %vm1220_vm3, %v10665_v14, -inf }
 0x7d9   : > { %9126 = vrot.lane.b32.xlu0 %v9728_v57, %s9521_s15 }
 0x7db   : > { %v4472_v21 = vpop.xlane.xlu0 %4471 }
 0x7df   : > { %v4469_v19 = vpop.xlane.xlu0 %4468 }
 0x7e0   : > { %v4507_v50 = vsub.f32 %v10587_v42, %v4469_v19 }
 0x7e2   : > { %v4527_v10 = vmul.f32 1.442695, %v4507_v50 }
 0x7f7   : > { %4486 = vmax.xlane.f32.xlu1 %v4485_v43  ;;  %v4503_v43 = vsub.f32 %v10579_v16, %v4457_v9 }
 0x7f8   : > { %4501 = vmax.xlane.f32.xlu0 %v4500_v53  ;;  %v4521_v53 = vmul.f32 1.442695, %v4504_v32 }
 0x7f9   : > { %v4519_v34 = vmul.f32 1.442695, %v4503_v43 }
 0x7fa   : > { %9343 = vpow2.f32 %v4521_v53 }
 0x7fb   : > { %9345 = vpow2.f32 %v4519_v34 }
 0x804   : > { %v10667_v38 = vpop.eup %9343 }
 0x805   : > { %v10671_v16 = vpop.eup %9345 }
 0x808   : > { %9141 = vrot.lane.b32.xlu1 %v9694_v39, %s9522_s18 }
 0x80c   : > { %5344 = vrot.lane.b32.xlu1 %v9672_v28, %s9523_s19  ;;  %v4508_v28 = vsub.f32 %v10585_v12, %v4472_v21  ;;  %v4554_v12 = vsel %vm1220_vm3, %v10667_v38, 0.0 }
 0x80e   : > { %9136 = vrot.lane.b32.xlu0 %v9680_v31, %s9522_s18  ;;  %v4529_v1 = vmul.f32 1.442695, %v4508_v28 }
 0x810   : > { %9347 = vpow2.f32 %v4529_v1  ;;  %v4551_v1 = vsel %vm1220_vm3, %v10671_v16, 0.0 }
 0x811   : > { %9349 = vpow2.f32 %v4527_v10 }
 0x812   : > { %9146 = vrot.lane.b32.xlu0 %v9712_v49, %s9522_s18 }
 0x81a   : > { %v10675_v9 = vpop.eup %9347 }
 0x81b   : > { %v4566_v10 = vsel %vm1220_vm3, %v10675_v9, 0.0  ;;  %v10681_v19 = vpop.eup %9349 }
 0x81c   : > { %v4563_v34 = vsel %vm1220_vm3, %v10681_v19, 0.0 }
 0x830   : > { %4498 = vmax.xlane.f32.xlu1 %v4497_v15 }
 0x831   : > { %4555 = vadd.xlane.f32.xlu0 %v4554_v12 }
 0x834   : > { %4552 = vadd.xlane.f32.xlu1 %v4551_v1 }
 0x835   : > { %4567 = vadd.xlane.f32.xlu0 %v4566_v10 }
 0x839   : > { %4564 = vadd.xlane.f32.xlu0 %v4563_v34 }
 0x83f   : > { %v4466_v3 = vpop.xlane.xlu1 %4465 }
 0x840   : > { %v4506_v42 = vsub.f32 %v10601_v30, %v4466_v3  ;;  %v4463_v50 = vpop.xlane.xlu0 %4462 }
 0x841   : > { %v4505_v48 = vsub.f32 %v10603_v11, %v4463_v50 }
 0x842   : > { %v4525_v35 = vmul.f32 1.442695, %v4506_v42 }
 0x843   : > { %v4523_v21 = vmul.f32 1.442695, %v4505_v48 }
 0x844   : > { %9351 = vpow2.f32 %v4525_v35  ;;  %v4484_v32 = vpop.xlane.xlu0 %4483 }
 0x845   : > { %v4512_v43 = vsub.f32 %v10607_v5, %v4484_v32  ;;  %9353 = vpow2.f32 %v4523_v21 }
 0x847   : > { %v4537_v53 = vmul.f32 1.442695, %v4512_v43  ;;  %v4478_v28 = vpop.xlane.xlu1 %4477 }
 0x848   : > { %v4510_v15 = vsub.f32 %v10615_v4, %v4478_v28  ;;  %v4481_v12 = vpop.xlane.xlu0 %4480 }
 0x849   : > { %9355 = vpow2.f32 %v4537_v53  ;;  %v4511_v1 = vsub.f32 %v10611_v23, %v4481_v12 }
 0x84a   : > { %v4533_v10 = vmul.f32 1.442695, %v4510_v15 }
 0x84b   : > { %v4535_v30 = vmul.f32 1.442695, %v4511_v1  ;;  %v4475_v34 = vpop.xlane.xlu1 %4474 }
 0x84c   : > { %9357 = vpow2.f32 %v4533_v10  ;;  %v4509_v11 = vsub.f32 %v10617_v17, %v4475_v34  ;;  %v4496_v3 = vpop.xlane.xlu0 %4495 }
 0x84d   : > { %9359 = vpow2.f32 %v4535_v30  ;;  %v4516_v42 = vsub.f32 %v10621_v54, %v4496_v3 }
 0x84e   : > { %v10692_v5 = vpop.eup %9351  ;;  %v4531_v50 = vmul.f32 1.442695, %v4509_v11 }
 0x84f   : > { %v4545_v48 = vmul.f32 1.442695, %v4516_v42  ;;  %v4493_v35 = vpop.xlane.xlu1 %4492  ;;  %v4560_v4 = vsel %vm1220_vm3, %v10692_v5, 0.0  ;;  %v10696_v21 = vpop.eup %9353 }
 0x850   : > { %9361 = vpow2.f32 %v4531_v50  ;;  %v4515_v23 = vsub.f32 %v10625_v40, %v4493_v35  ;;  %4561 = vadd.xlane.f32.xlu1 %v4560_v4  ;;  %v4490_v32 = vpop.xlane.xlu0 %4489  ;;  %v4557_v28 = vsel %vm1220_vm3, %v10696_v21, 0.0 }
 0x851   : > { %9363 = vpow2.f32 %v4545_v48  ;;  %v4514_v17 = vsub.f32 %v10631_v27, %v4490_v32 }
 0x852   : > { %v4543_v43 = vmul.f32 1.442695, %v4515_v23 }
 0x853   : > { %v10700_v54 = vpop.eup %9355  ;;  %v4541_v53 = vmul.f32 1.442695, %v4514_v17  ;;  %v10742_v35 = vpop.permute.xlu1 %9131 }
 0x854   : > { %9365 = vpow2.f32 %v4543_v43  ;;  %4558 = vadd.xlane.f32.xlu1 %v4557_v28  ;;  %v4578_v15 = vsel %vm1220_vm3, %v10700_v54, 0.0  ;;  %v9127_v4 = vpop.permute.xlu0 %9126 }
 0x855   : > { %9367 = vpow2.f32 %v4541_v53  ;;  %4579 = vadd.xlane.f32.xlu0 %v4578_v15 }
 0x856   : > { %v10706_v40 = vpop.eup %9357 }
 0x857   : > { %v10708_v12 = vpop.eup %9359  ;;  %v4572_v27 = vsel %vm1220_vm3, %v10706_v40, 0.0 }
 0x858   : > { %4573 = vadd.xlane.f32.xlu1 %v4572_v27  ;;  %v4575_v1 = vsel %vm1220_vm3, %v10708_v12, 0.0 }
 0x859   : > { %4576 = vadd.xlane.f32.xlu0 %v4575_v1 }
 0x85a   : > { %v10714_v10 = vpop.eup %9361 }
 0x85b   : > { %v10716_v30 = vpop.eup %9363  ;;  %v4569_v34 = vsel %vm1220_vm3, %v10714_v10, 0.0 }
 0x85c   : > { %4570 = vadd.xlane.f32.xlu1 %v4569_v34  ;;  %v4590_v11 = vsel %vm1220_vm3, %v10716_v30, 0.0 }
 0x85d   : > { %4591 = vadd.xlane.f32.xlu0 %v4590_v11 }
 0x85e   : > { %v10722_v3 = vpop.eup %9365 }
 0x85f   : > { %v10724_v42 = vpop.eup %9367  ;;  %v4587_v50 = vsel %vm1220_vm3, %v10722_v3, 0.0 }
 0x860   : > { %4588 = vadd.xlane.f32.xlu1 %v4587_v50  ;;  %v4584_v48 = vsel %vm1220_vm3, %v10724_v42, 0.0 }
 0x861   : > { %4585 = vadd.xlane.f32.xlu0 %v4584_v48  ;;  %v9119_v48 = vunpack.i.h.bf16 %v10655_v0 }
 0x871   : > { %9151 = vrot.lane.b32.xlu1 %v9732_v58, %s9522_s18 }
 0x875   : > { %5437 = vrot.lane.b32.xlu1 %v9684_v33, %s9523_s19 }
 0x877   : > { %5346 = vrot.lane.b32.xlu0 %v9670_v25, %s9523_s19 }
 0x879   : > { %5526 = vrot.lane.b32.xlu1 %v9698_v44, %s9523_s19 }
 0x87b   : > { %5435 = vrot.lane.b32.xlu0 %v9686_v36, %s9523_s19 }
 0x87f   : > { %9156 = vrot.lane.b32.xlu0 %v9708_v47, %s9522_s18 }
 0x883   : > { %5528 = vrot.lane.b32.xlu0 %v9696_v41, %s9523_s19 }
 0x884   : > { %v4487_v23 = vpop.xlane.xlu1 %4486 }
 0x885   : > { %v4513_v33 = vsub.f32 %v10641_v20, %v4487_v23  ;;  %v4502_v25 = vpop.xlane.xlu0 %4501  ;;  %v9118_v23 = vunpack.i.l.bf16 %v10655_v0 }
 0x886   : > { %v4518_v32 = vsub.f32 %v10643_v26, %v4502_v25 }
 0x887   : > { %5617 = vrot.lane.b32.xlu0 %v9720_v56, %s9523_s19  ;;  %v4539_v44 = vmul.f32 1.442695, %v4513_v33 }
 0x888   : > { %v4549_v36 = vmul.f32 1.442695, %v4518_v32  ;;  %v10768_v26 = vpop.permute.xlu1 %9141 }
 0x889   : > { %9369 = vpow2.f32 %v4539_v44 }
 0x88a   : > { %9371 = vpow2.f32 %v4549_v36  ;;  %v9129_v36 = vunpack.i.h.bf16 %v9127_v4 }
 0x88b   : > { %9166 = vrot.lane.b32.xlu0 %v9728_v57, %s9522_s18 }
 0x88f   : > { %5710 = vrot.lane.b32.xlu0 %v9690_v37, %s9523_s19 }
 0x893   : > { %5799 = vrot.lane.b32.xlu0 %v9718_v55, %s9523_s19  ;;  %v10758_v41 = vpop.eup %9369  ;;  %v10770_v55 = vpop.permute.xlu0 %9136 }
 0x894   : > { %v4581_v56 = vsel %vm1220_vm3, %v10758_v41, 0.0  ;;  %v10764_v20 = vpop.eup %9371 }
 0x895   : > { %v4596_v37 = vsel %vm1220_vm3, %v10764_v20, 0.0 }
 0x897   : > { %5890 = vrot.lane.b32.xlu0 %v9704_v46, %s9523_s19  ;;  %v10772_v46 = vpop.permute.xlu1 %5344  ;;  %v10774_v17 = vpop.permute.xlu0 %9146 }
 0x89b   : > { %5981 = vrot.lane.b32.xlu0 %v9740_v60, %s9523_s19 }
 0x89d   : > { %4582 = vadd.xlane.f32.xlu1 %v4581_v56  ;;  %v9128_v56 = vunpack.i.l.bf16 %v9127_v4 }
 0x8a1   : > { %4597 = vadd.xlane.f32.xlu1 %v4596_v37  ;;  %v8752_v37 = vpack.c.bf16 %v9119_v48, %v9118_v23 }
 0x8bd   : > { %v4499_v43 = vpop.xlane.xlu1 %4498 }
 0x8be   : > { %v4517_v60 = vsub.f32 %v10665_v14, %v4499_v43  ;;  %v4556_v53 = vpop.xlane.xlu0 %4555 }
 0x8bf   : > { %9373 = vrcp.f32 %v4556_v53 }
 0x8c0   : > { %v4547_v28 = vmul.f32 1.442695, %v4517_v60 }
 0x8c1   : > { %v4553_v15 = vpop.xlane.xlu1 %4552 }
 0x8c2   : > { %9375 = vpow2.f32 %v4547_v28  ;;  %v4568_v27 = vpop.xlane.xlu0 %4567 }
 0x8c3   : > { %9377 = vrcp.f32 %v4553_v15 }
 0x8c4   : > { %9379 = vrcp.f32 %v4568_v27  ;;  %v9124_v27 = vunpack.i.h.bf16 %v10659_v63 }
 0x8c6   : > { %v4565_v1 = vpop.xlane.xlu0 %4564 }
 0x8c7   : > { %9381 = vrcp.f32 %v4565_v1 }
 0x8c9   : > { %v9374_v34 = vpop.eup %9373 }
 0x8ca   : > { %v4616_v25 = vmul.f32 %v9374_v34, %v10667_v38  ;;  %v8760_v38 = vpack.c.bf16 %v9129_v36, %v9128_v56  ;;  %v9133_v36 = vunpack.i.l.bf16 %v10742_v35 }
 0x8cc   : > { %v10777_v11 = vpop.eup %9375 }
 0x8cd   : > { %v9378_v50 = vpop.eup %9377  ;;  %v4593_v14 = vsel %vm1220_vm3, %v10777_v11, 0.0 }
 0x8ce   : > { %4594 = vadd.xlane.f32.xlu1 %v4593_v14  ;;  %v4615_v33 = vmul.f32 %v9378_v50, %v10671_v16  ;;  %v9380_v44 = vpop.eup %9379 }
 0x8cf   : > { %v4620_v43 = vmul.f32 %v9380_v44, %v10675_v9 }
 0x8d0   : > { %8324 = vmatprep.mubr.msk.f32.mxu0 %vm1220_vm3, %v4615_v33  ;;  %v9138_v33 = vunpack.i.l.bf16 %v10770_v55 }
 0x8d1   : > { %v9382_v32 = vpop.eup %9381  ;;  %8325 = vmatmul.mubr.msk.f32.vlgmr.msra.gmra.mrb[44].mxu0 %vm1220_vm3, %v4616_v25 }
 0x8d2   : > { %8747 = vmatpush3.bf16.msra.mxu0 %v10534_v8  ;;  %v4619_v0 = vmul.f32 %v9382_v32, %v10681_v19  ;;  %v9134_v32 = vunpack.i.h.bf16 %v10742_v35 }
 0x8d3   : > { %8753 = vmatprep.subr.bf16.mxu0 %v8752_v37 }
 0x8d4   : > { %8338 = vmatprep.mubr.msk.f32.mxu0 %vm1220_vm3, %v4619_v0  ;;  %v8764_v35 = vpack.c.bf16 %v9134_v32, %v9133_v36 }
 0x8d5   : > { %8339 = vmatmul.mubr.msk.f32.vlgmr.msra.gmra.mrb[46].mxu0 %vm1220_vm3, %v4620_v43 }
 0x8d6   : > { %8755 = vmatpush3.bf16.msra.mxu0 %v8752_v37  ;;  %v9149_v37 = vunpack.i.h.bf16 %v10774_v17 }
 0x8d7   : > { %8761 = vmatprep.subr.bf16.mxu0 %v8760_v38 }
 0x8dd   : > { %v4562_v16 = vpop.xlane.xlu1 %4561 }
 0x8de   : > { %9383 = vrcp.f32 %v4562_v16 }
 0x8df   : > { %9161 = vrot.lane.b32.xlu1 %v9744_v61, %s9522_s18 }
 0x8e1   : > { %v4559_v4 = vpop.xlane.xlu1 %4558 }
 0x8e2   : > { %9385 = vrcp.f32 %v4559_v4  ;;  %v4580_v8 = vpop.xlane.xlu0 %4579 }
 0x8e3   : > { %5619 = vrot.lane.b32.xlu1 %v9716_v52, %s9523_s19  ;;  %9387 = vrcp.f32 %v4580_v8  ;;  %v9123_v52 = vunpack.i.l.bf16 %v10659_v63  ;;  %v9139_v63 = vunpack.i.h.bf16 %v10770_v55 }
 0x8e5   : > { %v4574_v19 = vpop.xlane.xlu1 %4573  ;;  %v8756_v23 = vpack.c.bf16 %v9124_v27, %v9123_v52  ;;  %v8768_v55 = vpack.c.bf16 %v9139_v63, %v9138_v33  ;;  %v9144_v27 = vunpack.i.h.bf16 %v10768_v26  ;;  %v9143_v52 = vunpack.i.l.bf16 %v10768_v26 }
 0x8e6   : > { %v4577_v9 = vpop.xlane.xlu0 %4576 }
 0x8e7   : > { %9389 = vrcp.f32 %v4577_v9  ;;  %5708 = vrot.lane.b32.xlu1 %v9674_v29, %s9523_s19 }
 0x8e8   : > { %9391 = vrcp.f32 %v4574_v19  ;;  %v9384_v28 = vpop.eup %9383 }
 0x8e9   : > { %v4571_v60 = vpop.xlane.xlu1 %4570  ;;  %v4618_v29 = vmul.f32 %v9384_v28, %v10692_v5 }
 0x8ea   : > { %9393 = vrcp.f32 %v4571_v60  ;;  %v4592_v53 = vpop.xlane.xlu0 %4591 }
 0x8eb   : > { %9171 = vrot.lane.b32.xlu1 %v9751_v62, %s9522_s18  ;;  %9395 = vrcp.f32 %v4592_v53 }
 0x8ec   : > { %v9386_v15 = vpop.eup %9385 }
 0x8ed   : > { %v4589_v1 = vpop.xlane.xlu1 %4588  ;;  %v4617_v34 = vmul.f32 %v9386_v15, %v10696_v21  ;;  %v9388_v48 = vpop.eup %9387 }
 0x8ee   : > { %9397 = vrcp.f32 %v4589_v1  ;;  %v10803_v50 = vpop.xlane.xlu0 %4585 }
 0x8ef   : > { %8331 = vmatprep.mubr.msk.f32.mxu1 %vm1220_vm3, %v4617_v34  ;;  %5801 = vrot.lane.b32.xlu1 %v9714_v51, %s9523_s19  ;;  %v4624_v51 = vmul.f32 %v9388_v48, %v10700_v54  ;;  %9399 = vrcp.f32 %v10803_v50 }
 0x8f0   : > { %8332 = vmatmul.mubr.msk.f32.vlgmr.msra.gmra.mrb[52].mxu1 %vm1220_vm3, %v4618_v29  ;;  %v8774_v29 = vpack.c.bf16 %v9144_v27, %v9143_v52 }
 0x8f1   : > { %v9390_v14 = vpop.eup %9389  ;;  %8751 = vmatpush3.bf16.msra.mxu1 %v10550_v6  ;;  %v10834_v0 = vpop.permute.xlu1 %9151 }
 0x8f2   : > { %8757 = vmatprep.subr.bf16.mxu1 %v8756_v23  ;;  %v5347_v21 = vpop.permute.xlu0 %5346  ;;  %v4623_v5 = vmul.f32 %v9390_v14, %v10708_v12  ;;  %v9392_v25 = vpop.eup %9391 }
 0x8f3   : > { %5892 = vrot.lane.b32.xlu1 %v9702_v45, %s9523_s19  ;;  %v4622_v56 = vmul.f32 %v9392_v25, %v10706_v40  ;;  %v9148_v40 = vunpack.i.l.bf16 %v10774_v17 }
 0x8f4   : > { %v9394_v44 = vpop.eup %9393  ;;  %8352 = vmatprep.mubr.msk.f32.mxu0 %vm1220_vm3, %v4623_v5 }
 0x8f5   : > { %8353 = vmatmul.mubr.msk.f32.vlgmr.msra.gmra.mrb[48].mxu0 %vm1220_vm3, %v4624_v51  ;;  %v4621_v6 = vmul.f32 %v9394_v44, %v10714_v10  ;;  %v9396_v45 = vpop.eup %9395  ;;  %v10845_v17 = vpop.permute.xlu1 %5437 }
 0x8f6   : > { %8763 = vmatpush3.bf16.msra.mxu0 %v8760_v38  ;;  %v10822_v12 = vpop.permute.xlu0 %5435  ;;  %v4628_v38 = vmul.f32 %v9396_v45, %v10716_v30 }
 0x8f7   : > { %8770 = vmatprep.subr.msk.bf16.mxu0 %vm9764_vm2, %v8768_v55  ;;  %8345 = vmatprep.mubr.msk.f32.mxu1 %vm1220_vm3, %v4621_v6 }
 0x8f8   : > { %v9398_v54 = vpop.eup %9397  ;;  %5983 = vrot.lane.b32.xlu1 %v9738_v59, %s9523_s19  ;;  %8346 = vmatmul.mubr.msk.f32.vlgmr.msra.gmra.mrb[54].mxu1 %vm1220_vm3, %v4622_v56  ;;  %v8780_v59 = vpack.c.bf16 %v9149_v37, %v9148_v40 }
 0x8f9   : > { %8759 = vmatpush3.bf16.msra.mxu1 %v8756_v23  ;;  %v4627_v10 = vmul.f32 %v9398_v54, %v10722_v3  ;;  %v5527_v8 = vpop.permute.xlu1 %5526  ;;  %v9400_v28 = vpop.eup %9399 }
 0x8fa   : > { %8765 = vmatprep.subr.bf16.mxu1 %v8764_v35  ;;  %v9157_v43 = vpop.permute.xlu0 %9156  ;;  %v4626_v34 = vmul.f32 %v9400_v28, %v10724_v42  ;;  %v9154_v42 = vunpack.i.h.bf16 %v10834_v0 }
 0x8fb   : > { %8366 = vmatprep.mubr.msk.f32.mxu0 %vm1220_vm3, %v4627_v10  ;;  %v9159_v30 = vunpack.i.h.bf16 %v9157_v43  ;;  %v9158_v16 = vunpack.i.l.bf16 %v9157_v43 }
 0x8fc   : > { %9176 = vrot.lane.b32.xlu1 %v9680_v31, %s9524_s20  ;;  %8367 = vmatmul.mubr.msk.f32.vlgmr.msra.gmra.mrb[50].mxu0 %vm1220_vm3, %v4628_v38 }
 0x8fd   : > { %8380 = vmatprep.mubr.msk.f32.mxu0 %vm513_vm1, %v10772_v46  ;;  %v8792_v31 = vpack.c.bf16 %v9159_v30, %v9158_v16 }
 0x8fe   : > { %v5529_v3 = vpop.permute.xlu0 %5528 }
 0x8ff   : > { %8773 = vmatpush3.bf16.xpose.msk.msra.mxu0 %vm9764_vm2, %v8768_v55 }
 0x900   : > { %8782 = vmatprep.subr.msk.bf16.mxu0 %vm9764_vm2, %v8780_v59 }
 0x902   : > { %v5618_v4 = vpop.permute.xlu0 %5617 }
 0x906   : > { %8381 = vmatmul.mubr.msk.f32.vlgmr.msra.gmra.mrb[52].mxu0 %vm513_vm1, %v5347_v21  ;;  %v9167_v19 = vpop.permute.xlu0 %9166  ;;  %v9153_v21 = vunpack.i.l.bf16 %v10834_v0 }
 0x907   : > { %8785 = vmatpush3.bf16.xpose.msk.msra.mxu0 %vm9764_vm2, %v8780_v59  ;;  %8394 = vmatprep.mubr.msk.f32.mxu0 %vm513_vm1, %v5527_v8  ;;  %v9169_v46 = vunpack.i.h.bf16 %v9167_v19  ;;  %v9168_v9 = vunpack.i.l.bf16 %v9167_v19 }
 0x908   : > { %8794 = vmatprep.subr.msk.bf16.mxu0 %vm9764_vm2, %v8792_v31  ;;  %v8786_v44 = vpack.c.bf16 %v9154_v42, %v9153_v21  ;;  %v5336_v42 = vld [vmem:[#allocation2 + $0x1c0] sm:$0xff] }
 0x909   : > { %v8804_v60 = vpack.c.bf16 %v9169_v46, %v9168_v9  ;;  %v5329_v9 = vld [vmem:[#allocation2 + $0x188] sm:$0xff] }
 0x90a   : > { %v5711_v23 = vpop.permute.xlu0 %5710 }
 0x90e   : > { %8395 = vmatmul.mubr.msk.f32.vlgmr.msra.gmra.mrb[54].mxu0 %vm513_vm1, %v5529_v3  ;;  %v5800_v63 = vpop.permute.xlu0 %5799 }
 0x90f   : > { %8797 = vmatpush3.bf16.xpose.msk.msra.mxu0 %vm9764_vm2, %v8792_v31 }
 0x910   : > { %8806 = vmatprep.subr.msk.bf16.mxu0 %vm9764_vm2, %v8804_v60 }
 0x912   : > { %v5891_v32 = vpop.permute.xlu0 %5890 }
 0x916   : > { %v5982_v43 = vpop.permute.xlu0 %5981 }
 0x92a   : > { %v4583_v53 = vpop.xlane.xlu1 %4582 }
 0x92b   : > { %9401 = vrcp.f32 %v4583_v53 }
 0x92e   : > { %v4598_v50 = vpop.xlane.xlu1 %4597 }
 0x92f   : > { %9403 = vrcp.f32 %v4598_v50 }
 0x935   : > { %v9402_v15 = vpop.eup %9401 }
 0x936   : > { %v4625_v1 = vmul.f32 %v9402_v15, %v10758_v41 }
 0x938   : > { %8359 = vmatprep.mubr.msk.f32.mxu1 %vm1220_vm3, %v4625_v1 }
 0x939   : > { %8360 = vmatmul.mubr.msk.f32.vlgmr.msra.gmra.mrb[56].mxu1 %vm1220_vm3, %v4626_v34  ;;  %v9404_v41 = vpop.eup %9403  ;;  %v5333_v34 = vld [vmem:[#allocation2 + $0x1a8] sm:$0xff] }
 0x93a   : > { %8767 = vmatpush3.bf16.msra.mxu1 %v8764_v35  ;;  %v4630_v51 = vmul.f32 %v9404_v41, %v10764_v20 }
 0x93b   : > { %8776 = vmatprep.subr.msk.bf16.mxu1 %vm9764_vm2, %v8774_v29 }
 0x95b   : > { %v4595_v48 = vpop.xlane.xlu1 %4594 }
 0x95c   : > { %9405 = vrcp.f32 %v4595_v48 }
 0x95f   : > { %v9162_v14 = vpop.permute.xlu1 %9161 }
 0x960   : > { %v9164_v20 = vunpack.i.h.bf16 %v9162_v14  ;;  %v9163_v36 = vunpack.i.l.bf16 %v9162_v14 }
 0x962   : > { %v8798_v6 = vpack.c.bf16 %v9164_v20, %v9163_v36  ;;  %v5330_v36 = vld [vmem:[#allocation2 + $0x190] sm:$0xff] }
 0x963   : > { %v5620_v26 = vpop.permute.xlu1 %5619 }
 0x966   : > { %v9406_v33 = vpop.eup %9405 }
 0x967   : > { %v5709_v5 = vpop.permute.xlu1 %5708  ;;  %v4629_v25 = vmul.f32 %v9406_v33, %v10777_v11 }
 0x968   : > { %8408 = vmatprep.mubr.msk.f32.mxu0 %vm513_vm1, %v5709_v5 }
 0x969   : > { %8373 = vmatprep.mubr.msk.f32.mxu1 %vm1220_vm3, %v4629_v25  ;;  %8409 = vmatmul.mubr.msk.f32.vlgmr.msra.gmra.mrb[56].mxu0 %vm513_vm1, %v5711_v23 }
 0x96a   : > { %8809 = vmatpush3.bf16.xpose.msk.msra.mxu0 %vm9764_vm2, %v8804_v60  ;;  %8374 = vmatmul.mubr.msk.f32.vlgmr.msra.gmra.mrb[58].mxu1 %vm1220_vm3, %v4630_v51  ;;  %v5328_v60 = vld [vmem:[#allocation2 + $0x180] sm:$0xff] }
 0x96b   : > { %8779 = vmatpush3.bf16.xpose.msk.msra.mxu1 %vm9764_vm2, %v8774_v29  ;;  %8422 = vmatprep.mubr.msk.f32.mxu0 %vm513_vm1, %v5891_v32  ;;  %v9172_v11 = vpop.permute.xlu1 %9171  ;;  %v5332_v29 = vld [vmem:[#allocation2 + $0x1a0] sm:$0xff] }
 0x96c   : > { %8387 = vmatprep.mubr.msk.f32.mxu1 %vm513_vm1, %v10822_v12  ;;  %8788 = vmatprep.subr.msk.bf16.mxu1 %vm9764_vm2, %v8786_v44  ;;  %v9174_v12 = vunpack.i.h.bf16 %v9172_v11  ;;  %v9173_v45 = vunpack.i.l.bf16 %v9172_v11  ;;  %v5331_v11 = vld [vmem:[#allocation2 + $0x198] sm:$0xff] }
 0x96e   : > { %v8810_v35 = vpack.c.bf16 %v9174_v12, %v9173_v45 }
 0x96f   : > { %v5802_v55 = vpop.permute.xlu1 %5801 }
 0x972   : > { %8388 = vmatmul.mubr.msk.f32.vlgmr.msra.gmra.mrb[60].mxu1 %vm513_vm1, %v10845_v17 }
 0x973   : > { %8791 = vmatpush3.bf16.xpose.msk.msra.mxu1 %vm9764_vm2, %v8786_v44  ;;  %8401 = vmatprep.mubr.msk.f32.mxu1 %vm513_vm1, %v5618_v4  ;;  %v5893_v56 = vpop.permute.xlu1 %5892 }
 0x974   : > { %8800 = vmatprep.subr.msk.bf16.mxu1 %vm9764_vm2, %v8798_v6  ;;  %8423 = vmatmul.mubr.msk.f32.vlgmr.msra.gmra.mrb[58].mxu0 %vm513_vm1, %v5893_v56 }
 0x977   : > { %v5984_v54 = vpop.permute.xlu1 %5983 }
 0x97a   : > { %8402 = vmatmul.mubr.msk.f32.vlgmr.msra.gmra.mrb[62].mxu1 %vm513_vm1, %v5620_v26 }
 0x97b   : > { %8803 = vmatpush3.bf16.xpose.msk.msra.mxu1 %vm9764_vm2, %v8798_v6  ;;  %8415 = vmatprep.mubr.msk.f32.mxu1 %vm513_vm1, %v5800_v63  ;;  %v9177_v10 = vpop.permute.xlu1 %9176 }
 0x97c   : > { %v9179_v37 = vunpack.i.h.bf16 %v9177_v10  ;;  %v9178_v40 = vunpack.i.l.bf16 %v9177_v10  ;;  %8812 = vmatprep.subr.msk.bf16.mxu1 %vm9764_vm2, %v8810_v35 }
 0x97e   : > { %v8816_v0 = vpack.c.bf16 %v9179_v37, %v9178_v40  ;;  %v5334_v40 = vld [vmem:[#allocation2 + $0x1b0] sm:$0xff] }
 0x980   : > { %8817 = vmatprep.subr.bf16.mxu0 %v8816_v0 }
 0x981   : > { %8819 = vmatpush3.bf16.msra.mxu0 %v8816_v0  ;;  %v5335_v0 = vld [vmem:[#allocation2 + $0x1b8] sm:$0xff] }
 0x982   : > { %8416 = vmatmul.mubr.msk.f32.vlgmr.msra.gmra.mrb[64].mxu1 %vm513_vm1, %v5802_v55 }
 0x983   : > { %8815 = vmatpush3.bf16.xpose.msk.msra.mxu1 %vm9764_vm2, %v8810_v35  ;;  %8429 = vmatprep.mubr.msk.f32.mxu1 %vm513_vm1, %v5982_v43  ;;  %v5337_v35 = vld [vmem:[#allocation2 + $0x1c8] sm:$0xff] }
 0x98a   : > { %8430 = vmatmul.mubr.msk.f32.vlgmr.msra.gmra.mrb[66].mxu1 %vm513_vm1, %v5984_v54 }
 0x9a4   : > { %v10905_v38 = vpop.f32.mrb[44].mxu0 }
 0x9a5   : > { %v10907_v59 = vpop.f32.mrb[45].mxu0 }
 0x9a8   : > { %v10909_v3 = vpop.f32.mrb[46].mxu0 }
 0x9a9   : > { %v10911_v17 = vpop.f32.mrb[47].mxu0 }
 0x9c3   : > { %v10913_v30 = vpop.f32.mrb[52].mxu1 }
 0x9c4   : > { %v10915_v16 = vpop.f32.mrb[53].mxu1 }
 0x9c8   : > { %v10917_v4 = vpop.f32.mrb[48].mxu0 }
 0x9c9   : > { %v10919_v2 = vpop.f32.mrb[49].mxu0 }
 0x9cb   : > { %v10921_v8 = vpop.f32.mrb[54].mxu1 }
 0x9cc   : > { %v10923_v31 = vpop.f32.mrb[55].mxu1 }
 0x9cf   : > { %v10925_v19 = vpop.f32.mrb[50].mxu0 }
 0x9d0   : > { %v10927_v46 = vpop.f32.mrb[51].mxu0 }
 0x9d9   : > { %v8382_v53 = vpop.f32.mrb[52].mxu0 }
 0x9da   : > { %v10929_v28 = vadd.f32 %v8382_v53, %v5329_v9  ;;  %v5426_v15 = vpop.f32.mrb[53].mxu0  ;;  %v5340_v9 = vld [vmem:[#allocation2 + $0x1e0] sm:$0xff] }
 0x9db   : > { %v10931_v27 = vadd.f32 %v5426_v15, %v5328_v60 }
 0x9dc   : > { %v6075_v52 = vsel %vm1220_vm3, %v10929_v28, -inf }
 0x9dd   : > { %6076 = vmax.xlane.f32.xlu1 %v6075_v52  ;;  %v6072_v1 = vsel %vm1220_vm3, %v10931_v27, -inf }
 0x9de   : > { %6073 = vmax.xlane.f32.xlu0 %v6072_v1  ;;  %v5341_v1 = vld [vmem:[#allocation2 + $0x1e8] sm:$0xff] }
 0x9e1   : > { %v8396_v50 = vpop.f32.mrb[54].mxu0 }
 0x9e2   : > { %v10937_v48 = vadd.f32 %v8396_v50, %v5333_v34  ;;  %v5608_v23 = vpop.f32.mrb[55].mxu0 }
 0x9e3   : > { %v10939_v14 = vadd.f32 %v5608_v23, %v5332_v29 }
 0x9e4   : > { %v6087_v26 = vsel %vm1220_vm3, %v10937_v48, -inf }
 0x9e5   : > { %6088 = vmax.xlane.f32.xlu0 %v6087_v26  ;;  %v6084_v63 = vsel %vm1220_vm3, %v10939_v14, -inf  ;;  %v5338_v26 = vld [vmem:[#allocation2 + $0x1d0] sm:$0xff] }
 0x9e6   : > { %6085 = vmax.xlane.f32.xlu1 %v6084_v63  ;;  %v5339_v63 = vld [vmem:[#allocation2 + $0x1d8] sm:$0xff] }
 0xa0c   : > { %v10945_v41 = vpop.f32.mrb[56].mxu1 }
 0xa0d   : > { %v10947_v33 = vpop.f32.mrb[57].mxu1 }
 0xa3c   : > { %v8410_v21 = vpop.f32.mrb[56].mxu0 }
 0xa3d   : > { %v10949_v5 = vpop.f32.mrb[58].mxu1  ;;  %v5790_v25 = vpop.f32.mrb[57].mxu0  ;;  %v10963_v10 = vadd.f32 %v8410_v21, %v5337_v35 }
 0xa3e   : > { %v10951_v51 = vadd.f32 %v5790_v25, %v5336_v42  ;;  %v10953_v44 = vpop.f32.mrb[59].mxu1 }
 0xa3f   : > { %v6099_v52 = vsel %vm1220_vm3, %v10963_v10, -inf }
 0xa40   : > { %v6096_v32 = vsel %vm1220_vm3, %v10951_v51, -inf }
 0xa41   : > { %6097 = vmax.xlane.f32.xlu1 %v6096_v32 }
 0xa45   : > { %v8389_v20 = vpop.f32.mrb[60].mxu1 }
 0xa46   : > { %v10957_v55 = vadd.f32 %v8389_v20, %v5331_v11  ;;  %v5517_v6 = vpop.f32.mrb[61].mxu1 }
 0xa47   : > { %v8424_v56 = vpop.f32.mrb[58].mxu0  ;;  %v10959_v12 = vadd.f32 %v5517_v6, %v5330_v36  ;;  %v5343_v6 = vld [vmem:[#allocation2 + $0x1f8] sm:$0xff] }
 0xa48   : > { %v5972_v45 = vpop.f32.mrb[59].mxu0  ;;  %v6081_v54 = vsel %vm1220_vm3, %v10957_v55, -inf  ;;  %v10977_v50 = vadd.f32 %v8424_v56, %v5341_v1 }
 0xa49   : > { %6082 = vmax.xlane.f32.xlu0 %v6081_v54  ;;  %v6078_v37 = vsel %vm1220_vm3, %v10959_v12, -inf  ;;  %v10973_v34 = vadd.f32 %v5972_v45, %v5340_v9 }
 0xa4a   : > { %v6111_v20 = vsel %vm1220_vm3, %v10977_v50, -inf }
 0xa4b   : > { %v6108_v21 = vsel %vm1220_vm3, %v10973_v34, -inf }
 0xa4d   : > { %v8403_v43 = vpop.f32.mrb[62].mxu1  ;;  %6079 = vmax.xlane.f32.xlu0 %v6078_v37 }
 0xa4e   : > { %v5699_v60 = vpop.f32.mrb[63].mxu1  ;;  %v10969_v15 = vadd.f32 %v8403_v43, %v5335_v0 }
 0xa4f   : > { %v10967_v53 = vadd.f32 %v5699_v60, %v5334_v40 }
 0xa50   : > { %v6093_v23 = vsel %vm1220_vm3, %v10969_v15, -inf }
 0xa51   : > { %6100 = vmax.xlane.f32.xlu0 %v6099_v52  ;;  %v6090_v29 = vsel %vm1220_vm3, %v10967_v53, -inf }
 0xa52   : > { %6091 = vmax.xlane.f32.xlu1 %v6090_v29 }
 0xa55   : > { %v8417_v42 = vpop.f32.mrb[64].mxu1  ;;  %6094 = vmax.xlane.f32.xlu0 %v6093_v23 }
 0xa56   : > { %v5881_v25 = vpop.f32.mrb[65].mxu1  ;;  %6109 = vmax.xlane.f32.xlu1 %v6108_v21  ;;  %v10985_v11 = vadd.f32 %v8417_v42, %v5339_v63 }
 0xa57   : > { %v10983_v32 = vadd.f32 %v5881_v25, %v5338_v26 }
 0xa58   : > { %v6105_v56 = vsel %vm1220_vm3, %v10985_v11, -inf }
 0xa59   : > { %6112 = vmax.xlane.f32.xlu0 %v6111_v20  ;;  %v6102_v36 = vsel %vm1220_vm3, %v10983_v32, -inf }
 0xa5a   : > { %6103 = vmax.xlane.f32.xlu1 %v6102_v36 }
 0xa5d   : > { %v8431_v45 = vpop.f32.mrb[66].mxu1  ;;  %6106 = vmax.xlane.f32.xlu0 %v6105_v56 }
 0xa5e   : > { %v10993_v54 = vadd.f32 %v8431_v45, %v5343_v6  ;;  %v6063_v35 = vpop.f32.mrb[67].mxu1 }
 0xa60   : > { %v6117_v37 = vsel %vm1220_vm3, %v10993_v54, -inf }
 0xa61   : > { %6118 = vmax.xlane.f32.xlu0 %v6117_v37 }
 0xa6a   : > { %v6077_v40 = vpop.xlane.xlu1 %6076 }
 0xa6b   : > { %9186 = vrot.lane.b32.xlu1 %v9712_v49, %s9524_s20  ;;  %v6074_v0 = vpop.xlane.xlu0 %6073  ;;  %v6121_v60 = vsub.f32 %v10929_v28, %v6077_v40  ;;  %v5342_v49 = vld [vmem:[#allocation2 + $0x1f0] sm:$0xff] }
 0xa6c   : > { %v6120_v43 = vsub.f32 %v10931_v27, %v6074_v0 }
 0xa6d   : > { %v6138_v23 = vmul.f32 1.442695, %v6121_v60 }
 0xa6e   : > { %v6136_v52 = vmul.f32 1.442695, %v6120_v43 }
 0xa70   : > { %9407 = vpow2.f32 %v6136_v52 }
 0xa71   : > { %9409 = vpow2.f32 %v6138_v23 }
 0xa72   : > { %v6089_v1 = vpop.xlane.xlu0 %6088 }
 0xa73   : > { %v6086_v9 = vpop.xlane.xlu1 %6085  ;;  %v6125_v26 = vsub.f32 %v10937_v48, %v6089_v1 }
 0xa74   : > { %v6124_v29 = vsub.f32 %v10939_v14, %v6086_v9 }
 0xa75   : > { %v6146_v42 = vmul.f32 1.442695, %v6125_v26 }
 0xa76   : > { %v6144_v63 = vmul.f32 1.442695, %v6124_v29 }
 0xa77   : > { %9181 = vrot.lane.b32.xlu0 %v9694_v39, %s9524_s20  ;;  %v11005_v39 = vadd.f32 %v6063_v35, %v5342_v49 }
 0xa78   : > { %9411 = vpow2.f32 %v6144_v63 }
 0xa79   : > { %9413 = vpow2.f32 %v6146_v42  ;;  %v6114_v27 = vsel %vm1220_vm3, %v11005_v39, -inf }
 0xa7a   : > { %v11009_v28 = vpop.eup %9407 }
 0xa7b   : > { %v11011_v21 = vpop.eup %9409  ;;  %v6168_v48 = vsel %vm1220_vm3, %v11009_v28, 0.0 }
 0xa7c   : > { %v6171_v25 = vsel %vm1220_vm3, %v11011_v21, 0.0 }
 0xa82   : > { %v11015_v14 = vpop.eup %9411 }
 0xa83   : > { %v11019_v20 = vpop.eup %9413  ;;  %v6180_v36 = vsel %vm1220_vm3, %v11015_v14, 0.0 }
 0xa84   : > { %v6183_v6 = vsel %vm1220_vm3, %v11019_v20, 0.0 }
 0xa8f   : > { %6115 = vmax.xlane.f32.xlu1 %v6114_v27 }
 0xa93   : > { %6169 = vadd.xlane.f32.xlu1 %v6168_v48 }
 0xa96   : > { %6172 = vadd.xlane.f32.xlu0 %v6171_v25 }
 0xa97   : > { %6181 = vadd.xlane.f32.xlu1 %v6180_v36 }
 0xa9a   : > { %6184 = vadd.xlane.f32.xlu0 %v6183_v6 }
 0xace   : > { %v6098_v56 = vpop.xlane.xlu1 %6097 }
 0xacf   : > { %v6128_v37 = vsub.f32 %v10951_v51, %v6098_v56 }
 0xad1   : > { %v6152_v9 = vmul.f32 1.442695, %v6128_v37 }
 0xad6   : > { %v6083_v45 = vpop.xlane.xlu0 %6082 }
 0xad7   : > { %v6123_v35 = vsub.f32 %v10957_v55, %v6083_v45 }
 0xad9   : > { %v6142_v40 = vmul.f32 1.442695, %v6123_v35 }
 0xada   : > { %v6080_v0 = vpop.xlane.xlu0 %6079 }
 0xadb   : > { %9415 = vpow2.f32 %v6142_v40  ;;  %v6122_v43 = vsub.f32 %v10959_v12, %v6080_v0 }
 0xadd   : > { %v6140_v60 = vmul.f32 1.442695, %v6122_v43 }
 0xade   : > { %v6101_v52 = vpop.xlane.xlu0 %6100 }
 0xadf   : > { %9417 = vpow2.f32 %v6140_v60  ;;  %v6129_v1 = vsub.f32 %v10963_v10, %v6101_v52  ;;  %v6092_v29 = vpop.xlane.xlu1 %6091 }
 0xae0   : > { %v6126_v23 = vsub.f32 %v10967_v53, %v6092_v29  ;;  %9419 = vpow2.f32 %v6152_v9 }
 0xae1   : > { %v6154_v26 = vmul.f32 1.442695, %v6129_v1 }
 0xae2   : > { %v6148_v63 = vmul.f32 1.442695, %v6126_v23  ;;  %v6095_v55 = vpop.xlane.xlu0 %6094 }
 0xae3   : > { %9421 = vpow2.f32 %v6154_v26  ;;  %v6127_v51 = vsub.f32 %v10969_v15, %v6095_v55  ;;  %v6110_v49 = vpop.xlane.xlu1 %6109 }
 0xae4   : > { %9423 = vpow2.f32 %v6148_v63  ;;  %v6132_v27 = vsub.f32 %v10973_v34, %v6110_v49 }
 0xae5   : > { %v11031_v42 = vpop.eup %9415  ;;  %v6150_v12 = vmul.f32 1.442695, %v6127_v51 }
 0xae6   : > { %v6113_v48 = vpop.xlane.xlu0 %6112  ;;  %v6177_v10 = vsel %vm1220_vm3, %v11031_v42, 0.0  ;;  %v6160_v15 = vmul.f32 1.442695, %v6132_v27 }
 0xae7   : > { %9425 = vpow2.f32 %v6150_v12  ;;  %v6133_v53 = vsub.f32 %v10977_v50, %v6113_v48  ;;  %v6104_v25 = vpop.xlane.xlu1 %6103  ;;  %6178 = vadd.xlane.f32.xlu0 %v6177_v10 }
 0xae8   : > { %v6130_v36 = vsub.f32 %v10983_v32, %v6104_v25 }
 0xae9   : > { %v11038_v6 = vpop.eup %9417  ;;  %v6162_v56 = vmul.f32 1.442695, %v6133_v53 }
 0xaea   : > { %v6156_v45 = vmul.f32 1.442695, %v6130_v36  ;;  %v6107_v35 = vpop.xlane.xlu0 %6106  ;;  %v6174_v34 = vsel %vm1220_vm3, %v11038_v6, 0.0  ;;  %v11042_v37 = vpop.eup %9419 }
 0xaeb   : > { %9427 = vpow2.f32 %v6162_v56  ;;  %v6131_v40 = vsub.f32 %v10985_v11, %v6107_v35  ;;  %v9187_v0 = vpop.permute.xlu1 %9186  ;;  %6175 = vadd.xlane.f32.xlu1 %v6174_v34  ;;  %v6192_v1 = vsel %vm1220_vm3, %v11042_v37, 0.0 }
 0xaec   : > { %9429 = vpow2.f32 %v6156_v45  ;;  %v9189_v50 = vunpack.i.h.bf16 %v9187_v0  ;;  %v9188_v43 = vunpack.i.l.bf16 %v9187_v0 }
 0xaed   : > { %v11045_v32 = vpop.eup %9421  ;;  %9431 = vpow2.f32 %v6160_v15  ;;  %v6158_v9 = vmul.f32 1.442695, %v6131_v40 }
 0xaee   : > { %v11047_v60 = vpack.c.bf16 %v9189_v50, %v9188_v43  ;;  %v6119_v52 = vpop.xlane.xlu0 %6118  ;;  %v6195_v29 = vsel %vm1220_vm3, %v11045_v32, 0.0  ;;  %v11053_v23 = vpop.eup %9423 }
 0xaef   : > { %v6135_v11 = vsub.f32 %v10993_v54, %v6119_v52  ;;  %6193 = vadd.xlane.f32.xlu1 %v6192_v1  ;;  %6196 = vadd.xlane.f32.xlu0 %v6195_v29  ;;  %9433 = vpow2.f32 %v6158_v9  ;;  %v6186_v51 = vsel %vm1220_vm3, %v11053_v23, 0.0  ;;  %v11456_v1 = vld [vmem:[#allocation30_spill] sm:$0xff] }
 0xaf0   : > { %8825 = vmatprep.subr.bf16.mxu0 %v11047_v60 }
 0xaf1   : > { %v11057_v26 = vpop.eup %9425  ;;  %v6166_v63 = vmul.f32 1.442695, %v6135_v11 }
 0xaf2   : > { %v9182_v55 = vpop.permute.xlu0 %9181  ;;  %v6189_v49 = vsel %vm1220_vm3, %v11057_v26, 0.0 }
 0xaf3   : > { %v9184_v12 = vunpack.i.h.bf16 %v9182_v55  ;;  %v9183_v27 = vunpack.i.l.bf16 %v9182_v55  ;;  %6187 = vadd.xlane.f32.xlu1 %v6186_v51  ;;  %6190 = vadd.xlane.f32.xlu0 %v6189_v49  ;;  %9435 = vpow2.f32 %v6166_v63 }
 0xaf5   : > { %v11063_v54 = vpop.eup %9427  ;;  %v8820_v48 = vpack.c.bf16 %v9184_v12, %v9183_v27 }
 0xaf6   : > { %v11065_v10 = vpop.eup %9429  ;;  %v6207_v53 = vsel %vm1220_vm3, %v11063_v54, 0.0 }
 0xaf7   : > { %v11069_v25 = vpop.eup %9431  ;;  %6208 = vadd.xlane.f32.xlu0 %v6207_v53  ;;  %8821 = vmatprep.subr.bf16.mxu1 %v8820_v48  ;;  %v6198_v36 = vsel %vm1220_vm3, %v11065_v10, 0.0 }
 0xaf8   : > { %6199 = vadd.xlane.f32.xlu1 %v6198_v36  ;;  %8823 = vmatpush3.bf16.msra.mxu1 %v8820_v48  ;;  %v6204_v15 = vsel %vm1220_vm3, %v11069_v25, 0.0 }
 0xaf9   : > { %v11075_v56 = vpop.eup %9433 }
 0xafa   : > { %v6201_v45 = vsel %vm1220_vm3, %v11075_v56, 0.0 }
 0xafb   : > { %6205 = vadd.xlane.f32.xlu0 %v6204_v15 }
 0xafd   : > { %v11079_v35 = vpop.eup %9435 }
 0xafe   : > { %v6213_v34 = vsel %vm1220_vm3, %v11079_v35, 0.0 }
 0xaff   : > { %6202 = vadd.xlane.f32.xlu0 %v6201_v45 }
 0xb03   : > { %6214 = vadd.xlane.f32.xlu0 %v6213_v34 }
 0xb09   : > { %9196 = vrot.lane.b32.xlu1 %v9708_v47, %s9524_s20 }
 0xb0d   : > { %9201 = vrot.lane.b32.xlu1 %v9744_v61, %s9524_s20 }
 0xb11   : > { %9206 = vrot.lane.b32.xlu1 %v9728_v57, %s9524_s20 }
 0xb19   : > { %9191 = vrot.lane.b32.xlu0 %v9732_v58, %s9524_s20 }
 0xb1c   : > { %v6116_v40 = vpop.xlane.xlu1 %6115 }
 0xb1d   : > { %6960 = vrot.lane.b32.xlu0 %v10555_v22, %s9525_s23  ;;  %v6134_v0 = vsub.f32 %v11005_v39, %v6116_v40 }
 0xb1f   : > { %v6164_v47 = vmul.f32 1.442695, %v6134_v0 }
 0xb20   : > { %v6170_v50 = vpop.xlane.xlu1 %6169 }
 0xb21   : > { %7024 = vrot.lane.b32.xlu0 %v10907_v59, %s9526_s24  ;;  %9437 = vrcp.f32 %v6170_v50 }
 0xb23   : > { %v6173_v61 = vpop.xlane.xlu0 %6172 }
 0xb24   : > { %9439 = vrcp.f32 %v6173_v61  ;;  %v6182_v57 = vpop.xlane.xlu1 %6181 }
 0xb25   : > { %9441 = vrcp.f32 %v6182_v57  ;;  %6964 = vrot.lane.b32.xlu0 %v10563_v13, %s9525_s23 }
 0xb26   : > { %9443 = vpow2.f32 %v6164_v47 }
 0xb27   : > { %v6185_v58 = vpop.xlane.xlu0 %6184 }
 0xb28   : > { %9445 = vrcp.f32 %v6185_v58 }
 0xb29   : > { %7028 = vrot.lane.b32.xlu0 %v10915_v16, %s9526_s24 }
 0xb2b   : > { %v9438_v22 = vpop.eup %9437 }
 0xb2c   : > { %v6232_v59 = vmul.f32 %v9438_v22, %v11009_v28 }
 0xb2d   : > { %6968 = vrot.lane.b32.xlu0 %v10559_v18, %s9525_s23 }
 0xb2e   : > { %v9440_v39 = vpop.eup %9439  ;;  %8436 = vmatprep.mubr.msk.f32.mxu0 %vm1220_vm3, %v6232_v59 }
 0xb2f   : > { %v9442_v43 = vpop.eup %9441  ;;  %v6233_v9 = vmul.f32 %v9440_v39, %v11011_v21  ;;  %v11455_v21 = vld [vmem:[#allocation26_spill] sm:$0xff] }
 0xb30   : > { %v6236_v13 = vmul.f32 %v9442_v43, %v11015_v14  ;;  %v11106_v52 = vpop.eup %9443 }
 0xb31   : > { %7032 = vrot.lane.b32.xlu0 %v10911_v17, %s9526_s24  ;;  %8437 = vmatmul.mubr.msk.f32.vlgmr.msra.gmra.mrb[60].mxu0 %vm1220_vm3, %v6233_v9  ;;  %v6210_v28 = vsel %vm1220_vm3, %v11106_v52, 0.0  ;;  %v11446_v17 = vld [vmem:[#allocation29_spill] sm:$0xff] }
 0xb32   : > { %v9446_v16 = vpop.eup %9445  ;;  %8827 = vmatpush3.bf16.msra.mxu0 %v11047_v60  ;;  %8450 = vmatprep.mubr.msk.f32.mxu0 %vm1220_vm3, %v6236_v13 }
 0xb33   : > { %v6237_v18 = vmul.f32 %v9446_v16, %v11019_v20 }
 0xb35   : > { %6211 = vadd.xlane.f32.xlu1 %v6210_v28  ;;  %6972 = vrot.lane.b32.xlu0 %v10571_v7, %s9525_s23  ;;  %v11447_v7 = vld [vmem:[#allocation21_spill] sm:$0xff] }
 0xb36   : > { %8451 = vmatmul.mubr.msk.f32.vlgmr.msra.gmra.mrb[62].mxu0 %vm1220_vm3, %v6237_v18 }
 0xb39   : > { %7036 = vrot.lane.b32.xlu0 %v10923_v31, %s9526_s24  ;;  %v11448_v31 = vld [vmem:[#allocation27_spill] sm:$0xff] }
 0xb3d   : > { %6976 = vrot.lane.b32.xlu0 %v10567_v24, %s9525_s23  ;;  %v11449_v24 = vld [vmem:[#allocation23_spill] sm:$0xff] }
 0xb41   : > { %7040 = vrot.lane.b32.xlu0 %v10919_v2, %s9526_s24  ;;  %v11451_v2 = vld [vmem:[#allocation22_spill] sm:$0xff] }
 0xb45   : > { %6980 = vrot.lane.b32.xlu0 %v11446_v17, %s9525_s23 }
 0xb46   : > { %9211 = vrot.lane.b32.xlu1 %v9751_v62, %s9524_s20  ;;  %v11450_v62 = vld [vmem:[#allocation31_spill] sm:$0xff] }
 0xb49   : > { %7044 = vrot.lane.b32.xlu0 %v10947_v33, %s9526_s24 }
 0xb4a   : > { %6962 = vrot.lane.b32.xlu1 %v11447_v7, %s9525_s23 }
 0xb4d   : > { %6984 = vrot.lane.b32.xlu0 %v11448_v31, %s9525_s23 }
 0xb4e   : > { %7026 = vrot.lane.b32.xlu1 %v10905_v38, %s9526_s24  ;;  %v11452_v38 = vld [vmem:[#allocation25_spill] sm:$0xff] }
 0xb51   : > { %7048 = vrot.lane.b32.xlu0 %v10927_v46, %s9526_s24  ;;  %v11453_v46 = vld [vmem:[#allocation24_spill] sm:$0xff] }
 0xb52   : > { %6966 = vrot.lane.b32.xlu1 %v11449_v24, %s9525_s23 }
 0xb55   : > { %6988 = vrot.lane.b32.xlu0 %v11450_v62, %s9525_s23  ;;  %v11457_v62 = vld [vmem:[#allocation8_spill] sm:$0xff] }
 0xb56   : > { %7030 = vrot.lane.b32.xlu1 %v10913_v30, %s9526_s24  ;;  %v11454_v30 = vld [vmem:[#allocation28_spill] sm:$0xff] }
 0xb5a   : > { %6970 = vrot.lane.b32.xlu1 %v11451_v2, %s9525_s23 }
 0xb5e   : > { %7034 = vrot.lane.b32.xlu1 %v10909_v3, %s9526_s24 }
 0xb62   : > { %6974 = vrot.lane.b32.xlu1 %v11452_v38, %s9525_s23 }
 0xb66   : > { %7038 = vrot.lane.b32.xlu1 %v10921_v8, %s9526_s24 }
 0xb6a   : > { %6978 = vrot.lane.b32.xlu1 %v11453_v46, %s9525_s23 }
 0xb6e   : > { %7042 = vrot.lane.b32.xlu1 %v10917_v4, %s9526_s24 }
 0xb72   : > { %6982 = vrot.lane.b32.xlu1 %v11454_v30, %s9525_s23  ;;  %v11458_v30 = vld [vmem:[#allocation10_spill] sm:$0xff] }
 0xb74   : > { %v6179_v33 = vpop.xlane.xlu0 %6178 }
 0xb75   : > { %9447 = vrcp.f32 %v6179_v33 }
 0xb76   : > { %7046 = vrot.lane.b32.xlu1 %v10945_v41, %s9526_s24 }
 0xb78   : > { %v6176_v3 = vpop.xlane.xlu1 %6175 }
 0xb79   : > { %9449 = vrcp.f32 %v6176_v3 }
 0xb7a   : > { %6986 = vrot.lane.b32.xlu1 %v11455_v21, %s9525_s23 }
 0xb7c   : > { %v6194_v8 = vpop.xlane.xlu1 %6193  ;;  %v6197_v14 = vpop.xlane.xlu0 %6196 }
 0xb7d   : > { %9451 = vrcp.f32 %v6194_v8 }
 0xb7e   : > { %7050 = vrot.lane.b32.xlu1 %v10925_v19, %s9526_s24 }
 0xb7f   : > { %v9448_v60 = vpop.eup %9447 }
 0xb80   : > { %v6188_v4 = vpop.xlane.xlu1 %6187  ;;  %v6191_v20 = vpop.xlane.xlu0 %6190  ;;  %v6235_v63 = vmul.f32 %v9448_v60, %v11031_v42  ;;  %v11460_v60 = vld [vmem:[#allocation12_spill] sm:$0xff] }
 0xb81   : > { %9453 = vrcp.f32 %v6188_v4 }
 0xb82   : > { %6990 = vrot.lane.b32.xlu1 %v11456_v1, %s9525_s23  ;;  %9455 = vrcp.f32 %v6197_v14 }
 0xb83   : > { %v9450_v41 = vpop.eup %9449 }
 0xb84   : > { %v6209_v29 = vpop.xlane.xlu0 %6208  ;;  %v6234_v11 = vmul.f32 %v9450_v41, %v11038_v6 }
 0xb85   : > { %v6200_v55 = vpop.xlane.xlu1 %6199 }
 0xb86   : > { %8443 = vmatprep.mubr.msk.f32.mxu1 %vm1220_vm3, %v6234_v11 }
 0xb87   : > { %v9452_v51 = vpop.eup %9451  ;;  %8444 = vmatmul.mubr.msk.f32.vlgmr.msra.gmra.mrb[68].mxu1 %vm1220_vm3, %v6235_v63  ;;  %v11461_v63 = vld [vmem:[#allocation18_spill] sm:$0xff] }
 0xb88   : > { %v6206_v19 = vpop.xlane.xlu0 %6205  ;;  %v6240_v49 = vmul.f32 %v9452_v51, %v11042_v37 }
 0xb89   : > { %9457 = vrcp.f32 %v6206_v19  ;;  %v9197_v12 = vpop.permute.xlu1 %9196 }
 0xb8a   : > { %v9199_v27 = vunpack.i.h.bf16 %v9197_v12  ;;  %v9198_v48 = vunpack.i.l.bf16 %v9197_v12  ;;  %8464 = vmatprep.mubr.msk.f32.mxu0 %vm1220_vm3, %v6240_v49  ;;  %9459 = vrcp.f32 %v6209_v29 }
 0xb8b   : > { %v9454_v53 = vpop.eup %9453  ;;  %9461 = vrcp.f32 %v6191_v20 }
 0xb8c   : > { %v8832_v6 = vpack.c.bf16 %v9199_v27, %v9198_v48  ;;  %v6203_v36 = vpop.xlane.xlu0 %6202  ;;  %v6238_v42 = vmul.f32 %v9454_v53, %v11053_v23  ;;  %v9456_v15 = vpop.eup %9455  ;;  %9463 = vrcp.f32 %v6200_v55 }
 0xb8d   : > { %v9202_v45 = vpop.permute.xlu1 %9201  ;;  %v6241_v37 = vmul.f32 %v9456_v15, %v11045_v32  ;;  %9465 = vrcp.f32 %v6203_v36  ;;  %v11462_v36 = vld [vmem:[#allocation14_spill] sm:$0xff] }
 0xb8e   : > { %8457 = vmatprep.mubr.msk.f32.mxu1 %vm1220_vm3, %v6238_v42  ;;  %8833 = vmatprep.subr.bf16.mxu0 %v8832_v6  ;;  %v9204_v22 = vunpack.i.h.bf16 %v9202_v45  ;;  %v9203_v59 = vunpack.i.l.bf16 %v9202_v45 }
 0xb8f   : > { %8835 = vmatpush3.bf16.msra.mxu0 %v8832_v6 }
 0xb90   : > { %v6215_v34 = vpop.xlane.xlu0 %6214  ;;  %v8836_v28 = vpack.c.bf16 %v9204_v22, %v9203_v59 }
 0xb91   : > { %v9207_v40 = vpop.permute.xlu1 %9206  ;;  %9467 = vrcp.f32 %v6215_v34 }
 0xb92   : > { %v9209_v0 = vunpack.i.h.bf16 %v9207_v40  ;;  %v9208_v50 = vunpack.i.l.bf16 %v9207_v40  ;;  %8465 = vmatmul.mubr.msk.f32.vlgmr.msra.gmra.mrb[64].mxu0 %vm1220_vm3, %v6241_v37 }
 0xb93   : > { %v9458_v47 = vpop.eup %9457 }
 0xb94   : > { %v8840_v61 = vpack.c.bf16 %v9209_v0, %v9208_v50  ;;  %v9192_v23 = vpop.permute.xlu0 %9191  ;;  %v6244_v57 = vmul.f32 %v9458_v47, %v11069_v25  ;;  %v9460_v58 = vpop.eup %9459 }
 0xb95   : > { %v9194_v39 = vunpack.i.h.bf16 %v9192_v23  ;;  %v9193_v43 = vunpack.i.l.bf16 %v9192_v23  ;;  %v9462_v9 = vpop.eup %9461  ;;  %v6245_v13 = vmul.f32 %v9460_v58, %v11063_v54  ;;  %v11463_v23 = vld [vmem:[#allocation7_spill] sm:$0xff] }
 0xb96   : > { %8841 = vmatprep.subr.bf16.mxu0 %v8840_v61  ;;  %8478 = vmatprep.mubr.msk.f32.mxu0 %vm1220_vm3, %v6244_v57  ;;  %v9464_v18 = vpop.eup %9463  ;;  %v6239_v25 = vmul.f32 %v9462_v9, %v11057_v26  ;;  %v11465_v9 = vld [vmem:[#allocation15_spill] sm:$0xff] }
 0xb97   : > { %v8828_v32 = vpack.c.bf16 %v9194_v39, %v9193_v43  ;;  %8843 = vmatpush3.bf16.msra.mxu0 %v8840_v61  ;;  %v9466_v17 = vpop.eup %9465  ;;  %v6242_v31 = vmul.f32 %v9464_v18, %v11065_v10  ;;  %v11464_v39 = vld [vmem:[#allocation9_spill] sm:$0xff] }
 0xb98   : > { %v11180_v16 = vpop.permute.xlu0 %6960  ;;  %v6243_v54 = vmul.f32 %v9466_v17, %v11075_v56  ;;  %v11459_v56 = vld [vmem:[#allocation16_spill] sm:$0xff]  ;;  %v11466_v17 = vld [vmem:[#allocation11_spill] sm:$0xff] }
 0xb99   : > { %8829 = vmatprep.subr.bf16.mxu1 %v8828_v32 }
 0xb9a   : > { %8831 = vmatpush3.bf16.msra.mxu1 %v8828_v32  ;;  %8479 = vmatmul.mubr.msk.f32.vlgmr.msra.gmra.mrb[66].mxu0 %vm1220_vm3, %v6245_v13 }
 0xb9b   : > { %8837 = vmatprep.subr.bf16.mxu1 %v8836_v28  ;;  %v9468_v45 = vpop.eup %9467 }
 0xb9c   : > { %v11184_v7 = vpop.permute.xlu0 %7024  ;;  %v6247_v47 = vmul.f32 %v9468_v45, %v11079_v35 }
 0xb9d   : > { %8458 = vmatmul.mubr.msk.f32.vlgmr.msra.gmra.mrb[70].mxu1 %vm1220_vm3, %v6239_v25 }
 0xb9e   : > { %8839 = vmatpush3.bf16.msra.mxu1 %v8836_v28  ;;  %8471 = vmatprep.mubr.msk.f32.mxu1 %vm1220_vm3, %v6242_v31 }
 0xba0   : > { %v6965_v24 = vpop.permute.xlu0 %6964 }
 0xba1   : > { %v7138_v2 = vsel %vm513_vm1, %v11457_v62, %v6965_v24  ;;  %8472 = vmatmul.mubr.msk.f32.vlgmr.msra.gmra.mrb[72].mxu1 %vm1220_vm3, %v6243_v54 }
 0xba4   : > { %v7029_v26 = vpop.permute.xlu0 %7028 }
 0xba5   : > { %v11194_v38 = vsel %vm1220_vm3, %v7138_v2, %v7029_v26  ;;  %v7185_v2 = vld [vmem:[%s11405_s3] sm:$0xff]  ;;  %v7186_v26 = vld [vmem:[%s11405_s3 + $0x8] sm:$0xff] }
 0xba8   : > { %v6969_v46 = vpop.permute.xlu0 %6968 }
 0xba9   : > { %v7140_v10 = vsel %vm513_vm1, %v11458_v30, %v6969_v46  ;;  %v11467_v46 = vld [vmem:[#allocation17_spill] sm:$0xff] }
 0xbac   : > { %v7033_v33 = vpop.permute.xlu0 %7032 }
 0xbad   : > { %v11199_v3 = vsel %vm1220_vm3, %v7140_v10, %v7033_v33  ;;  %v8848_v10 = vpack.c.bf16 %v7186_v26, %v7185_v2 }
 0xbaf   : > { %8849 = vmatprep.subr.bf16.mxu0 %v8848_v10 }
 0xbb0   : > { %v6973_v21 = vpop.permute.xlu0 %6972  ;;  %8851 = vmatpush3.bf16.msra.mxu0 %v8848_v10 }
 0xbb1   : > { %v7142_v8 = vsel %vm513_vm1, %v11459_v56, %v6973_v21  ;;  %v7187_v56 = vld [vmem:[%s11405_s3 + $0x10] sm:$0xff] }
 0xbb4   : > { %v7037_v14 = vpop.permute.xlu0 %7036 }
 0xbb5   : > { %v11204_v4 = vsel %vm1220_vm3, %v7142_v8, %v7037_v14  ;;  %v7188_v8 = vld [vmem:[%s11405_s3 + $0x18] sm:$0xff] }
 0xbb6   : > { %v8852_v14 = vpack.c.bf16 %v7188_v8, %v7187_v56  ;;  %v11471_v56 = vld [vmem:[#allocation20_spill] sm:$0xff] }
 0xbb8   : > { %v6977_v20 = vpop.permute.xlu0 %6976  ;;  %8853 = vmatprep.subr.bf16.mxu0 %v8852_v14 }
 0xbb9   : > { %v7144_v1 = vsel %vm513_vm1, %v11460_v60, %v6977_v20  ;;  %v11468_v60 = vld [vmem:[#allocation13_spill] sm:$0xff]  ;;  %8855 = vmatpush3.bf16.msra.mxu0 %v8852_v14  ;;  %v11472_v14 = vld [vmem:[#allocation19_spill] sm:$0xff] }
 0xbbc   : > { %v7041_v41 = vpop.permute.xlu0 %7040 }
 0xbbd   : > { %v11209_v29 = vsel %vm1220_vm3, %v7144_v1, %v7041_v41 }
 0xbc0   : > { %v6981_v11 = vpop.permute.xlu0 %6980 }
 0xbc1   : > { %v7146_v55 = vsel %vm513_vm1, %v11461_v63, %v6981_v11 }
 0xbc2   : > { %v6212_v51 = vpop.xlane.xlu1 %6211 }
 0xbc3   : > { %9469 = vrcp.f32 %v6212_v51 }
 0xbc4   : > { %v7045_v19 = vpop.permute.xlu0 %7044 }
 0xbc5   : > { %v11214_v49 = vsel %vm1220_vm3, %v7146_v55, %v7045_v19 }
 0xbc6   : > { %v9212_v12 = vpop.permute.xlu1 %9211 }
 0xbc7   : > { %v9214_v27 = vunpack.i.h.bf16 %v9212_v12  ;;  %v9213_v48 = vunpack.i.l.bf16 %v9212_v12 }
 0xbc8   : > { %v6985_v53 = vpop.permute.xlu0 %6984 }
 0xbc9   : > { %v8844_v6 = vpack.c.bf16 %v9214_v27, %v9213_v48  ;;  %v7148_v42 = vsel %vm513_vm1, %v11462_v36, %v6985_v53 }
 0xbca   : > { %v11218_v15 = vpop.permute.xlu1 %6962 }
 0xbcb   : > { %8845 = vmatprep.subr.bf16.mxu1 %v8844_v6 }
 0xbcc   : > { %v7049_v37 = vpop.permute.xlu0 %7048  ;;  %8847 = vmatpush3.bf16.msra.mxu1 %v8844_v6 }
 0xbcd   : > { %v9470_v34 = vpop.eup %9469  ;;  %v11221_v40 = vsel %vm1220_vm3, %v7148_v42, %v7049_v37 }
 0xbce   : > { %v11223_v0 = vpop.permute.xlu1 %7026  ;;  %v6246_v50 = vmul.f32 %v9470_v34, %v11106_v52 }
 0xbd0   : > { %8485 = vmatprep.mubr.msk.f32.mxu1 %vm1220_vm3, %v6246_v50  ;;  %v11283_v34 = vpop.permute.xlu0 %6988 }
 0xbd1   : > { %8486 = vmatmul.mubr.msk.f32.vlgmr.msra.gmra.mrb[74].mxu1 %vm1220_vm3, %v6247_v47 }
 0xbd2   : > { %v6967_v61 = vpop.permute.xlu1 %6966 }
 0xbd3   : > { %v7139_v57 = vsel %vm513_vm1, %v11463_v23, %v6967_v61  ;;  %v11469_v61 = vld [vmem:[#allocation6_spill] sm:$0xff] }
 0xbd4   : > { %v7136_v23 = vsel %vm513_vm1, %v11469_v61, %v11180_v16 }
 0xbd6   : > { %v7031_v58 = vpop.permute.xlu1 %7030 }
 0xbd7   : > { %v11232_v22 = vsel %vm1220_vm3, %v7139_v57, %v7031_v58  ;;  %v7152_v58 = vsel %vm1220_vm3, %v7136_v23, %v11184_v7 }
 0xbda   : > { %v6971_v59 = vpop.permute.xlu1 %6970 }
 0xbdb   : > { %v7141_v43 = vsel %vm513_vm1, %v11464_v39, %v6971_v59  ;;  %v11470_v59 = vld [vmem:[#allocation5_spill] sm:$0xff] }
 0xbdc   : > { %v7137_v39 = vsel %vm513_vm1, %v11470_v59, %v11218_v15 }
 0xbde   : > { %v7035_v32 = vpop.permute.xlu1 %7034 }
 0xbdf   : > { %v11237_v52 = vsel %vm1220_vm3, %v7141_v43, %v7035_v32  ;;  %v7153_v32 = vsel %vm1220_vm3, %v7137_v39, %v11223_v0 }
 0xbe2   : > { %v6975_v35 = vpop.permute.xlu1 %6974 }
 0xbe3   : > { %v7143_v13 = vsel %vm513_vm1, %v11465_v9, %v6975_v35 }
 0xbe6   : > { %v7039_v18 = vpop.permute.xlu1 %7038 }
 0xbe7   : > { %v11242_v28 = vsel %vm1220_vm3, %v7143_v13, %v7039_v18 }
 0xbea   : > { %v6979_v25 = vpop.permute.xlu1 %6978 }
 0xbeb   : > { %v7145_v31 = vsel %vm513_vm1, %v11466_v17, %v6979_v25 }
 0xbee   : > { %v7043_v54 = vpop.permute.xlu1 %7042 }
 0xbef   : > { %v11247_v24 = vsel %vm1220_vm3, %v7145_v31, %v7043_v54 }
 0xbf2   : > { %v6983_v62 = vpop.permute.xlu1 %6982 }
 0xbf3   : > { %v7147_v30 = vsel %vm513_vm1, %v11467_v46, %v6983_v62 }
 0xbf6   : > { %v7047_v33 = vpop.permute.xlu1 %7046 }
 0xbf7   : > { %v11258_v21 = vsel %vm1220_vm3, %v7147_v30, %v7047_v33 }
 0xbfa   : > { %v6987_v20 = vpop.permute.xlu1 %6986 }
 0xbfb   : > { %v7149_v1 = vsel %vm513_vm1, %v11468_v60, %v6987_v20 }
 0xbfe   : > { %v7051_v41 = vpop.permute.xlu1 %7050 }
 0xbff   : > { %v11269_v11 = vsel %vm1220_vm3, %v7149_v1, %v7051_v41 }
 0xc02   : > { %v11281_v37 = vpop.permute.xlu1 %6990 }
 0xc04   : > { %v8438_v63 = vpop.f32.mrb[60].mxu0 }
 0xc05   : > { %7090 = vrot.lane.b32.xlu1 %v8438_v63, %s9527_s8  ;;  %v6326_v55 = vpop.f32.mrb[61].mxu0  ;;  %v7693_v63 = vld [vmem:[%s11406_s4] ss:$0 sm:$0xff] }
 0xc06   : > { %7088 = vrot.lane.b32.xlu0 %v6326_v55, %s9527_s8 }
 0xc09   : > { %v8452_v51 = vpop.f32.mrb[62].mxu0 }
 0xc0a   : > { %7098 = vrot.lane.b32.xlu1 %v8452_v51, %s9527_s8  ;;  %v6500_v19 = vpop.f32.mrb[63].mxu0 }
 0xc0b   : > { %7096 = vrot.lane.b32.xlu0 %v6500_v19, %s9527_s8 }
 0xc5a   : > { %v8445_v12 = vpop.f32.mrb[68].mxu1 }
 0xc5b   : > { %7094 = vrot.lane.b32.xlu1 %v8445_v12, %s9527_s8  ;;  %v6413_v27 = vpop.f32.mrb[69].mxu1 }
 0xc5c   : > { %7092 = vrot.lane.b32.xlu0 %v6413_v27, %s9527_s8 }
 0xc65   : > { %v8466_v48 = vpop.f32.mrb[64].mxu0 }
 0xc66   : > { %v6674_v53 = vpop.f32.mrb[65].mxu0  ;;  %7106 = vrot.lane.b32.xlu1 %v8466_v48, %s9527_s8 }
 0xc67   : > { %7104 = vrot.lane.b32.xlu0 %v6674_v53, %s9527_s8 }
 0xc6d   : > { %v8480_v6 = vpop.f32.mrb[66].mxu0 }
 0xc6e   : > { %v6848_v36 = vpop.f32.mrb[67].mxu0 }
 0xc70   : > { %v8459_v42 = vpop.f32.mrb[70].mxu1 }
 0xc71   : > { %7102 = vrot.lane.b32.xlu1 %v8459_v42, %s9527_s8  ;;  %v6587_v45 = vpop.f32.mrb[71].mxu1 }
 0xc72   : > { %7100 = vrot.lane.b32.xlu0 %v6587_v45, %s9527_s8 }
 0xc74   : > { %v8473_v50 = vpop.f32.mrb[72].mxu1 }
 0xc75   : > { %7114 = vrot.lane.b32.xlu1 %v8480_v6, %s9527_s8  ;;  %v6761_v47 = vpop.f32.mrb[73].mxu1 }
 0xc76   : > { %7112 = vrot.lane.b32.xlu0 %v6848_v36, %s9527_s8 }
 0xc77   : > { %v7091_v57 = vpop.permute.xlu1 %7090 }
 0xc78   : > { %v7089_v43 = vpop.permute.xlu0 %7088  ;;  %v7170_v9 = vsel %vm7168_vm4, %v7153_v32, %v7091_v57 }
 0xc79   : > { %v7169_v35 = vsel %vm7168_vm4, %v7152_v58, %v7089_v43  ;;  %7110 = vrot.lane.b32.xlu1 %v8473_v50, %s9527_s8 }
 0xc7a   : > { %8496 = vmatprep.mubr.msk.f32.mxu0 %vm297_vm0, %v7169_v35  ;;  %7108 = vrot.lane.b32.xlu0 %v6761_v47, %s9527_s8 }
 0xc7b   : > { %8497 = vmatmul.mubr.msk.f32.vlgmr.msra.gmra.mrb[68].mxu0 %vm297_vm0, %v7170_v9 }
 0xc7c   : > { %v7099_v15 = vpop.permute.xlu1 %7098 }
 0xc7d   : > { %7054 = vrot.lane.b32.xlu1 %v10949_v5, %s9526_s24  ;;  %v7097_v0 = vpop.permute.xlu0 %7096 }
 0xc7e   : > { %7052 = vrot.lane.b32.xlu0 %v10953_v44, %s9526_s24  ;;  %v7173_v5 = vsel %vm7168_vm4, %v11199_v3, %v7097_v0  ;;  %v7174_v44 = vsel %vm7168_vm4, %v11237_v52, %v7099_v15 }
 0xca4   : > { %v8487_v16 = vpop.f32.mrb[74].mxu1 }
 0xca5   : > { %7118 = vrot.lane.b32.xlu1 %v8487_v16, %s9527_s8  ;;  %v6935_v7 = vpop.f32.mrb[75].mxu1 }
 0xca6   : > { %7116 = vrot.lane.b32.xlu0 %v6935_v7, %s9527_s8 }
 0xccd   : > { %v7095_v13 = vpop.permute.xlu1 %7094 }
 0xcce   : > { %v7093_v18 = vpop.permute.xlu0 %7092  ;;  %v7172_v17 = vsel %vm7168_vm4, %v11232_v22, %v7095_v13 }
 0xccf   : > { %v7171_v25 = vsel %vm7168_vm4, %v11194_v38, %v7093_v18 }
 0xcd0   : > { %8499 = vmatprep.mubr.msk.f32.mxu0 %vm297_vm0, %v7171_v25 }
 0xcd1   : > { %8500 = vmatmul.mubr.msk.f32.gmra.mrb[70].mxu0 %vm297_vm0, %v7172_v17 }
 0xcd2   : > { %8502 = vmatprep.mubr.msk.f32.mxu0 %vm297_vm0, %v7173_v5 }
 0xcd5   : > { %8503 = vmatmul.mubr.msk.f32.gmra.mrb[72].mxu0 %vm297_vm0, %v7174_v44 }
 0xcd8   : > { %v7107_v31 = vpop.permute.xlu1 %7106 }
 0xcd9   : > { %v7105_v54 = vpop.permute.xlu0 %7104  ;;  %v7178_v46 = vsel %vm7168_vm4, %v11247_v24, %v7107_v31 }
 0xcda   : > { %v7177_v3 = vsel %vm7168_vm4, %v11209_v29, %v7105_v54 }
 0xce3   : > { %v7103_v38 = vpop.permute.xlu1 %7102 }
 0xce4   : > { %v7101_v62 = vpop.permute.xlu0 %7100  ;;  %v7176_v2 = vsel %vm7168_vm4, %v11242_v28, %v7103_v38 }
 0xce5   : > { %v7175_v22 = vsel %vm7168_vm4, %v11204_v4, %v7101_v62 }
 0xce6   : > { %8505 = vmatprep.mubr.msk.f32.mxu0 %vm297_vm0, %v7175_v22 }
 0xce7   : > { %v7115_v26 = vpop.permute.xlu1 %7114  ;;  %8506 = vmatmul.mubr.msk.f32.gmra.mrb[74].mxu0 %vm297_vm0, %v7176_v2 }
 0xce8   : > { %8508 = vmatprep.mubr.msk.f32.mxu0 %vm297_vm0, %v7177_v3  ;;  %v7113_v52 = vpop.permute.xlu0 %7112  ;;  %v7182_v24 = vsel %vm7168_vm4, %v11269_v11, %v7115_v26 }
 0xce9   : > { %v7181_v29 = vsel %vm7168_vm4, %v11221_v40, %v7113_v52  ;;  %v7151_v40 = vsel %vm513_vm1, %v11472_v14, %v11281_v37 }
 0xceb   : > { %8509 = vmatmul.mubr.msk.f32.gmra.mrb[76].mxu0 %vm297_vm0, %v7178_v46  ;;  %v7111_v4 = vpop.permute.xlu1 %7110 }
 0xcec   : > { %v7109_v30 = vpop.permute.xlu0 %7108  ;;  %v7180_v10 = vsel %vm7168_vm4, %v11258_v21, %v7111_v4  ;;  %v7150_v21 = vsel %vm513_vm1, %v11471_v56, %v11283_v34 }
 0xced   : > { %v7179_v28 = vsel %vm7168_vm4, %v11214_v49, %v7109_v30 }
 0xcee   : > { %8511 = vmatprep.mubr.msk.f32.mxu0 %vm297_vm0, %v7179_v28 }
 0xcef   : > { %8512 = vmatmul.mubr.msk.f32.gmra.mrb[78].mxu0 %vm297_vm0, %v7180_v10  ;;  %v7055_v33 = vpop.permute.xlu1 %7054 }
 0xcf0   : > { %8514 = vmatprep.mubr.msk.f32.mxu0 %vm297_vm0, %v7181_v29  ;;  %v7053_v49 = vpop.permute.xlu0 %7052  ;;  %v7167_v1 = vsel %vm1220_vm3, %v7151_v40, %v7055_v33 }
 0xcf1   : > { %v7166_v20 = vsel %vm1220_vm3, %v7150_v21, %v7053_v49 }
 0xcf3   : > { %8515 = vmatmul.mubr.msk.f32.gmra.mrb[80].mxu0 %vm297_vm0, %v7182_v24 }
 0xd17   : > { %v7119_v8 = vpop.permute.xlu1 %7118 }
 0xd18   : > { %v7117_v60 = vpop.permute.xlu0 %7116  ;;  %v7184_v11 = vsel %vm7168_vm4, %v7167_v1, %v7119_v8 }
 0xd19   : > { %v7183_v41 = vsel %vm7168_vm4, %v7166_v20, %v7117_v60 }
 0xd1a   : > { %8517 = vmatprep.mubr.msk.f32.mxu0 %vm297_vm0, %v7183_v41 }
 0xd1b   : > { %8518 = vmatmul.mubr.msk.f32.gmra.mrb[82].mxu0 %vm297_vm0, %v7184_v11 }
 0xd4e   : > { %v8498_v55 = vpop.f32.mrb[68].mxu0 }
 0xd4f   : > { %v7316_v51 = vadd.f32 %v8498_v55, %v7693_v63  ;;  %v7310_v19 = vpop.f32.mrb[69].mxu0 }
 0xd50   : > { %v7311_v12 = vadd.f32 %v7693_v63, %v7310_v19 }
 0xd51   : > { %7390 = vst.msk [vmem:[%s11365_s13 + $0x8] sm:$0xff] %vm297_vm0, %v7316_v51 }
 0xd52   : > { %7389 = vst.msk [vmem:[%s11365_s13] sm:$0xff] %vm297_vm0, %v7311_v12 }
 0xda4   : > { %v8501_v27 = vpop.f32.mrb[70].mxu0 }
 0xda5   : > { %v7326_v48 = vadd.f32 %v8501_v27, %v7693_v63  ;;  %v7320_v53 = vpop.f32.mrb[71].mxu0 }
 0xda6   : > { %v7321_v6 = vadd.f32 %v7693_v63, %v7320_v53 }
 0xda7   : > { %7392 = vst.msk [vmem:[%s11365_s13 + $0x18] sm:$0xff] %vm297_vm0, %v7326_v48 }
 0xda8   : > { %7391 = vst.msk [vmem:[%s11365_s13 + $0x10] sm:$0xff] %vm297_vm0, %v7321_v6  ;;  %v8504_v36 = vpop.f32.mrb[72].mxu0 }
 0xda9   : > { %v7336_v42 = vadd.f32 %v8504_v36, %v7693_v63  ;;  %v7330_v45 = vpop.f32.mrb[73].mxu0 }
 0xdaa   : > { %v7331_v37 = vadd.f32 %v7693_v63, %v7330_v45 }
 0xdab   : > { %7394 = vst.msk [vmem:[%s11365_s13 + $0x28] sm:$0xff] %vm297_vm0, %v7336_v42 }
 0xdac   : > { %7393 = vst.msk [vmem:[%s11365_s13 + $0x20] sm:$0xff] %vm297_vm0, %v7331_v37 }
 0xdba   : > { %v8507_v34 = vpop.f32.mrb[74].mxu0 }
 0xdbb   : > { %v7346_v50 = vadd.f32 %v8507_v34, %v7693_v63  ;;  %v7340_v47 = vpop.f32.mrb[75].mxu0 }
 0xdbc   : > { %v7341_v61 = vadd.f32 %v7693_v63, %v7340_v47 }
 0xdbd   : > { %7396 = vst.msk [vmem:[%s11365_s13 + $0x38] sm:$0xff] %vm297_vm0, %v7346_v50 }
 0xdbe   : > { %7395 = vst.msk [vmem:[%s11365_s13 + $0x30] sm:$0xff] %vm297_vm0, %v7341_v61  ;;  %v8510_v23 = vpop.f32.mrb[76].mxu0 }
 0xdbf   : > { %v7356_v57 = vadd.f32 %v8510_v23, %v7693_v63  ;;  %v7350_v58 = vpop.f32.mrb[77].mxu0 }
 0xdc0   : > { %v7351_v59 = vadd.f32 %v7693_v63, %v7350_v58 }
 0xdc1   : > { %7398 = vst.msk [vmem:[%s11365_s13 + $0x48] sm:$0xff] %vm297_vm0, %v7356_v57 }
 0xdc2   : > { %7397 = vst.msk [vmem:[%s11365_s13 + $0x40] sm:$0xff] %vm297_vm0, %v7351_v59  ;;  %v8513_v39 = vpop.f32.mrb[78].mxu0 }
 0xdc3   : > { %v7366_v43 = vadd.f32 %v8513_v39, %v7693_v63  ;;  %v7360_v32 = vpop.f32.mrb[79].mxu0 }
 0xdc4   : > { %v7361_v35 = vadd.f32 %v7693_v63, %v7360_v32 }
 0xdc5   : > { %7400 = vst.msk [vmem:[%s11365_s13 + $0x58] sm:$0xff] %vm297_vm0, %v7366_v43 }
 0xdc6   : > { %7399 = vst.msk [vmem:[%s11365_s13 + $0x50] sm:$0xff] %vm297_vm0, %v7361_v35  ;;  %v8516_v9 = vpop.f32.mrb[80].mxu0 }
 0xdc7   : > { %v7376_v16 = vadd.f32 %v8516_v9, %v7693_v63  ;;  %v7370_v7 = vpop.f32.mrb[81].mxu0 }
 0xdc8   : > { %v7371_v15 = vadd.f32 %v7693_v63, %v7370_v7 }
 0xdc9   : > { %7402 = vst.msk [vmem:[%s11365_s13 + $0x68] sm:$0xff] %vm297_vm0, %v7376_v16 }
 0xdca   : > { %7401 = vst.msk [vmem:[%s11365_s13 + $0x60] sm:$0xff] %vm297_vm0, %v7371_v15 }
 0xdee   : > { %v8519_v0 = vpop.f32.mrb[82].mxu0 }
 0xdef   : > { %v7386_v13 = vadd.f32 %v8519_v0, %v7693_v63  ;;  %v7380_v18 = vpop.f32.mrb[83].mxu0 }
 0xdf0   : > { %v7381_v25 = vadd.f32 %v7693_v63, %v7380_v18 }
 0xdf1   : > { %7404 = vst.msk [vmem:[%s11365_s13 + $0x78] sm:$0xff] %vm297_vm0, %v7386_v13 }
 0xdf2   : > { %7403 = vst.msk [vmem:[%s11365_s13 + $0x70] sm:$0xff] %vm297_vm0, %v7381_v25 }
 0xdf3 PF: > { %s17_s21 = sadd.s32 1, %s9509_s21  }
 0xdf4   : > { %p14_p3 = scmp.ge.s32.totalorder %s17_s21, 4  }
 0xdf6   :  { %16 = sbr.rel (!%p14_p3) target bundleno = 1 (0x1), region = 82 }
 0xdfd   :  { %7427 = vsyncpa [#allocation3], 1 }
 0xdfe   :  { %7429 = vsyncpa [#allocation3 + $0x1], 1 }

</bundles_post_ra>
